<compile_context>
chip_gen: v7x
topology: tpu7x:2x2x1
jax: 0.10.0
libtpu: 0.0.40
codegen_flags: <defaults>
</compile_context>

<pallas_src>
import math

import jax
import jax.numpy as jnp
from jax.experimental import pallas as pl
from jax.experimental.pallas import tpu as pltpu

MSG_EPS = 1e-7    # GENConv message eps
LN_EPS = 1e-5     # torch LayerNorm default eps
NEG_BIG = -1e30   # finite "-inf" for the running softmax max


def _round_up(v, m):
    return (v + m - 1) // m * m


def _pad2(a, rows, cols):
    r, c = a.shape
    return jnp.pad(a, ((0, rows - r), (0, cols - c)))


def make_patchgcn_kernel(h_true, hp, h2_true, h2p):
    """Kernel closure over static true/padded feature sizes."""

    def kernel(counts_ref, t_ref, mask_ref, adj_ref, xs_ref, xd_ref,
               w1_ref, b1_ref, g1_ref, be1_ref,
               w2_ref, b2_ref, go_ref, bo_ref,
               out_ref, acc_ref, cmax_ref):
        i = pl.program_id(0)
        k = pl.program_id(1)
        nk = pl.num_programs(1)

        @pl.when(k == 0)
        def _init():
            acc_ref[...] = jnp.zeros_like(acc_ref)
            cmax_ref[...] = jnp.full((1, hp), NEG_BIG, jnp.float32)

        # block-sparse skip: an adjacency tile with no edges contributes exactly zero
        # to both numerator and denominator, so the whole message+matmul body is skipped.
        cnt = counts_ref[i * nk + k]

        @pl.when(cnt > 0)
        def _accumulate():
            t = t_ref[0, 0]
            mask = mask_ref[...]                               # (1, Hp) drop-node mask

            # ---- GENConv messages for this source chunk ----------------------------
            xs = xs_ref[...] * mask                            # masked source features
            m = jnp.maximum(xs, 0.0) + MSG_EPS                 # relu(x_j) + eps
            z = t * m                                          # per-feature softmax logits

            # online per-feature running max -> numerically stable scatter-softmax
            c_prev = cmax_ref[...]
            c_new = jnp.maximum(c_prev, jnp.max(z, axis=0, keepdims=True))
            rescale = jnp.exp(c_prev - c_new)                  # underflows to 0 on first hit
            cmax_ref[...] = c_new

            e = jnp.exp(z - c_new)                             # in (0, 1]
            p = jnp.concatenate([e * m, e], axis=-1).astype(jnp.bfloat16)  # (tk, 2*Hp)

            # fused numerator/denominator aggregation: one MXU pass over the adj tile
            acc_ref[...] = (acc_ref[...] * jnp.concatenate([rescale, rescale], axis=-1)
                            + jnp.dot(adj_ref[...], p,
                                      preferred_element_type=jnp.float32))

        # ---- finalize: normalize, GENConv MLP, DeepGCN 'res' block ------------------
        @pl.when(k == nk - 1)
        def _finalize():
            mask = mask_ref[...]
            num = acc_ref[:, :hp]
            den = acc_ref[:, hp:]
            has_edge = den > 0.0
            inv_den = pl.reciprocal(jnp.where(has_edge, den, 1.0), approx=True)
            agg = jnp.where(has_edge, num * inv_den, 0.0)      # isolated nodes -> 0

            xd = xd_ref[...] * mask                            # masked dst features
            h = agg + xd                                       # GENConv root add

            # MLP: Linear(H->2H) -> LayerNorm(2H) -> ReLU -> Linear(2H->H)
            # (tiny per-dst-tile matmuls kept in f32 for parity with torch)
            h1 = jnp.dot(h, w1_ref[...],
                         preferred_element_type=jnp.float32) + b1_ref[...]
            lane2 = jax.lax.broadcasted_iota(jnp.int32, (1, h2p), 1)
            fm2 = (lane2 < h2_true).astype(jnp.float32)        # mask for true 2H lanes
            mu1 = jnp.sum(h1, axis=-1, keepdims=True) * (1.0 / h2_true)
            c1 = (h1 - mu1) * fm2
            var1 = jnp.sum(c1 * c1, axis=-1, keepdims=True) * (1.0 / h2_true)
            h1 = c1 * jax.lax.rsqrt(var1 + LN_EPS) * g1_ref[...] + be1_ref[...]
            h1 = jnp.maximum(h1, 0.0)

            h2 = jnp.dot(h1, w2_ref[...],
                         preferred_element_type=jnp.float32) + b2_ref[...]

            # DeepGCNLayer block='res': LayerNorm(H) -> ReLU -> residual
            lane1 = jax.lax.broadcasted_iota(jnp.int32, (1, hp), 1)
            fm1 = (lane1 < h_true).astype(jnp.float32)
            mu2 = jnp.sum(h2, axis=-1, keepdims=True) * (1.0 / h_true)
            c2 = (h2 - mu2) * fm1
            var2 = jnp.sum(c2 * c2, axis=-1, keepdims=True) * (1.0 / h_true)
            h2 = c2 * jax.lax.rsqrt(var2 + LN_EPS) * go_ref[...] + bo_ref[...]
            h2 = jnp.maximum(h2, 0.0)

            # TODO(synk): F.dropout(p=0.1) after the residual is training-only; eval here.
            out_ref[...] = xd + h2

    return kernel


def patchgcn_forward(x, edge_index, mask, t, params, *, tile_m=512, tile_k=512):
    """x: (N, H) f32, edge_index: (2, E) int32 [src; dst], mask: (1, H), t: (1, 1),
    params = (w1, b1, g1, be1, w2, b2, go, bo) with torch-equivalent shapes."""
    n, h = x.shape
    h2 = 2 * h
    hp = _round_up(h, 128)
    h2p = _round_up(h2, 128)

    # tiles: lane dim (tile_k of adj) must be a 128-multiple; clamp to padded N.
    npad0 = _round_up(n, 128)
    tile_m = min(tile_m, npad0)
    tile_k = min(tile_k, npad0)
    lcm = tile_m * tile_k // math.gcd(tile_m, tile_k)
    npad = _round_up(n, lcm)
    nt_i = npad // tile_m
    nt_k = npad // tile_k

    w1, b1, g1, be1, w2, b2, go, bo = params

    src = edge_index[0]
    dst = edge_index[1]

    # dense adjacency adj[dst, src] = edge multiplicity (exact in bf16 for small counts)
    adj = (jnp.zeros((npad, npad), jnp.float32)
           .at[dst, src].add(1.0)).astype(jnp.bfloat16)
    # per-(dst tile, src chunk) edge counts -> block-sparse skip table (scalar prefetch)
    counts = (jnp.zeros((nt_i * nt_k,), jnp.int32)
              .at[(dst // tile_m) * nt_k + (src // tile_k)].add(1))

    x_p = _pad2(x, npad, hp)
    mask_p = _pad2(mask, 1, hp)
    w1_p = _pad2(w1, hp, h2p)
    b1_p = _pad2(b1, 1, h2p)
    g1_p = _pad2(g1, 1, h2p)
    be1_p = _pad2(be1, 1, h2p)
    w2_p = _pad2(w2, h2p, hp)
    b2_p = _pad2(b2, 1, hp)
    go_p = _pad2(go, 1, hp)
    bo_p = _pad2(bo, 1, hp)

    grid = (nt_i, nt_k)
    kernel = make_patchgcn_kernel(h, hp, h2, h2p)

    out = pl.pallas_call(
        kernel,
        out_shape=jax.ShapeDtypeStruct((npad, hp), jnp.float32),
        grid_spec=pltpu.PrefetchScalarGridSpec(
            num_scalar_prefetch=1,                                       # counts table
            grid=grid,
            in_specs=[
                pl.BlockSpec((1, 1), lambda i, k, c: (0, 0),
                             memory_space=pltpu.MemorySpace.SMEM),       # t (scalar)
                pl.BlockSpec((1, hp), lambda i, k, c: (0, 0)),           # drop-node mask
                pl.BlockSpec((tile_m, tile_k), lambda i, k, c: (i, k)),  # adj tile (dst, src)
                pl.BlockSpec((tile_k, hp), lambda i, k, c: (k, 0)),      # x as message source
                pl.BlockSpec((tile_m, hp), lambda i, k, c: (i, 0)),      # x as dst / residual
                pl.BlockSpec((hp, h2p), lambda i, k, c: (0, 0)),         # w1
                pl.BlockSpec((1, h2p), lambda i, k, c: (0, 0)),          # b1
                pl.BlockSpec((1, h2p), lambda i, k, c: (0, 0)),          # LN1 gamma
                pl.BlockSpec((1, h2p), lambda i, k, c: (0, 0)),          # LN1 beta
                pl.BlockSpec((h2p, hp), lambda i, k, c: (0, 0)),         # w2
                pl.BlockSpec((1, hp), lambda i, k, c: (0, 0)),           # b2
                pl.BlockSpec((1, hp), lambda i, k, c: (0, 0)),           # outer LN gamma
                pl.BlockSpec((1, hp), lambda i, k, c: (0, 0)),           # outer LN beta
            ],
            out_specs=pl.BlockSpec((tile_m, hp), lambda i, k, c: (i, 0)),
            scratch_shapes=[
                pltpu.VMEM((tile_m, 2 * hp), jnp.float32),   # [num | den] accumulator
                pltpu.VMEM((1, hp), jnp.float32),            # running per-feature max
            ],
        ),
        compiler_params=pltpu.CompilerParams(
            dimension_semantics=("parallel", "arbitrary"),
            # a few MiB actually used; safe headroom on v5e/v6e (128 MiB) and v7x (64 MiB)
            vmem_limit_bytes=32 * 1024 * 1024,
        ),
    )(counts, t, mask_p, adj, x_p, x_p,
      w1_p, b1_p, g1_p, be1_p, w2_p, b2_p, go_p, bo_p)

    return out[:n, :h]


def patchgcn_ref(x, edge_index, mask, t, params):
    """Pure-JAX reference (f32) of the same eval-mode forward."""
    w1, b1, g1, be1, w2, b2, go, bo = params
    n = x.shape[0]
    xm = x * mask
    src, dst = edge_index[0], edge_index[1]

    m = jax.nn.relu(xm[src]) + MSG_EPS
    z = t[0, 0] * m
    zmax = jax.ops.segment_max(z, dst, num_segments=n)
    zmax = jnp.where(jnp.isfinite(zmax), zmax, 0.0)
    e = jnp.exp(z - zmax[dst])
    den = jax.ops.segment_sum(e, dst, num_segments=n)
    num = jax.ops.segment_sum(e * m, dst, num_segments=n)
    agg = jnp.where(den > 0, num / jnp.where(den > 0, den, 1.0), 0.0)

    def ln(v, g, b):
        mu = jnp.mean(v, axis=-1, keepdims=True)
        var = jnp.mean((v - mu) ** 2, axis=-1, keepdims=True)
        return (v - mu) * jax.lax.rsqrt(var + LN_EPS) * g + b

    hcat = agg + xm
    h1 = jnp.maximum(ln(hcat @ w1 + b1, g1, be1), 0.0)
    h2 = jnp.maximum(ln(h1 @ w2 + b2, go, bo), 0.0)
    return xm + h2


def make_params(key, hidden_dim):
    """Deterministic synthetic init matching the module's parameter shapes."""
    H = hidden_dim
    k1, k2, k3, k4 = jax.random.split(key, 4)
    w1 = jax.random.normal(k1, (H, 2 * H), jnp.float32) * 0.1     # Linear(H, 2H)
    b1 = jax.random.normal(k2, (1, 2 * H), jnp.float32) * 0.01
    g1 = jnp.ones((1, 2 * H), jnp.float32)                        # LayerNorm(2H) affine
    be1 = jnp.zeros((1, 2 * H), jnp.float32)
    w2 = jax.random.normal(k3, (2 * H, H), jnp.float32) * 0.1     # Linear(2H, H)
    b2 = jax.random.normal(k4, (1, H), jnp.float32) * 0.01
    go = jnp.ones((1, H), jnp.float32)                            # outer LayerNorm(H) affine
    bo = jnp.zeros((1, H), jnp.float32)
    return (w1, b1, g1, be1, w2, b2, go, bo)


if __name__ == "__main__":
    N = 256           # number of graph nodes (padded / tiled internally)
    H = 32            # hidden_dim
    dropout_rate = 0.25

    key = jax.random.PRNGKey(0)
    kx, kmask = jax.random.split(key, 2)

    # node features
    x = jax.random.normal(kx, (N, H), jnp.float32)

    # deterministic bidirectional ring graph: edge_index shape (2, 2N)
    idx = jnp.arange(N)
    src = jnp.concatenate([idx, (idx + 1) % N])
    dst = jnp.concatenate([(idx + 1) % N, idx])
    edge_index = jnp.stack([src, dst])                            # (2, E)

    # drop-node mask: bernoulli(1 - dropout_rate) over the feature dimension
    mask = jax.random.bernoulli(kmask, 1.0 - dropout_rate, (1, H)).astype(jnp.float32)

    # learnable softmax temperature t (init 1.0, learn_t=True)
    t = jnp.ones((1, 1), jnp.float32)

    params = make_params(jax.random.PRNGKey(42), H)

    out = patchgcn_forward(x, edge_index, mask, t, params)
    jax.block_until_ready(out)
    assert out.shape == (N, H)
    assert bool(jnp.all(jnp.isfinite(out)))

    # correctness vs pure-JAX f32 reference (bf16 aggregation + approx recip tolerance)
    ref = patchgcn_ref(x, edge_index, mask, t, params)
    max_err = float(jnp.max(jnp.abs(out - ref)))
    assert max_err < 0.1, f"max abs err vs reference: {max_err}"

    print("KERNEL_OK")
</pallas_src>

<mosaic_0001>
module attributes {stable_mosaic.version = 11 : i64} {
  func.func @kernel(%arg0: i32, %arg1: i32, %arg2: memref<1xi32, #tpu.memory_space<smem>>, %arg3: memref<1x1xf32, #tpu.memory_space<smem>>, %arg4: memref<1x128xf32, #tpu.memory_space<vmem>>, %arg5: memref<256x256xbf16, #tpu.memory_space<vmem>>, %arg6: memref<256x128xf32, #tpu.memory_space<vmem>>, %arg7: memref<256x128xf32, #tpu.memory_space<vmem>>, %arg8: memref<128x128xf32, #tpu.memory_space<vmem>>, %arg9: memref<1x128xf32, #tpu.memory_space<vmem>>, %arg10: memref<1x128xf32, #tpu.memory_space<vmem>>, %arg11: memref<1x128xf32, #tpu.memory_space<vmem>>, %arg12: memref<128x128xf32, #tpu.memory_space<vmem>>, %arg13: memref<1x128xf32, #tpu.memory_space<vmem>>, %arg14: memref<1x128xf32, #tpu.memory_space<vmem>>, %arg15: memref<1x128xf32, #tpu.memory_space<vmem>>, %arg16: memref<256x128xf32, #tpu.memory_space<vmem>>, %arg17: memref<256x256xf32, #tpu.memory_space<vmem>>, %arg18: memref<1x128xf32, #tpu.memory_space<vmem>>) attributes {dimension_semantics = [#tpu.dimension_semantics<parallel>, #tpu.dimension_semantics<arbitrary>], iteration_bounds = array<i64: 1, 1>, scalar_prefetch = 1 : i64, scratch_operands = 2 : i64, tpu.core_type = #tpu.core_type<tc>, window_params = [{transform_indices = @transform_0, window_bounds = array<i64: 1, 1>}, {pipeline_mode = #tpu.pipeline_mode<synchronous>, transform_indices = @transform_1, window_bounds = array<i64: 1, 128>}, {transform_indices = @transform_2, window_bounds = array<i64: 256, 256>}, {transform_indices = @transform_3, window_bounds = array<i64: 256, 128>}, {transform_indices = @transform_4, window_bounds = array<i64: 256, 128>}, {pipeline_mode = #tpu.pipeline_mode<synchronous>, transform_indices = @transform_5, window_bounds = array<i64: 128, 128>}, {pipeline_mode = #tpu.pipeline_mode<synchronous>, transform_indices = @transform_6, window_bounds = array<i64: 1, 128>}, {pipeline_mode = #tpu.pipeline_mode<synchronous>, transform_indices = @transform_7, window_bounds = array<i64: 1, 128>}, {pipeline_mode = #tpu.pipeline_mode<synchronous>, transform_indices = @transform_8, window_bounds = array<i64: 1, 128>}, {pipeline_mode = #tpu.pipeline_mode<synchronous>, transform_indices = @transform_9, window_bounds = array<i64: 128, 128>}, {pipeline_mode = #tpu.pipeline_mode<synchronous>, transform_indices = @transform_10, window_bounds = array<i64: 1, 128>}, {pipeline_mode = #tpu.pipeline_mode<synchronous>, transform_indices = @transform_11, window_bounds = array<i64: 1, 128>}, {pipeline_mode = #tpu.pipeline_mode<synchronous>, transform_indices = @transform_12, window_bounds = array<i64: 1, 128>}, {transform_indices = @transform_13, window_bounds = array<i64: 256, 128>}]} {
    %c0_i32 = arith.constant 0 : i32
    %0 = arith.cmpi eq, %arg1, %c0_i32 : i32
    %1 = arith.extui %0 : i1 to i32
    %c0_i32_0 = arith.constant 0 : i32
    %2 = arith.cmpi ne, %1, %c0_i32_0 : i32
    scf.if %2 {
      %cst = arith.constant 0.000000e+00 : f32
      %13 = vector.broadcast %cst : f32 to vector<256x256xf32>
      %c0 = arith.constant 0 : index
      %c0_5 = arith.constant 0 : index
      %14 = vector.load %arg17[%c0, %c0_5] : memref<256x256xf32, #tpu.memory_space<vmem>>, vector<256x256xf32>
      tpu.vector_store %arg17[%c0, %c0_5], %13 {strides = array<i32>} : memref<256x256xf32, #tpu.memory_space<vmem>>, vector<256x256xf32>,
      %cst_6 = arith.constant -1.000000e+30 : f32
      %15 = vector.broadcast %cst_6 : f32 to vector<1x128xf32>
      %c0_7 = arith.constant 0 : index
      %c0_8 = arith.constant 0 : index
      %16 = vector.load %arg18[%c0_7, %c0_8] : memref<1x128xf32, #tpu.memory_space<vmem>>, vector<1x128xf32>
      tpu.vector_store %arg18[%c0_7, %c0_8], %15 {strides = array<i32>} : memref<1x128xf32, #tpu.memory_space<vmem>>, vector<1x128xf32>,
    } else {
    }
    %c1_i32 = arith.constant 1 : i32
    %3 = arith.muli %arg0, %c1_i32 : i32
    %4 = arith.addi %3, %arg1 : i32
    %5 = arith.index_cast %4 : i32 to index
    %6 = memref.load %arg2[%5] : memref<1xi32, #tpu.memory_space<smem>>
    %c0_i32_1 = arith.constant 0 : i32
    %7 = arith.cmpi sgt, %6, %c0_i32_1 : i32
    %8 = arith.extui %7 : i1 to i32
    %c0_i32_2 = arith.constant 0 : i32
    %9 = arith.cmpi ne, %8, %c0_i32_2 : i32
    scf.if %9 {
      %c0 = arith.constant 0 : index
      %c0_5 = arith.constant 0 : index
      %13 = memref.load %arg3[%c0, %c0_5] : memref<1x1xf32, #tpu.memory_space<smem>>
      %c0_6 = arith.constant 0 : index
      %c0_7 = arith.constant 0 : index
      %14 = vector.load %arg4[%c0_6, %c0_7] : memref<1x128xf32, #tpu.memory_space<vmem>>, vector<1x128xf32>
      %c0_8 = arith.constant 0 : index
      %c0_9 = arith.constant 0 : index
      %15 = vector.load %arg6[%c0_8, %c0_9] : memref<256x128xf32, #tpu.memory_space<vmem>>, vector<256x128xf32>
      %16 = vector.broadcast %14 : vector<1x128xf32> to vector<256x128xf32>
      %17 = arith.mulf %15, %16 : vector<256x128xf32>
      %cst = arith.constant 0.000000e+00 : f32
      %18 = vector.broadcast %cst : f32 to vector<256x128xf32>
      %19 = arith.maximumf %17, %18 : vector<256x128xf32>
      %cst_10 = arith.constant 1.000000e-07 : f32
      %20 = vector.broadcast %cst_10 : f32 to vector<256x128xf32>
      %21 = arith.addf %19, %20 : vector<256x128xf32>
      %22 = vector.broadcast %13 : f32 to vector<256x128xf32>
      %23 = arith.mulf %22, %21 : vector<256x128xf32>
      %c0_11 = arith.constant 0 : index
      %c0_12 = arith.constant 0 : index
      %24 = vector.load %arg18[%c0_11, %c0_12] : memref<1x128xf32, #tpu.memory_space<vmem>>, vector<1x128xf32>
      %cst_13 = arith.constant dense<0xFF800000> : vector<128xf32>
      %25 = vector.multi_reduction <maximumf>, %23, %cst_13 [0] : vector<256x128xf32> to vector<128xf32>
      %26 = vector.shape_cast %25 : vector<128xf32> to vector<1x128xf32>
      %27 = arith.maximumf %24, %26 : vector<1x128xf32>
      %28 = arith.subf %24, %27 : vector<1x128xf32>
      %29 = math.exp %28 : vector<1x128xf32>
      %c0_14 = arith.constant 0 : index
      %c0_15 = arith.constant 0 : index
      %30 = vector.load %arg18[%c0_14, %c0_15] : memref<1x128xf32, #tpu.memory_space<vmem>>, vector<1x128xf32>
      tpu.vector_store %arg18[%c0_14, %c0_15], %27 {strides = array<i32>} : memref<1x128xf32, #tpu.memory_space<vmem>>, vector<1x128xf32>,
      %31 = vector.broadcast %27 : vector<1x128xf32> to vector<256x128xf32>
      %32 = arith.subf %23, %31 : vector<256x128xf32>
      %33 = math.exp %32 : vector<256x128xf32>
      %34 = arith.mulf %33, %21 : vector<256x128xf32>
      %35 = tpu.concatenate %34, %33 in 1 : vector<256x128xf32>, vector<256x128xf32> -> vector<256x256xf32>
      %36 = arith.truncf %35 : vector<256x256xf32> to vector<256x256xbf16>
      %c0_16 = arith.constant 0 : index
      %c0_17 = arith.constant 0 : index
      %37 = vector.load %arg17[%c0_16, %c0_17] : memref<256x256xf32, #tpu.memory_space<vmem>>, vector<256x256xf32>
      %38 = tpu.concatenate %29, %29 in 1 : vector<1x128xf32>, vector<1x128xf32> -> vector<1x256xf32>
      %39 = vector.broadcast %38 : vector<1x256xf32> to vector<256x256xf32>
      %40 = arith.mulf %37, %39 : vector<256x256xf32>
      %c0_18 = arith.constant 0 : index
      %c0_19 = arith.constant 0 : index
      %41 = vector.load %arg5[%c0_18, %c0_19] : memref<256x256xbf16, #tpu.memory_space<vmem>>, vector<256x256xbf16>
      %cst_20 = arith.constant dense<0.000000e+00> : vector<256x256xf32>
      %42 = tpu.matmul %41, %36, %cst_20 {dimension_numbers = #tpu.dot_dimension_numbers<[1], [0], [0], [1], [0, 0, 1, 1], [], []>} : vector<256x256xbf16>, vector<256x256xbf16>, vector<256x256xf32> -> vector<256x256xf32>
      %43 = arith.addf %40, %42 : vector<256x256xf32>
      %c0_21 = arith.constant 0 : index
      %c0_22 = arith.constant 0 : index
      %44 = vector.load %arg17[%c0_21, %c0_22] : memref<256x256xf32, #tpu.memory_space<vmem>>, vector<256x256xf32>
      tpu.vector_store %arg17[%c0_21, %c0_22], %43 {strides = array<i32>} : memref<256x256xf32, #tpu.memory_space<vmem>>, vector<256x256xf32>,
    } else {
    }
    %c0_i32_3 = arith.constant 0 : i32
    %10 = arith.cmpi eq, %arg1, %c0_i32_3 : i32
    %11 = arith.extui %10 : i1 to i32
    %c0_i32_4 = arith.constant 0 : i32
    %12 = arith.cmpi ne, %11, %c0_i32_4 : i32
    scf.if %12 {
      %c0 = arith.constant 0 : index
      %c0_5 = arith.constant 0 : index
      %13 = vector.load %arg4[%c0, %c0_5] : memref<1x128xf32, #tpu.memory_space<vmem>>, vector<1x128xf32>
      %c0_6 = arith.constant 0 : index
      %c0_7 = arith.constant 0 : index
      %14 = vector.load %arg17[%c0_6, %c0_7] : memref<256x256xf32, #tpu.memory_space<vmem>>, vector<256x128xf32>
      %c0_8 = arith.constant 0 : index
      %c128 = arith.constant 128 : index
      %15 = vector.load %arg17[%c0_8, %c128] : memref<256x256xf32, #tpu.memory_space<vmem>>, vector<256x128xf32>
      %cst = arith.constant 0.000000e+00 : f32
      %16 = vector.broadcast %cst : f32 to vector<256x128xf32>
      %17 = arith.cmpf ogt, %15, %16 : vector<256x128xf32>
      %cst_9 = arith.constant 1.000000e+00 : f32
      %18 = vector.broadcast %cst_9 : f32 to vector<256x128xf32>
      %19 = arith.select %17, %15, %18 : vector<256x128xi1>, vector<256x128xf32>
      %20 = tpu.reciprocal %19 {approx = true} : vector<256x128xf32> -> vector<256x128xf32>
      %21 = arith.mulf %14, %20 : vector<256x128xf32>
      %cst_10 = arith.constant 0.000000e+00 : f32
      %22 = vector.broadcast %cst_10 : f32 to vector<256x128xf32>
      %23 = arith.select %17, %21, %22 : vector<256x128xi1>, vector<256x128xf32>
      %c0_11 = arith.constant 0 : index
      %c0_12 = arith.constant 0 : index
      %24 = vector.load %arg7[%c0_11, %c0_12] : memref<256x128xf32, #tpu.memory_space<vmem>>, vector<256x128xf32>
      %25 = vector.broadcast %13 : vector<1x128xf32> to vector<256x128xf32>
      %26 = arith.mulf %24, %25 : vector<256x128xf32>
      %27 = arith.addf %23, %26 : vector<256x128xf32>
      %c0_13 = arith.constant 0 : index
      %c0_14 = arith.constant 0 : index
      %28 = vector.load %arg8[%c0_13, %c0_14] : memref<128x128xf32, #tpu.memory_space<vmem>>, vector<128x128xf32>
      %cst_15 = arith.constant dense<0.000000e+00> : vector<256x128xf32>
      %29 = tpu.matmul %27, %28, %cst_15 {dimension_numbers = #tpu.dot_dimension_numbers<[1], [0], [0], [1], [0, 0, 1, 1], [], []>} : vector<256x128xf32>, vector<128x128xf32>, vector<256x128xf32> -> vector<256x128xf32>
      %c0_16 = arith.constant 0 : index
      %c0_17 = arith.constant 0 : index
      %30 = vector.load %arg9[%c0_16, %c0_17] : memref<1x128xf32, #tpu.memory_space<vmem>>, vector<1x128xf32>
      %31 = vector.broadcast %30 : vector<1x128xf32> to vector<256x128xf32>
      %32 = arith.addf %29, %31 : vector<256x128xf32>
      %33 = tpu.iota {dimensions = array<i32: 1>} : vector<1x128xi32>
      %c64_i32 = arith.constant 64 : i32
      %34 = vector.broadcast %c64_i32 : i32 to vector<1x128xi32>
      %35 = arith.cmpi slt, %33, %34 : vector<1x128xi32>
      %36 = arith.extui %35 : vector<1x128xi1> to vector<1x128xi32>
      %37 = arith.sitofp %36 : vector<1x128xi32> to vector<1x128xf32>
      %cst_18 = arith.constant dense<0.000000e+00> : vector<256xf32>
      %38 = vector.multi_reduction <add>, %32, %cst_18 [1] : vector<256x128xf32> to vector<256xf32>
      %39 = vector.shape_cast %38 : vector<256xf32> to vector<256x1xf32>
      %cst_19 = arith.constant 1.562500e-02 : f32
      %40 = vector.broadcast %cst_19 : f32 to vector<256x1xf32>
      %41 = arith.mulf %39, %40 : vector<256x1xf32>
      %42 = vector.broadcast %41 : vector<256x1xf32> to vector<256x128xf32>
      %43 = arith.subf %32, %42 : vector<256x128xf32>
      %44 = vector.broadcast %37 : vector<1x128xf32> to vector<256x128xf32>
      %45 = arith.mulf %43, %44 : vector<256x128xf32>
      %46 = arith.mulf %45, %45 : vector<256x128xf32>
      %cst_20 = arith.constant dense<0.000000e+00> : vector<256xf32>
      %47 = vector.multi_reduction <add>, %46, %cst_20 [1] : vector<256x128xf32> to vector<256xf32>
      %48 = vector.shape_cast %47 : vector<256xf32> to vector<256x1xf32>
      %cst_21 = arith.constant 1.562500e-02 : f32
      %49 = vector.broadcast %cst_21 : f32 to vector<256x1xf32>
      %50 = arith.mulf %48, %49 : vector<256x1xf32>
      %cst_22 = arith.constant 9.99999974E-6 : f32
      %51 = vector.broadcast %cst_22 : f32 to vector<256x1xf32>
      %52 = arith.addf %50, %51 : vector<256x1xf32>
      %53 = math.rsqrt %52 : vector<256x1xf32>
      %54 = vector.broadcast %53 : vector<256x1xf32> to vector<256x128xf32>
      %55 = arith.mulf %45, %54 : vector<256x128xf32>
      %c0_23 = arith.constant 0 : index
      %c0_24 = arith.constant 0 : index
      %56 = vector.load %arg10[%c0_23, %c0_24] : memref<1x128xf32, #tpu.memory_space<vmem>>, vector<1x128xf32>
      %57 = vector.broadcast %56 : vector<1x128xf32> to vector<256x128xf32>
      %58 = arith.mulf %55, %57 : vector<256x128xf32>
      %c0_25 = arith.constant 0 : index
      %c0_26 = arith.constant 0 : index
      %59 = vector.load %arg11[%c0_25, %c0_26] : memref<1x128xf32, #tpu.memory_space<vmem>>, vector<1x128xf32>
      %60 = vector.broadcast %59 : vector<1x128xf32> to vector<256x128xf32>
      %61 = arith.addf %58, %60 : vector<256x128xf32>
      %cst_27 = arith.constant 0.000000e+00 : f32
      %62 = vector.broadcast %cst_27 : f32 to vector<256x128xf32>
      %63 = arith.maximumf %61, %62 : vector<256x128xf32>
      %c0_28 = arith.constant 0 : index
      %c0_29 = arith.constant 0 : index
      %64 = vector.load %arg12[%c0_28, %c0_29] : memref<128x128xf32, #tpu.memory_space<vmem>>, vector<128x128xf32>
      %cst_30 = arith.constant dense<0.000000e+00> : vector<256x128xf32>
      %65 = tpu.matmul %63, %64, %cst_30 {dimension_numbers = #tpu.dot_dimension_numbers<[1], [0], [0], [1], [0, 0, 1, 1], [], []>} : vector<256x128xf32>, vector<128x128xf32>, vector<256x128xf32> -> vector<256x128xf32>
      %c0_31 = arith.constant 0 : index
      %c0_32 = arith.constant 0 : index
      %66 = vector.load %arg13[%c0_31, %c0_32] : memref<1x128xf32, #tpu.memory_space<vmem>>, vector<1x128xf32>
      %67 = vector.broadcast %66 : vector<1x128xf32> to vector<256x128xf32>
      %68 = arith.addf %65, %67 : vector<256x128xf32>
      %69 = tpu.iota {dimensions = array<i32: 1>} : vector<1x128xi32>
      %c32_i32 = arith.constant 32 : i32
      %70 = vector.broadcast %c32_i32 : i32 to vector<1x128xi32>
      %71 = arith.cmpi slt, %69, %70 : vector<1x128xi32>
      %72 = arith.extui %71 : vector<1x128xi1> to vector<1x128xi32>
      %73 = arith.sitofp %72 : vector<1x128xi32> to vector<1x128xf32>
      %cst_33 = arith.constant dense<0.000000e+00> : vector<256xf32>
      %74 = vector.multi_reduction <add>, %68, %cst_33 [1] : vector<256x128xf32> to vector<256xf32>
      %75 = vector.shape_cast %74 : vector<256xf32> to vector<256x1xf32>
      %cst_34 = arith.constant 3.125000e-02 : f32
      %76 = vector.broadcast %cst_34 : f32 to vector<256x1xf32>
      %77 = arith.mulf %75, %76 : vector<256x1xf32>
      %78 = vector.broadcast %77 : vector<256x1xf32> to vector<256x128xf32>
      %79 = arith.subf %68, %78 : vector<256x128xf32>
      %80 = vector.broadcast %73 : vector<1x128xf32> to vector<256x128xf32>
      %81 = arith.mulf %79, %80 : vector<256x128xf32>
      %82 = arith.mulf %81, %81 : vector<256x128xf32>
      %cst_35 = arith.constant dense<0.000000e+00> : vector<256xf32>
      %83 = vector.multi_reduction <add>, %82, %cst_35 [1] : vector<256x128xf32> to vector<256xf32>
      %84 = vector.shape_cast %83 : vector<256xf32> to vector<256x1xf32>
      %cst_36 = arith.constant 3.125000e-02 : f32
      %85 = vector.broadcast %cst_36 : f32 to vector<256x1xf32>
      %86 = arith.mulf %84, %85 : vector<256x1xf32>
      %cst_37 = arith.constant 9.99999974E-6 : f32
      %87 = vector.broadcast %cst_37 : f32 to vector<256x1xf32>
      %88 = arith.addf %86, %87 : vector<256x1xf32>
      %89 = math.rsqrt %88 : vector<256x1xf32>
      %90 = vector.broadcast %89 : vector<256x1xf32> to vector<256x128xf32>
      %91 = arith.mulf %81, %90 : vector<256x128xf32>
      %c0_38 = arith.constant 0 : index
      %c0_39 = arith.constant 0 : index
      %92 = vector.load %arg14[%c0_38, %c0_39] : memref<1x128xf32, #tpu.memory_space<vmem>>, vector<1x128xf32>
      %93 = vector.broadcast %92 : vector<1x128xf32> to vector<256x128xf32>
      %94 = arith.mulf %91, %93 : vector<256x128xf32>
      %c0_40 = arith.constant 0 : index
      %c0_41 = arith.constant 0 : index
      %95 = vector.load %arg15[%c0_40, %c0_41] : memref<1x128xf32, #tpu.memory_space<vmem>>, vector<1x128xf32>
      %96 = vector.broadcast %95 : vector<1x128xf32> to vector<256x128xf32>
      %97 = arith.addf %94, %96 : vector<256x128xf32>
      %cst_42 = arith.constant 0.000000e+00 : f32
      %98 = vector.broadcast %cst_42 : f32 to vector<256x128xf32>
      %99 = arith.maximumf %97, %98 : vector<256x128xf32>
      %100 = arith.addf %26, %99 : vector<256x128xf32>
      %c0_43 = arith.constant 0 : index
      %c0_44 = arith.constant 0 : index
      %101 = vector.load %arg16[%c0_43, %c0_44] : memref<256x128xf32, #tpu.memory_space<vmem>>, vector<256x128xf32>
      tpu.vector_store %arg16[%c0_43, %c0_44], %100 {strides = array<i32>} : memref<256x128xf32, #tpu.memory_space<vmem>>, vector<256x128xf32>,
    } else {
    }
    return
  }
  func.func @transform_0(%arg0: i32, %arg1: i32, %arg2: memref<1xi32, #tpu.memory_space<smem>>) -> (i32, i32) {
    %c0_i32 = arith.constant 0 : i32
    %c0_i32_0 = arith.constant 0 : i32
    %c0_i32_1 = arith.constant 0 : i32
    return %c0_i32, %c0_i32_0 : i32, i32
  }
  func.func @transform_1(%arg0: i32, %arg1: i32, %arg2: memref<1xi32, #tpu.memory_space<smem>>) -> (i32, i32) {
    %c0_i32 = arith.constant 0 : i32
    %c0_i32_0 = arith.constant 0 : i32
    %c0_i32_1 = arith.constant 0 : i32
    return %c0_i32, %c0_i32_0 : i32, i32
  }
  func.func @transform_2(%arg0: i32, %arg1: i32, %arg2: memref<1xi32, #tpu.memory_space<smem>>) -> (i32, i32) {
    %c0_i32 = arith.constant 0 : i32
    return %arg0, %arg1 : i32, i32
  }
  func.func @transform_3(%arg0: i32, %arg1: i32, %arg2: memref<1xi32, #tpu.memory_space<smem>>) -> (i32, i32) {
    %c0_i32 = arith.constant 0 : i32
    %c0_i32_0 = arith.constant 0 : i32
    return %arg1, %c0_i32 : i32, i32
  }
  func.func @transform_4(%arg0: i32, %arg1: i32, %arg2: memref<1xi32, #tpu.memory_space<smem>>) -> (i32, i32) {
    %c0_i32 = arith.constant 0 : i32
    %c0_i32_0 = arith.constant 0 : i32
    return %arg0, %c0_i32 : i32, i32
  }
  func.func @transform_5(%arg0: i32, %arg1: i32, %arg2: memref<1xi32, #tpu.memory_space<smem>>) -> (i32, i32) {
    %c0_i32 = arith.constant 0 : i32
    %c0_i32_0 = arith.constant 0 : i32
    %c0_i32_1 = arith.constant 0 : i32
    return %c0_i32, %c0_i32_0 : i32, i32
  }
  func.func @transform_6(%arg0: i32, %arg1: i32, %arg2: memref<1xi32, #tpu.memory_space<smem>>) -> (i32, i32) {
    %c0_i32 = arith.constant 0 : i32
    %c0_i32_0 = arith.constant 0 : i32
    %c0_i32_1 = arith.constant 0 : i32
    return %c0_i32, %c0_i32_0 : i32, i32
  }
  func.func @transform_7(%arg0: i32, %arg1: i32, %arg2: memref<1xi32, #tpu.memory_space<smem>>) -> (i32, i32) {
    %c0_i32 = arith.constant 0 : i32
    %c0_i32_0 = arith.constant 0 : i32
    %c0_i32_1 = arith.constant 0 : i32
    return %c0_i32, %c0_i32_0 : i32, i32
  }
  func.func @transform_8(%arg0: i32, %arg1: i32, %arg2: memref<1xi32, #tpu.memory_space<smem>>) -> (i32, i32) {
    %c0_i32 = arith.constant 0 : i32
    %c0_i32_0 = arith.constant 0 : i32
    %c0_i32_1 = arith.constant 0 : i32
    return %c0_i32, %c0_i32_0 : i32, i32
  }
  func.func @transform_9(%arg0: i32, %arg1: i32, %arg2: memref<1xi32, #tpu.memory_space<smem>>) -> (i32, i32) {
    %c0_i32 = arith.constant 0 : i32
    %c0_i32_0 = arith.constant 0 : i32
    %c0_i32_1 = arith.constant 0 : i32
    return %c0_i32, %c0_i32_0 : i32, i32
  }
  func.func @transform_10(%arg0: i32, %arg1: i32, %arg2: memref<1xi32, #tpu.memory_space<smem>>) -> (i32, i32) {
    %c0_i32 = arith.constant 0 : i32
    %c0_i32_0 = arith.constant 0 : i32
    %c0_i32_1 = arith.constant 0 : i32
    return %c0_i32, %c0_i32_0 : i32, i32
  }
  func.func @transform_11(%arg0: i32, %arg1: i32, %arg2: memref<1xi32, #tpu.memory_space<smem>>) -> (i32, i32) {
    %c0_i32 = arith.constant 0 : i32
    %c0_i32_0 = arith.constant 0 : i32
    %c0_i32_1 = arith.constant 0 : i32
    return %c0_i32, %c0_i32_0 : i32, i32
  }
  func.func @transform_12(%arg0: i32, %arg1: i32, %arg2: memref<1xi32, #tpu.memory_space<smem>>) -> (i32, i32) {
    %c0_i32 = arith.constant 0 : i32
    %c0_i32_0 = arith.constant 0 : i32
    %c0_i32_1 = arith.constant 0 : i32
    return %c0_i32, %c0_i32_0 : i32, i32
  }
  func.func @transform_13(%arg0: i32, %arg1: i32, %arg2: memref<1xi32, #tpu.memory_space<smem>>) -> (i32, i32) {
    %c0_i32 = arith.constant 0 : i32
    %c0_i32_0 = arith.constant 0 : i32
    return %arg0, %c0_i32 : i32, i32
  }
}

</mosaic_0001>

<bundles_post_ra>
// kernel: tpu_custom_call.1
= control target key start
LH: loop header
LB: loop body
LE: loop exit
PB: predicated region body
PF: predicated region fallthrough
CT: control target
= control target key end

     0   :  { %s6096_s0 = inlined_call_operand.<no memory space> [shape: s32[1], index: 0, kind: input, shape index: {}]   ;;  %s6097_s1 = inlined_call_operand.<no memory space> [shape: f32[1,1], index: 1, kind: input, shape index: {}]   ;;  %s6098_s2 = inlined_call_operand.vmem [shape: f32[1,128], index: 2, kind: input, shape index: {}]   ;;  %s6099_s3 = inlined_call_operand.hbm [shape: bf16[256,256], index: 3, kind: input, shape index: {}]   ;;  %s6100_s4 = inlined_call_operand.hbm [shape: f32[256,128], index: 4, kind: input, shape index: {}]   ;;  %s6101_s5 = inlined_call_operand.hbm [shape: f32[256,128], index: 5, kind: input, shape index: {}]   ;;  %s6102_s6 = inlined_call_operand.hbm [shape: f32[128,128], index: 6, kind: input, shape index: {}]   ;;  %s6103_s7 = inlined_call_operand.vmem [shape: f32[1,128], index: 7, kind: input, shape index: {}]   ;;  %s6104_s8 = inlined_call_operand.vmem [shape: f32[1,128], index: 8, kind: input, shape index: {}]   ;;  %s6105_s9 = inlined_call_operand.vmem [shape: f32[1,128], index: 9, kind: input, shape index: {}]   ;;  %s6106_s10 = inlined_call_operand.hbm [shape: f32[128,128], index: 10, kind: input, shape index: {}]   ;;  %s6107_s11 = inlined_call_operand.vmem [shape: f32[1,128], index: 11, kind: input, shape index: {}]   ;;  %s6108_s12 = inlined_call_operand.vmem [shape: f32[1,128], index: 12, kind: input, shape index: {}]   ;;  %s6109_s13 = inlined_call_operand.vmem [shape: f32[1,128], index: 13, kind: input, shape index: {}]   ;;  %s6110_s14 = inlined_call_operand.hbm [shape: f32[256,128], index: 14, kind: output, shape index: {}]  }
   0x1   :  { %20 = sst [smem:[#allocation6]] %s6097_s1 }
   0x2   :  { %21 = vsyncpa [#allocation8], 0 }
   0x3   :  { %22 = vsyncpa [#allocation11], 0 }
   0x4   :  { %23 = vsyncpa [#allocation14], 0 }
   0x5   :  { %24 = vsyncpa [#allocation9], 0  ;;  %s3970_s15 = smov [#allocation10]   ;;  %s3971_s17 = smov [#allocation13]  }
   0x6   :  { %s46_s16 = sshll.u32 %s3970_s15, 4  ;;  %s70_s18 = sshll.u32 %s3971_s17, 4  ;;  %s47_s16 = int_to_ptr.vmem [resolvable:$true] %s46_s16  ;;  %s4058_s18 = int_to_ptr.vmem [resolvable:$true] %s70_s18 }
   0x7   :  { %s3830_s21 = scalar_lea.hbm %s6100_s4, 4096 }
   0x8   :  { %p3831_p0 = scmp.ne.s32.totalorder %s6100_s4, %s3830_s21  ;;  %p3834_p1 = scmp.lt.u32.totalorder %s3830_s21, %s6100_s4 }
   0xa   :  { %p3836_p2 = pnand %p3834_p1, %p3831_p0 }
   0xc   :  { %3839 = shalt.err (!%p3836_p2)
}
   0xd   :  { %s3840_s25 = scalar_lea.vmem %s47_s16, 4096  ;;  %p3845_p4 = scmp.lt.s32.totalorder %s47_s16, %s47_s16 }
   0xe   :  { %p3841_p3 = scmp.ne.s32.totalorder %s47_s16, %s3840_s25  ;;  %p3846_p5 = scmp.lt.s32.totalorder %s3840_s25, %s3840_s25 }
  0x10   :  { %p3847_p6 = por %p3846_p5, %p3845_p4 }
  0x12   :  { %p3848_p7 = pnand %p3847_p6, %p3841_p3 }
  0x14   :  { %3851 = shalt.err (!%p3848_p7)
}
  0x15   :  { %s3972_s26 = smov 128   ;;  %s3973_s27 = smov 8  }
  0x16   :  { %52 = dma.hbm_to_vmem [thread:$0]  %s6100_s4, 4096, %s47_s16, [#allocation11], %s3972_s26, %s3972_s26, %s3973_s27  }
  0x17   :  { %s3852_s17 = scalar_lea.hbm %s6102_s6, 2048 }
  0x18   :  { %p3853_p8 = scmp.ne.s32.totalorder %s6102_s6, %s3852_s17  ;;  %p3856_p9 = scmp.lt.u32.totalorder %s3852_s17, %s6102_s6 }
  0x1a   :  { %p3858_p10 = pnand %p3856_p9, %p3853_p8 }
  0x1c   :  { %3861 = shalt.err (!%p3858_p10)
}
  0x1d   :  { %s3862_s23 = scalar_lea.vmem %s4058_s18, 2048  ;;  %p3867_p12 = scmp.lt.s32.totalorder %s4058_s18, %s4058_s18 }
  0x1e   :  { %p3863_p11 = scmp.ne.s32.totalorder %s4058_s18, %s3862_s23  ;;  %p3868_p13 = scmp.lt.s32.totalorder %s3862_s23, %s3862_s23 }
  0x20   :  { %p3869_p0 = por %p3868_p13, %p3867_p12 }
  0x22   :  { %p3870_p1 = pnand %p3869_p0, %p3863_p11 }
  0x24   :  { %3873 = shalt.err (!%p3870_p1)
}
  0x25   :  { %76 = dma.hbm_to_vmem [thread:$0]  %s6102_s6, 2048, %s4058_s18, [#allocation14], %s3972_s26, %s3972_s26, %s3973_s27  }
  0x26   :  { %s3974_s1 = smov [#allocation7]   ;;  %s3975_s25 = smov [#allocation12]  }
  0x27   :  { %s34_s24 = sshll.u32 %s3974_s1, 4  ;;  %s58_s28 = sshll.u32 %s3975_s25, 4  ;;  %s35_s24 = int_to_ptr.vmem [resolvable:$true] %s34_s24  ;;  %s4095_s28 = int_to_ptr.vmem [resolvable:$true] %s58_s28 }
  0x28   :  { %s3874_s15 = scalar_lea.hbm %s6099_s3, 4096 }
  0x29   :  { %p3875_p2 = scmp.ne.s32.totalorder %s6099_s3, %s3874_s15  ;;  %p3878_p3 = scmp.lt.u32.totalorder %s3874_s15, %s6099_s3 }
  0x2b   :  { %p3880_p4 = pnand %p3878_p3, %p3875_p2 }
  0x2d   :  { %3883 = shalt.err (!%p3880_p4)
}
  0x2e   :  { %s3884_s6 = scalar_lea.vmem %s35_s24, 4096  ;;  %p3889_p6 = scmp.lt.s32.totalorder %s35_s24, %s35_s24 }
  0x2f   :  { %p3885_p5 = scmp.ne.s32.totalorder %s35_s24, %s3884_s6  ;;  %p3890_p7 = scmp.lt.s32.totalorder %s3884_s6, %s3884_s6 }
  0x31   :  { %p3891_p8 = por %p3890_p7, %p3889_p6 }
  0x33   :  { %p3892_p9 = pnand %p3891_p8, %p3885_p5 }
  0x35   :  { %3895 = shalt.err (!%p3892_p9)
}
  0x36   :  { %40 = dma.hbm_to_vmem [thread:$0]  %s6099_s3, 4096, %s35_s24, [#allocation8], %s3972_s26, %s3972_s26, %s3973_s27  }
  0x37   :  { %s3896_s16 = scalar_lea.hbm %s6101_s5, 4096 }
  0x38   :  { %p3897_p10 = scmp.ne.s32.totalorder %s6101_s5, %s3896_s16  ;;  %p3900_p11 = scmp.lt.u32.totalorder %s3896_s16, %s6101_s5 }
  0x3a   :  { %p3902_p12 = pnand %p3900_p11, %p3897_p10 }
  0x3c   :  { %3905 = shalt.err (!%p3902_p12)
}
  0x3d   :  { %s3906_s15 = scalar_lea.vmem %s4095_s28, 4096  ;;  %p3911_p0 = scmp.lt.s32.totalorder %s4095_s28, %s4095_s28 }
  0x3e   :  { %p3907_p13 = scmp.ne.s32.totalorder %s4095_s28, %s3906_s15  ;;  %p3912_p1 = scmp.lt.s32.totalorder %s3906_s15, %s3906_s15 }
  0x40   :  { %p3913_p2 = por %p3912_p1, %p3911_p0 }
  0x42   :  { %p3914_p3 = pnand %p3913_p2, %p3907_p13 }
  0x44   :  { %3917 = shalt.err (!%p3914_p3)
}
  0x45   :  { %64 = dma.hbm_to_vmem [thread:$0]  %s6101_s5, 4096, %s4095_s28, [#allocation11], %s3972_s26, %s3972_s26, %s3973_s27  }
  0x46   :  { %s3976_s17 = smov [#allocation15]   ;;  %s3918_s6 = scalar_lea.hbm %s6106_s10, 2048 }
  0x47   :  { %s88_s19 = sshll.u32 %s3976_s17, 4  ;;  %p3919_p4 = scmp.ne.s32.totalorder %s6106_s10, %s3918_s6  ;;  %s89_s19 = int_to_ptr.vmem [resolvable:$true] %s88_s19 }
  0x48   :  { %p3922_p5 = scmp.lt.u32.totalorder %s3918_s6, %s6106_s10 }
  0x4a   :  { %p3924_p6 = pnand %p3922_p5, %p3919_p4 }
  0x4c   :  { %3927 = shalt.err (!%p3924_p6)
}
  0x4d   :  { %s3928_s16 = scalar_lea.vmem %s89_s19, 2048  ;;  %p3933_p8 = scmp.lt.s32.totalorder %s89_s19, %s89_s19 }
  0x4e   :  { %p3929_p7 = scmp.ne.s32.totalorder %s89_s19, %s3928_s16  ;;  %p3934_p9 = scmp.lt.s32.totalorder %s3928_s16, %s3928_s16 }
  0x50   :  { %p3935_p10 = por %p3934_p9, %p3933_p8 }
  0x52   :  { %p3936_p11 = pnand %p3935_p10, %p3929_p7 }
  0x54   :  { %3939 = shalt.err (!%p3936_p11)
}
  0x55   :  { %94 = dma.hbm_to_vmem [thread:$0]  %s6106_s10, 2048, %s89_s19, [#allocation14], %s3972_s26, %s3972_s26, %s3973_s27  }
  0x56   :  { %3962 = dma.done.wait [#allocation8], 4096  }
  0x57   :  { %3963 = vsyncadd [#allocation8], 4294963200 }
  0x58   :  { %3964 = dma.done.wait [#allocation11], 8192  }
  0x59   :  { %3965 = vsyncadd [#allocation11], 4294959104 }
  0x5a   :  { %3966 = dma.done.wait [#allocation14], 4096  }
  0x5b   :  { %3967 = vsyncadd [#allocation14], 4294963200  ;;  %v6111_v0 = vmov 0.0   ;;  %v3978_v1 = vmov -1e+30   ;;  %p3119_p12 = scmp.le.s32.totalorder %s6096_s0, 0 }
  0x5c   :  { %120 = vst [vmem:[#allocation2] sm:$0xff] %v6111_v0  ;;  %121 = vst [vmem:[#allocation2 + $0x8] sm:$0xff] %v6111_v0 }
  0x5d   :  { %122 = vst [vmem:[#allocation2 + $0x10] sm:$0xff] %v6111_v0  ;;  %123 = vst [vmem:[#allocation2 + $0x18] sm:$0xff] %v6111_v0 }
  0x5e   :  { %124 = vst [vmem:[#allocation2 + $0x20] sm:$0xff] %v6111_v0  ;;  %125 = vst [vmem:[#allocation2 + $0x28] sm:$0xff] %v6111_v0 }
  0x5f   :  { %126 = vst [vmem:[#allocation2 + $0x30] sm:$0xff] %v6111_v0  ;;  %127 = vst [vmem:[#allocation2 + $0x38] sm:$0xff] %v6111_v0 }
  0x60   :  { %128 = vst [vmem:[#allocation2 + $0x40] sm:$0xff] %v6111_v0  ;;  %129 = vst [vmem:[#allocation2 + $0x48] sm:$0xff] %v6111_v0 }
  0x61   :  { %130 = vst [vmem:[#allocation2 + $0x50] sm:$0xff] %v6111_v0  ;;  %131 = vst [vmem:[#allocation2 + $0x58] sm:$0xff] %v6111_v0 }
  0x62   :  { %132 = vst [vmem:[#allocation2 + $0x60] sm:$0xff] %v6111_v0  ;;  %133 = vst [vmem:[#allocation2 + $0x68] sm:$0xff] %v6111_v0 }
  0x63   :  { %134 = vst [vmem:[#allocation2 + $0x70] sm:$0xff] %v6111_v0  ;;  %135 = vst [vmem:[#allocation2 + $0x78] sm:$0xff] %v6111_v0 }
  0x64   :  { %136 = vst [vmem:[#allocation2 + $0x80] sm:$0xff] %v6111_v0  ;;  %137 = vst [vmem:[#allocation2 + $0x88] sm:$0xff] %v6111_v0 }
  0x65   :  { %138 = vst [vmem:[#allocation2 + $0x90] sm:$0xff] %v6111_v0  ;;  %139 = vst [vmem:[#allocation2 + $0x98] sm:$0xff] %v6111_v0 }
  0x66   :  { %140 = vst [vmem:[#allocation2 + $0xa0] sm:$0xff] %v6111_v0  ;;  %141 = vst [vmem:[#allocation2 + $0xa8] sm:$0xff] %v6111_v0 }
  0x67   :  { %142 = vst [vmem:[#allocation2 + $0xb0] sm:$0xff] %v6111_v0  ;;  %143 = vst [vmem:[#allocation2 + $0xb8] sm:$0xff] %v6111_v0 }
  0x68   :  { %144 = vst [vmem:[#allocation2 + $0xc0] sm:$0xff] %v6111_v0  ;;  %145 = vst [vmem:[#allocation2 + $0xc8] sm:$0xff] %v6111_v0 }
  0x69   :  { %146 = vst [vmem:[#allocation2 + $0xd0] sm:$0xff] %v6111_v0  ;;  %147 = vst [vmem:[#allocation2 + $0xd8] sm:$0xff] %v6111_v0 }
  0x6a   :  { %148 = vst [vmem:[#allocation2 + $0xe0] sm:$0xff] %v6111_v0  ;;  %149 = vst [vmem:[#allocation2 + $0xe8] sm:$0xff] %v6111_v0 }
  0x6b   :  { %150 = vst [vmem:[#allocation2 + $0xf0] sm:$0xff] %v6111_v0  ;;  %151 = vst [vmem:[#allocation2 + $0xf8] sm:$0xff] %v6111_v0 }
  0x6c   :  { %152 = vst [vmem:[#allocation2 + $0x100] sm:$0xff] %v6111_v0  ;;  %153 = vst [vmem:[#allocation2 + $0x108] sm:$0xff] %v6111_v0 }
  0x6d   :  { %154 = vst [vmem:[#allocation2 + $0x110] sm:$0xff] %v6111_v0  ;;  %155 = vst [vmem:[#allocation2 + $0x118] sm:$0xff] %v6111_v0 }
  0x6e   :  { %156 = vst [vmem:[#allocation2 + $0x120] sm:$0xff] %v6111_v0  ;;  %157 = vst [vmem:[#allocation2 + $0x128] sm:$0xff] %v6111_v0 }
  0x6f   :  { %158 = vst [vmem:[#allocation2 + $0x130] sm:$0xff] %v6111_v0  ;;  %159 = vst [vmem:[#allocation2 + $0x138] sm:$0xff] %v6111_v0 }
  0x70   :  { %160 = vst [vmem:[#allocation2 + $0x140] sm:$0xff] %v6111_v0  ;;  %161 = vst [vmem:[#allocation2 + $0x148] sm:$0xff] %v6111_v0 }
  0x71   :  { %162 = vst [vmem:[#allocation2 + $0x150] sm:$0xff] %v6111_v0  ;;  %163 = vst [vmem:[#allocation2 + $0x158] sm:$0xff] %v6111_v0 }
  0x72   :  { %164 = vst [vmem:[#allocation2 + $0x160] sm:$0xff] %v6111_v0  ;;  %165 = vst [vmem:[#allocation2 + $0x168] sm:$0xff] %v6111_v0 }
  0x73   :  { %166 = vst [vmem:[#allocation2 + $0x170] sm:$0xff] %v6111_v0  ;;  %167 = vst [vmem:[#allocation2 + $0x178] sm:$0xff] %v6111_v0 }
  0x74   :  { %168 = vst [vmem:[#allocation2 + $0x180] sm:$0xff] %v6111_v0  ;;  %169 = vst [vmem:[#allocation2 + $0x188] sm:$0xff] %v6111_v0 }
  0x75   :  { %170 = vst [vmem:[#allocation2 + $0x190] sm:$0xff] %v6111_v0  ;;  %171 = vst [vmem:[#allocation2 + $0x198] sm:$0xff] %v6111_v0 }
  0x76   :  { %172 = vst [vmem:[#allocation2 + $0x1a0] sm:$0xff] %v6111_v0  ;;  %173 = vst [vmem:[#allocation2 + $0x1a8] sm:$0xff] %v6111_v0  ;;  %190 = sbr.rel (%p3119_p12) target bundleno = 547 (0x223), region = 81 }
  0x77   :  { %174 = vst [vmem:[#allocation2 + $0x1b0] sm:$0xff] %v6111_v0  ;;  %175 = vst [vmem:[#allocation2 + $0x1b8] sm:$0xff] %v6111_v0 }
  0x78   :  { %176 = vst [vmem:[#allocation2 + $0x1c0] sm:$0xff] %v6111_v0  ;;  %177 = vst [vmem:[#allocation2 + $0x1c8] sm:$0xff] %v6111_v0 }
  0x79   :  { %178 = vst [vmem:[#allocation2 + $0x1d0] sm:$0xff] %v6111_v0  ;;  %179 = vst [vmem:[#allocation2 + $0x1d8] sm:$0xff] %v6111_v0 }
  0x7a   :  { %180 = vst [vmem:[#allocation2 + $0x1e0] sm:$0xff] %v6111_v0  ;;  %181 = vst [vmem:[#allocation2 + $0x1e8] sm:$0xff] %v6111_v0 }
  0x7b   :  { %182 = vst [vmem:[#allocation2 + $0x1f0] sm:$0xff] %v6111_v0  ;;  %183 = vst [vmem:[#allocation2 + $0x1f8] sm:$0xff] %v6111_v0 }
  0x7c   :  { %184 = vst [vmem:[#allocation3] sm:$0x1] %v3978_v1 }
  0x7d   :  { %v4217_v2 = vld [vmem:[%s6098_s2] ss:$0 sm:$0xff]  ;;  %v193_v3 = vld [vmem:[#allocation10] sm:$0xff]  ;;  %v194_v4 = vld [vmem:[#allocation10 + $0x8] sm:$0xff]  ;;  %s4314_s0 = sld [smem:[#allocation6]] }
  0x7e   :  { %v195_v5 = vld [vmem:[#allocation10 + $0x10] sm:$0xff]  ;;  %v196_v6 = vld [vmem:[#allocation10 + $0x18] sm:$0xff]  ;;  %v197_v7 = vld [vmem:[#allocation10 + $0x20] sm:$0xff]  ;;  %v4220_v10 = vmul.f32 %v4217_v2, %v193_v3  ;;  %v4223_v14 = vmul.f32 %v4217_v2, %v194_v4 }
  0x7f   :  { %v198_v8 = vld [vmem:[#allocation10 + $0x28] sm:$0xff]  ;;  %v199_v9 = vld [vmem:[#allocation10 + $0x30] sm:$0xff]  ;;  %v200_v11 = vld [vmem:[#allocation10 + $0x38] sm:$0xff]  ;;  %v4226_v18 = vmul.f32 %v4217_v2, %v195_v5  ;;  %v4229_v22 = vmul.f32 %v4217_v2, %v196_v6  ;;  %v4232_v23 = vmul.f32 %v4217_v2, %v197_v7 }
  0x80   :  { %v201_v12 = vld [vmem:[#allocation10 + $0x40] sm:$0xff]  ;;  %v202_v13 = vld [vmem:[#allocation10 + $0x48] sm:$0xff]  ;;  %v203_v15 = vld [vmem:[#allocation10 + $0x50] sm:$0xff]  ;;  %v4235_v27 = vmul.f32 %v4217_v2, %v198_v8  ;;  %v4238_v28 = vmul.f32 %v4217_v2, %v199_v9  ;;  %v4241_v29 = vmul.f32 %v4217_v2, %v200_v11  ;;  %v263_v30 = vmax.f32 %v4220_v10, 0.0 }
  0x81   :  { %v204_v16 = vld [vmem:[#allocation10 + $0x58] sm:$0xff]  ;;  %v205_v17 = vld [vmem:[#allocation10 + $0x60] sm:$0xff]  ;;  %v206_v19 = vld [vmem:[#allocation10 + $0x68] sm:$0xff]  ;;  %v4245_v34 = vmul.f32 %v4217_v2, %v201_v12  ;;  %v4248_v35 = vmul.f32 %v4217_v2, %v202_v13  ;;  %v4251_v36 = vmul.f32 %v4217_v2, %v203_v15  ;;  %v264_v37 = vmax.f32 %v4223_v14, 0.0 }
  0x82   :  { %v207_v20 = vld [vmem:[#allocation10 + $0x70] sm:$0xff]  ;;  %v208_v21 = vld [vmem:[#allocation10 + $0x78] sm:$0xff]  ;;  %v209_v24 = vld [vmem:[#allocation10 + $0x80] sm:$0xff]  ;;  %v4255_v41 = vmul.f32 %v4217_v2, %v204_v16  ;;  %v4258_v42 = vmul.f32 %v4217_v2, %v205_v17  ;;  %v4261_v43 = vmul.f32 %v4217_v2, %v206_v19  ;;  %v265_v44 = vmax.f32 %v4226_v18, 0.0 }
  0x83   :  { %v210_v25 = vld [vmem:[#allocation10 + $0x88] sm:$0xff]  ;;  %v211_v26 = vld [vmem:[#allocation10 + $0x90] sm:$0xff]  ;;  %v212_v31 = vld [vmem:[#allocation10 + $0x98] sm:$0xff]  ;;  %v4265_v48 = vmul.f32 %v4217_v2, %v207_v20  ;;  %v4268_v49 = vmul.f32 %v4217_v2, %v208_v21  ;;  %v4271_v50 = vmul.f32 %v4217_v2, %v209_v24  ;;  %v266_v51 = vmax.f32 %v4229_v22, 0.0 }
  0x84   :  { %v213_v32 = vld [vmem:[#allocation10 + $0xa0] sm:$0xff]  ;;  %v214_v33 = vld [vmem:[#allocation10 + $0xa8] sm:$0xff]  ;;  %v215_v38 = vld [vmem:[#allocation10 + $0xb0] sm:$0xff]  ;;  %v4275_v55 = vmul.f32 %v4217_v2, %v210_v25  ;;  %v4278_v56 = vmul.f32 %v4217_v2, %v211_v26  ;;  %v4281_v57 = vmul.f32 %v4217_v2, %v212_v31  ;;  %v267_v58 = vmax.f32 %v4232_v23, 0.0 }
  0x85   :  { %v216_v39 = vld [vmem:[#allocation10 + $0xb8] sm:$0xff]  ;;  %v217_v40 = vld [vmem:[#allocation10 + $0xc0] sm:$0xff]  ;;  %v218_v45 = vld [vmem:[#allocation10 + $0xc8] sm:$0xff]  ;;  %v4285_v60 = vmul.f32 %v4217_v2, %v213_v32  ;;  %v4288_v61 = vmul.f32 %v4217_v2, %v214_v33  ;;  %v4291_v62 = vmul.f32 %v4217_v2, %v215_v38  ;;  %v268_v63 = vmax.f32 %v4235_v27, 0.0 }
  0x86   :  { %v219_v46 = vld [vmem:[#allocation10 + $0xd0] sm:$0xff]  ;;  %v220_v47 = vld [vmem:[#allocation10 + $0xd8] sm:$0xff]  ;;  %v221_v52 = vld [vmem:[#allocation10 + $0xe0] sm:$0xff]  ;;  %v4295_v1 = vmul.f32 %v4217_v2, %v216_v39  ;;  %v4298_v3 = vmul.f32 %v4217_v2, %v217_v40  ;;  %v4301_v4 = vmul.f32 %v4217_v2, %v218_v45  ;;  %v269_v5 = vmax.f32 %v4238_v28, 0.0 }
  0x87   :  { %v222_v53 = vld [vmem:[#allocation10 + $0xe8] sm:$0xff]  ;;  %v223_v54 = vld [vmem:[#allocation10 + $0xf0] sm:$0xff]  ;;  %v224_v59 = vld [vmem:[#allocation10 + $0xf8] sm:$0xff]  ;;  %v4305_v6 = vmul.f32 %v4217_v2, %v219_v46  ;;  %v4308_v7 = vmul.f32 %v4217_v2, %v220_v47  ;;  %v4311_v8 = vmul.f32 %v4217_v2, %v221_v52  ;;  %v270_v9 = vmax.f32 %v4241_v29, 0.0 }
  0x88   :  { %v4317_v11 = vmul.f32 %v4217_v2, %v222_v53  ;;  %v4320_v12 = vmul.f32 %v4217_v2, %v223_v54  ;;  %v4323_v13 = vmul.f32 %v4217_v2, %v224_v59  ;;  %v271_v15 = vmax.f32 %v4245_v34, 0.0 }
  0x89   :  { %v272_v16 = vmax.f32 %v4248_v35, 0.0  ;;  %v273_v17 = vmax.f32 %v4251_v36, 0.0  ;;  %v274_v18 = vmax.f32 %v4255_v41, 0.0  ;;  %v275_v19 = vmax.f32 %v4258_v42, 0.0 }
  0x8a   :  { %v276_v20 = vmax.f32 %v4261_v43, 0.0  ;;  %v277_v21 = vmax.f32 %v4265_v48, 0.0  ;;  %v278_v22 = vmax.f32 %v4268_v49, 0.0  ;;  %v279_v23 = vmax.f32 %v4271_v50, 0.0 }
  0x8b   :  { %v280_v2 = vmax.f32 %v4275_v55, 0.0  ;;  %v281_v24 = vmax.f32 %v4278_v56, 0.0  ;;  %v282_v25 = vmax.f32 %v4281_v57, 0.0  ;;  %v283_v26 = vmax.f32 %v4285_v60, 0.0 }
  0x8c   :  { %v284_v27 = vmax.f32 %v4288_v61, 0.0  ;;  %v285_v28 = vmax.f32 %v4291_v62, 0.0  ;;  %v286_v29 = vmax.f32 %v4295_v1, 0.0  ;;  %v287_v31 = vmax.f32 %v4298_v3, 0.0 }
  0x8d   :  { %v288_v32 = vmax.f32 %v4301_v4, 0.0  ;;  %v289_v33 = vmax.f32 %v4305_v6, 0.0  ;;  %v290_v34 = vmax.f32 %v4308_v7, 0.0  ;;  %v291_v35 = vmax.f32 %v4311_v8, 0.0  ;;  %v3526_v4 = vld [vmem:[#allocation7 + $0x4] ss:$8 sps:$4 sm:$0xff]  }
  0x8e   :  { %v292_v36 = vmax.f32 %v4317_v11, 0.0  ;;  %v293_v38 = vmax.f32 %v4320_v12, 0.0  ;;  %v294_v39 = vmax.f32 %v4323_v13, 0.0  ;;  %v4351_v40 = vadd.f32 1e-07, %v263_v30  ;;  %925 = vmatprep.mubr.bf16.mxu0 %v3526_v4 }
  0x8f   :  { %v4355_v41 = vadd.f32 1e-07, %v264_v37  ;;  %v4357_v42 = vadd.f32 1e-07, %v265_v44  ;;  %v4359_v43 = vadd.f32 1e-07, %v266_v51  ;;  %v4368_v48 = vstv %s4314_s0 }
  0x90   :  { %v4361_v45 = vadd.f32 1e-07, %v267_v58  ;;  %v4363_v46 = vadd.f32 1e-07, %v268_v63  ;;  %v4365_v47 = vadd.f32 1e-07, %v269_v5  ;;  %v4390_v53 = vmul.f32 %v4368_v48, %v4351_v40 }
  0x91   :  { %v4370_v49 = vadd.f32 1e-07, %v270_v9  ;;  %v4372_v10 = vadd.f32 1e-07, %v271_v15  ;;  %v4374_v30 = vadd.f32 1e-07, %v272_v16  ;;  %v4400_v57 = vmul.f32 %v4368_v48, %v4355_v41 }
  0x92   :  { %v4376_v14 = vadd.f32 1e-07, %v273_v17  ;;  %v4378_v37 = vadd.f32 1e-07, %v274_v18  ;;  %v4380_v44 = vadd.f32 1e-07, %v275_v19  ;;  %v4410_v61 = vmul.f32 %v4368_v48, %v4357_v42 }
  0x93   :  { %v4382_v50 = vadd.f32 1e-07, %v276_v20  ;;  %v4384_v51 = vadd.f32 1e-07, %v277_v21  ;;  %v4386_v52 = vadd.f32 1e-07, %v278_v22  ;;  %v4418_v1 = vmul.f32 %v4368_v48, %v4359_v43 }
  0x94   :  { %6155 = vst [vmem:[#allocation21_spill] sm:$0xff] %v4380_v44  ;;  %v4392_v54 = vadd.f32 1e-07, %v279_v23  ;;  %v4394_v55 = vadd.f32 1e-07, %v280_v2  ;;  %v4422_v3 = vmul.f32 %v4368_v48, %v4361_v45  ;;  %v4430_v7 = vmul.f32 %v4368_v48, %v4363_v46 }
  0x95   :  { %6156 = vst [vmem:[#allocation22_spill] sm:$0xff] %v4382_v50  ;;  %6157 = vst [vmem:[#allocation23_spill] sm:$0xff] %v4384_v51  ;;  %v4396_v56 = vadd.f32 1e-07, %v281_v24  ;;  %v4402_v58 = vadd.f32 1e-07, %v282_v25  ;;  %v4434_v8 = vmul.f32 %v4368_v48, %v4365_v47  ;;  %v4444_v15 = vmul.f32 %v4368_v48, %v4370_v49 }
  0x96   :  { %6158 = vst [vmem:[#allocation24_spill] sm:$0xff] %v4386_v52  ;;  %6159 = vst [vmem:[#allocation25_spill] sm:$0xff] %v4392_v54  ;;  %v4404_v59 = vadd.f32 1e-07, %v283_v26  ;;  %v4406_v60 = vadd.f32 1e-07, %v284_v27  ;;  %v4452_v18 = vmul.f32 %v4368_v48, %v4372_v10  ;;  %v4458_v20 = vmul.f32 %v4368_v48, %v4374_v30 }
  0x97   :  { %6160 = vst [vmem:[#allocation26_spill] sm:$0xff] %v4394_v55  ;;  %6161 = vst [vmem:[#allocation27_spill] sm:$0xff] %v4402_v58  ;;  %v4412_v62 = vadd.f32 1e-07, %v285_v28  ;;  %v4414_v63 = vadd.f32 1e-07, %v286_v29  ;;  %v4462_v21 = vmul.f32 %v4368_v48, %v4376_v14  ;;  %v4466_v22 = vmul.f32 %v4368_v48, %v4378_v37 }
  0x98   :  { %6162 = vst [vmem:[#allocation28_spill] sm:$0xff] %v4404_v59  ;;  %6163 = vst [vmem:[#allocation29_spill] sm:$0xff] %v4406_v60  ;;  %v4424_v5 = vadd.f32 1e-07, %v287_v31  ;;  %v4426_v6 = vadd.f32 1e-07, %v288_v32  ;;  %v4470_v23 = vmul.f32 %v4368_v48, %v4380_v44  ;;  %v4474_v2 = vmul.f32 %v4368_v48, %v4382_v50 }
  0x99   :  { %6164 = vst [vmem:[#allocation30_spill] sm:$0xff] %v4412_v62  ;;  %6165 = vst [vmem:[#allocation31_spill] sm:$0xff] %v4414_v63  ;;  %v3529_v9 = vld [vmem:[#allocation7 + $0x84] ss:$8 sps:$4 sm:$0xff]   ;;  %v4436_v11 = vadd.f32 1e-07, %v289_v33  ;;  %v4478_v24 = vmul.f32 %v4368_v48, %v4384_v51  ;;  %v4482_v25 = vmul.f32 %v4368_v48, %v4386_v52  ;;  %v361_v26 = vmax.f32 %v4390_v53, %v4422_v3 }
  0x9a   :  { %6166 = vst [vmem:[#allocation32_spill] sm:$0xff] %v4424_v5  ;;  %6167 = vst [vmem:[#allocation33_spill] sm:$0xff] %v4426_v6  ;;  %v4438_v12 = vadd.f32 1e-07, %v290_v34  ;;  %v4440_v13 = vadd.f32 1e-07, %v291_v35  ;;  %1005 = vmatprep.mubr.bf16.mxu1 %v3529_v9  ;;  %v362_v27 = vmax.f32 %v4400_v57, %v4430_v7  ;;  %v363_v28 = vmax.f32 %v4410_v61, %v4434_v8 }
  0x9b   :  { %6168 = vst [vmem:[#allocation34_spill] sm:$0xff] %v4436_v11  ;;  %v4446_v16 = vadd.f32 1e-07, %v292_v36  ;;  %v4448_v17 = vadd.f32 1e-07, %v293_v38  ;;  %v364_v29 = vmax.f32 %v4418_v1, %v4444_v15  ;;  %v4494_v31 = vmul.f32 %v4368_v48, %v4392_v54 }
  0x9c   :  { %6169 = vst [vmem:[#allocation35_spill] sm:$0xff] %v4438_v12  ;;  %6170 = vst [vmem:[#allocation36_spill] sm:$0xff] %v4440_v13  ;;  %v4454_v19 = vadd.f32 1e-07, %v294_v39  ;;  %v4498_v32 = vmul.f32 %v4368_v48, %v4394_v55  ;;  %v4502_v33 = vmul.f32 %v4368_v48, %v4396_v56  ;;  %v4506_v34 = vmul.f32 %v4368_v48, %v4402_v58 }
  0x9d   :  { %6171 = vst [vmem:[#allocation37_spill] sm:$0xff] %v4446_v16  ;;  %6172 = vst [vmem:[#allocation38_spill] sm:$0xff] %v4448_v17  ;;  %v365_v35 = vmax.f32 %v361_v26, %v4452_v18  ;;  %v366_v36 = vmax.f32 %v362_v27, %v4458_v20  ;;  %v367_v38 = vmax.f32 %v363_v28, %v4462_v21 }
  0x9e   :  { %6173 = vst [vmem:[#allocation39_spill] sm:$0xff] %v4454_v19  ;;  %v368_v39 = vmax.f32 %v364_v29, %v4466_v22  ;;  %v4514_v4 = vmul.f32 %v4368_v48, %v4404_v59  ;;  %v4518_v9 = vmul.f32 %v4368_v48, %v4406_v60  ;;  %v4522_v0 = vmul.f32 %v4368_v48, %v4412_v62 }
  0x9f   :  { %v4526_v26 = vmul.f32 %v4368_v48, %v4414_v63  ;;  %v369_v27 = vmax.f32 %v365_v35, %v4470_v23  ;;  %v370_v28 = vmax.f32 %v366_v36, %v4474_v2  ;;  %v371_v29 = vmax.f32 %v367_v38, %v4478_v24 }
  0xa0   :  { %v372_v55 = vmax.f32 %v368_v39, %v4482_v25  ;;  %v4534_v54 = vmul.f32 %v4368_v48, %v4424_v5  ;;  %v4538_v52 = vmul.f32 %v4368_v48, %v4426_v6  ;;  %v4542_v51 = vmul.f32 %v4368_v48, %v4436_v11 }
  0xa1   :  { %v4546_v35 = vmul.f32 %v4368_v48, %v4438_v12  ;;  %v373_v36 = vmax.f32 %v369_v27, %v4494_v31  ;;  %v374_v38 = vmax.f32 %v370_v28, %v4498_v32  ;;  %v375_v39 = vmax.f32 %v371_v29, %v4502_v33 }
  0xa2   :  { %v376_v5 = vmax.f32 %v372_v55, %v4506_v34  ;;  %v4554_v6 = vmul.f32 %v4368_v48, %v4440_v13  ;;  %v4558_v11 = vmul.f32 %v4368_v48, %v4446_v16  ;;  %v4562_v12 = vmul.f32 %v4368_v48, %v4448_v17 }
  0xa3   :  { %v4566_v27 = vmul.f32 %v4368_v48, %v4454_v19  ;;  %v377_v28 = vmax.f32 %v373_v36, %v4514_v4  ;;  %v378_v55 = vmax.f32 %v374_v38, %v4518_v9  ;;  %v379_v29 = vmax.f32 %v375_v39, %v4522_v0 }
  0xa4   :  { %v380_v13 = vmax.f32 %v376_v5, %v4526_v26 }
  0xa5   :  { %v381_v63 = vmax.f32 %v377_v28, %v4534_v54  ;;  %v382_v16 = vmax.f32 %v378_v55, %v4538_v52  ;;  %v383_v62 = vmax.f32 %v379_v29, %v4542_v51  ;;  %v404_v28 = vlaneseq }
  0xa6   :  { %v384_v17 = vmax.f32 %v380_v13, %v4546_v35  ;;  %v4582_v13 = vld [vmem:[#allocation3] sm:$0x1] }
  0xa7   :  { %v385_v60 = vmax.f32 %v381_v63, %v4554_v6  ;;  %v386_v48 = vmax.f32 %v382_v16, %v4558_v11  ;;  %v387_v36 = vmax.f32 %v383_v62, %v4562_v12  ;;  %v4580_v44 = vshrl.u32 %v404_v28, 7 }
  0xa8   :  { %v388_v38 = vmax.f32 %v384_v17, %v4566_v27 }
  0xa9   :  { %v389_v19 = vmax.f32 %v385_v60, %v386_v48  ;;  %v406_v16 = vsub.s32 0, %v4580_v44  ;;  %v3524_v44 = vld [vmem:[#allocation7] ss:$8 sps:$4 sm:$0xff]  }
  0xaa   :  { %v390_v39 = vmax.f32 %v387_v36, %v388_v38 }
  0xac   :  { %v391_v59 = vmax.f32 %v389_v19, %v390_v39 }
  0xae   :  { %v392_v5 = vrot.slane %v391_v59, 4 }
  0xb0   :  { %v393_v50 = vmax.f32 %v391_v59, %v392_v5 }
  0xb2   :  { %v394_v58 = vrot.slane %v393_v50, 2 }
  0xb4   :  { %v395_v55 = vmax.f32 %v393_v50, %v394_v58 }
  0xb6   :  { %v396_v29 = vrot.slane %v395_v55, 1 }
  0xb8   :  { %v397_v63 = vmax.f32 %v395_v55, %v396_v29 }
  0xba   :  { %v4586_v62 = vmax.f32 %v4582_v13, %v397_v63 }
  0xbc   :  { %v4591_v60 = vrot.slane %v4586_v62, %v406_v16  ;;  %402 = vst [vmem:[#allocation3] sm:$0x1] %v4586_v62 }
  0xbe   :  { %v409_v50 = vsub.f32 %v4390_v53, %v4591_v60  ;;  %v410_v58 = vsub.f32 %v4400_v57, %v4591_v60  ;;  %v411_v59 = vsub.f32 %v4410_v61, %v4591_v60  ;;  %v412_v17 = vsub.f32 %v4418_v1, %v4591_v60 }
  0xbf   :  { %v413_v19 = vsub.f32 %v4422_v3, %v4591_v60  ;;  %v414_v48 = vsub.f32 %v4430_v7, %v4591_v60  ;;  %v415_v53 = vsub.f32 %v4434_v8, %v4591_v60  ;;  %v416_v57 = vsub.f32 %v4444_v15, %v4591_v60 }
  0xc0   :  { %v441_v36 = vmul.f32 1.442695, %v409_v50  ;;  %v443_v38 = vmul.f32 1.442695, %v410_v58  ;;  %v445_v39 = vmul.f32 1.442695, %v411_v59  ;;  %v417_v61 = vsub.f32 %v4452_v18, %v4591_v60 }
  0xc1   :  { %v447_v5 = vmul.f32 1.442695, %v412_v17  ;;  %v449_v1 = vmul.f32 1.442695, %v413_v19  ;;  %v418_v3 = vsub.f32 %v4458_v20, %v4591_v60  ;;  %v451_v7 = vmul.f32 1.442695, %v414_v48 }
  0xc2   :  { %3572 = vpow2.f32 %v441_v36  ;;  %v453_v28 = vmul.f32 1.442695, %v415_v53  ;;  %v419_v55 = vsub.f32 %v4462_v21, %v4591_v60  ;;  %v455_v8 = vmul.f32 1.442695, %v416_v57 }
  0xc3   :  { %3574 = vpow2.f32 %v443_v38  ;;  %v457_v29 = vmul.f32 1.442695, %v417_v61  ;;  %v420_v15 = vsub.f32 %v4466_v22, %v4591_v60  ;;  %v459_v18 = vmul.f32 1.442695, %v418_v3 }
  0xc4   :  { %3576 = vpow2.f32 %v445_v39  ;;  %v421_v63 = vsub.f32 %v4470_v23, %v4591_v60  ;;  %v422_v20 = vsub.f32 %v4474_v2, %v4591_v60  ;;  %v423_v50 = vsub.f32 %v4478_v24, %v4591_v60 }
  0xc5   :  { %3578 = vpow2.f32 %v447_v5  ;;  %v424_v21 = vsub.f32 %v4482_v25, %v4591_v60  ;;  %v425_v58 = vsub.f32 %v4494_v31, %v4591_v60  ;;  %v461_v22 = vmul.f32 1.442695, %v419_v55 }
  0xc6   :  { %3580 = vpow2.f32 %v449_v1  ;;  %v426_v59 = vsub.f32 %v4498_v32, %v4591_v60  ;;  %v427_v23 = vsub.f32 %v4502_v33, %v4591_v60  ;;  %v463_v2 = vmul.f32 1.442695, %v420_v15 }
  0xc7   :  { %3582 = vpow2.f32 %v451_v7  ;;  %v428_v17 = vsub.f32 %v4506_v34, %v4591_v60  ;;  %v429_v24 = vsub.f32 %v4514_v4, %v4591_v60  ;;  %v465_v25 = vmul.f32 1.442695, %v421_v63 }
  0xc8   :  { %3584 = vpow2.f32 %v453_v28  ;;  %v467_v19 = vmul.f32 1.442695, %v422_v20  ;;  %v469_v31 = vmul.f32 1.442695, %v423_v50  ;;  %v471_v48 = vmul.f32 1.442695, %v424_v21 }
  0xc9   :  { %3586 = vpow2.f32 %v455_v8  ;;  %v473_v36 = vmul.f32 1.442695, %v425_v58  ;;  %v475_v32 = vmul.f32 1.442695, %v426_v59  ;;  %v477_v39 = vmul.f32 1.442695, %v427_v23 }
  0xca   :  { %3588 = vpow2.f32 %v457_v29  ;;  %v430_v33 = vsub.f32 %v4518_v9, %v4591_v60  ;;  %v479_v5 = vmul.f32 1.442695, %v428_v17  ;;  %v481_v4 = vmul.f32 1.442695, %v429_v24 }
  0xcb   :  { %3590 = vpow2.f32 %v459_v18  ;;  %v431_v3 = vsub.f32 %v4522_v0, %v4591_v60  ;;  %v432_v9 = vsub.f32 %v4526_v26, %v4591_v60  ;;  %v435_v26 = vsub.f32 %v4542_v51, %v4591_v60 }
  0xcc   :  { %v3573_v38 = vpop.eup %3572  ;;  %3592 = vpow2.f32 %v461_v22  ;;  %v483_v0 = vmul.f32 1.442695, %v430_v33 }
  0xcd   :  { %v3575_v53 = vpop.eup %3574  ;;  %v505_v34 = vmul.f32 %v3573_v38, %v4351_v40  ;;  %3594 = vpow2.f32 %v463_v2  ;;  %v433_v40 = vsub.f32 %v4534_v54, %v4591_v60  ;;  %v487_v22 = vmul.f32 1.442695, %v432_v9  ;;  %v6174_v9 = vld [vmem:[#allocation21_spill] sm:$0xff] }
  0xce   :  { %v3577_v57 = vpop.eup %3576  ;;  %v538_v61 = vpack.c.bf16 %v3575_v53, %v3573_v38  ;;  %v506_v1 = vmul.f32 %v3575_v53, %v4355_v41  ;;  %3596 = vpow2.f32 %v465_v25  ;;  %v437_v2 = vsub.f32 %v4554_v6, %v4591_v60 }
  0xcf   :  { %v3579_v7 = vpop.eup %3578  ;;  %v507_v28 = vmul.f32 %v3577_v57, %v4357_v42  ;;  %3598 = vpow2.f32 %v467_v19  ;;  %v434_v42 = vsub.f32 %v4538_v52, %v4591_v60  ;;  %v485_v52 = vmul.f32 1.442695, %v431_v3 }
  0xd0   :  { %v3581_v55 = vpop.eup %3580  ;;  %893 = vmatprep.subr.bf16.mxu0 %v538_v61  ;;  %3482 = vmatprep.subr.bf16.mxu1 %v538_v61  ;;  %v537_v8 = vpack.c.bf16 %v506_v1, %v505_v34  ;;  %v540_v29 = vpack.c.bf16 %v3579_v7, %v3577_v57  ;;  %v508_v41 = vmul.f32 %v3579_v7, %v4359_v43  ;;  %3600 = vpow2.f32 %v469_v31 }
  0xd1   :  { %v3583_v15 = vpop.eup %3582  ;;  %3602 = vpow2.f32 %v471_v48  ;;  %v509_v63 = vmul.f32 %v3581_v55, %v4361_v45  ;;  %v489_v59 = vmul.f32 1.442695, %v433_v40  ;;  %v493_v6 = vmul.f32 1.442695, %v435_v26 }
  0xd2   :  { %v3585_v18 = vpop.eup %3584  ;;  %894 = vmatpush1.bf16.msra.mxu0 %v537_v8  ;;  %3498 = vmatpush1.bf16.msra.mxu1 %v537_v8  ;;  %v539_v54 = vpack.c.bf16 %v508_v41, %v507_v28  ;;  %v510_v20 = vmul.f32 %v3583_v15, %v4363_v46  ;;  %3604 = vpow2.f32 %v473_v36  ;;  %v542_v50 = vpack.c.bf16 %v3583_v15, %v3581_v55  ;;  %v6176_v41 = vld [vmem:[#allocation22_spill] sm:$0xff] }
  0xd3   :  { %v3587_v43 = vpop.eup %3586  ;;  %895 = vmatprep.subr.bf16.mxu0 %v540_v29  ;;  %3483 = vmatprep.subr.bf16.mxu1 %v540_v29  ;;  %v511_v21 = vmul.f32 %v3585_v18, %v4365_v47  ;;  %3606 = vpow2.f32 %v475_v32  ;;  %v436_v46 = vsub.f32 %v4546_v35, %v4591_v60  ;;  %v438_v35 = vsub.f32 %v4558_v11, %v4591_v60 }
  0xd4   :  { %v3589_v58 = vpop.eup %3588  ;;  %v512_v51 = vmul.f32 %v3587_v43, %v4370_v49  ;;  %3608 = vpow2.f32 %v477_v39  ;;  %v541_v47 = vpack.c.bf16 %v510_v20, %v509_v63  ;;  %v544_v19 = vpack.c.bf16 %v3587_v43, %v3585_v18 }
  0xd5   :  { %v3591_v23 = vpop.eup %3590  ;;  %v513_v45 = vmul.f32 %v3589_v58, %v4372_v10  ;;  %3610 = vpow2.f32 %v479_v5  ;;  %v491_v10 = vmul.f32 1.442695, %v434_v42  ;;  %v439_v36 = vsub.f32 %v4562_v12, %v4591_v60 }
  0xd6   :  { %v3593_v17 = vpop.eup %3592  ;;  %896 = vmatpush1.bf16.msra.mxu0 %v539_v54  ;;  %3499 = vmatpush1.bf16.msra.mxu1 %v539_v54  ;;  %v543_v24 = vpack.c.bf16 %v512_v51, %v511_v21  ;;  %v514_v49 = vmul.f32 %v3591_v23, %v4374_v30  ;;  %3612 = vpow2.f32 %v481_v4  ;;  %v495_v30 = vmul.f32 1.442695, %v436_v46  ;;  %v6178_v54 = vld [vmem:[#allocation29_spill] sm:$0xff]  ;;  %v6181_v46 = vld [vmem:[#allocation23_spill] sm:$0xff] }
  0xd7   :  { %v3595_v25 = vpop.eup %3594  ;;  %897 = vmatprep.subr.bf16.mxu0 %v542_v50  ;;  %3484 = vmatprep.subr.bf16.mxu1 %v542_v50  ;;  %3614 = vpow2.f32 %v483_v0  ;;  %v440_v32 = vsub.f32 %v4566_v27, %v4591_v60  ;;  %v497_v33 = vmul.f32 1.442695, %v437_v2  ;;  %v546_v53 = vpack.c.bf16 %v3591_v23, %v3589_v58  ;;  %v6177_v0 = vld [vmem:[#allocation28_spill] sm:$0xff]  ;;  %v6179_v50 = vld [vmem:[#allocation30_spill] sm:$0xff] }
  0xd8   :  { %v3597_v31 = vpop.eup %3596  ;;  %v545_v48 = vpack.c.bf16 %v514_v49, %v513_v45  ;;  %3616 = vpow2.f32 %v485_v52  ;;  %v499_v34 = vmul.f32 1.442695, %v438_v35  ;;  %v399_v12 = vsub.f32 %v4582_v13, %v4586_v62  ;;  %v6184_v35 = vld [vmem:[#allocation33_spill] sm:$0xff] }
  0xd9   :  { %v3599_v38 = vpop.eup %3598  ;;  %3618 = vpow2.f32 %v487_v22  ;;  %v501_v27 = vmul.f32 1.442695, %v439_v36  ;;  %v515_v4 = vmul.f32 %v3593_v17, %v4376_v14  ;;  %v516_v57 = vmul.f32 %v3595_v25, %v4378_v37  ;;  %v6175_v37 = vld [vmem:[#allocation27_spill] sm:$0xff]  ;;  %v6185_v36 = vld [vmem:[#allocation34_spill] sm:$0xff] }
  0xda   :  { %v4668_v39 = vpop.eup %3600  ;;  %898 = vmatpush1.bf16.msra.mxu0 %v541_v47  ;;  %3500 = vmatpush1.bf16.msra.mxu1 %v541_v47  ;;  %3620 = vpow2.f32 %v489_v59  ;;  %v503_v61 = vmul.f32 1.442695, %v440_v32  ;;  %v400_v3 = vmul.f32 1.442695, %v399_v12  ;;  %v548_v13 = vpack.c.bf16 %v3595_v25, %v3593_v17  ;;  %v6180_v22 = vld [vmem:[#allocation31_spill] sm:$0xff]  ;;  %v6182_v17 = vld [vmem:[#allocation24_spill] sm:$0xff] }
  0xdb   :  { %v4670_v11 = vpop.eup %3602  ;;  %899 = vmatprep.subr.bf16.mxu0 %v544_v19  ;;  %3485 = vmatprep.subr.bf16.mxu1 %v544_v19  ;;  %3622 = vpow2.f32 %v491_v10  ;;  %v517_v40 = vmul.f32 %v3597_v31, %v6174_v9  ;;  %v547_v29 = vpack.c.bf16 %v516_v57, %v515_v4  ;;  %v518_v15 = vmul.f32 %v3599_v38, %v6176_v41  ;;  %v6187_v4 = vld [vmem:[#allocation25_spill] sm:$0xff] }
  0xdc   :  { %v4674_v5 = vpop.eup %3604  ;;  %3624 = vpow2.f32 %v493_v6  ;;  %v550_v43 = vpack.c.bf16 %v3599_v38, %v3597_v31  ;;  %v519_v2 = vmul.f32 %v4668_v39, %v6181_v46  ;;  %v520_v47 = vmul.f32 %v4670_v11, %v6182_v17  ;;  %v3556_v46 = vld [vmem:[#allocation7 + $0xd4] ss:$8 sps:$4 sm:$0xff]   ;;  %v3559_v17 = vld [vmem:[#allocation7 + $0xd0] ss:$8 sps:$4 sm:$0xff]  }
  0xdd   :  { %v4676_v60 = vpop.eup %3606  ;;  %3626 = vpow2.f32 %v495_v30  ;;  %v549_v45 = vpack.c.bf16 %v518_v15, %v517_v40  ;;  %v552_v6 = vpack.c.bf16 %v4670_v11, %v4668_v39  ;;  %v521_v57 = vmul.f32 %v4674_v5, %v6187_v4  ;;  %v6192_v15 = vld [vmem:[#allocation39_spill] sm:$0xff] }
  0xde   :  { %v3609_v1 = vpop.eup %3608  ;;  %900 = vmatpush1.bf16.msra.mxu0 %v543_v24  ;;  %3501 = vmatpush1.bf16.msra.mxu1 %v543_v24  ;;  %3628 = vpow2.f32 %v497_v33  ;;  %v6183_v24 = vld [vmem:[#allocation32_spill] sm:$0xff]  ;;  %v554_v40 = vpack.c.bf16 %v4676_v60, %v4674_v5 }
  0xdf   :  { %v3611_v7 = vpop.eup %3610  ;;  %901 = vmatprep.subr.bf16.mxu0 %v546_v53  ;;  %3486 = vmatprep.subr.bf16.mxu1 %v546_v53  ;;  %v523_v62 = vmul.f32 %v3609_v1, %v4396_v56  ;;  %3630 = vpow2.f32 %v499_v34  ;;  %v6186_v53 = vld [vmem:[#allocation35_spill] sm:$0xff]  ;;  %v3530_v5 = vld [vmem:[#allocation7 + $0x14] ss:$8 sps:$4 sm:$0xff]  }
  0xe0   :  { %v3613_v28 = vpop.eup %3612  ;;  %v4682_v14 = vpack.c.bf16 %v3611_v7, %v3609_v1  ;;  %v524_v55 = vmul.f32 %v3611_v7, %v6175_v37  ;;  %3632 = vpow2.f32 %v501_v27  ;;  %v551_v27 = vpack.c.bf16 %v520_v47, %v519_v2  ;;  %v6191_v37 = vld [vmem:[#allocation38_spill] sm:$0xff]  ;;  %v3558_v2 = vld [vmem:[#allocation7 + $0x50] ss:$8 sps:$4 sm:$0xff]  }
  0xe1   :  { %v3615_v8 = vpop.eup %3614  ;;  %v525_v42 = vmul.f32 %v3613_v28, %v6177_v0  ;;  %3634 = vpow2.f32 %v503_v61  ;;  %v6188_v61 = vld [vmem:[#allocation26_spill] sm:$0xff] }
  0xe2   :  { %v3617_v26 = vpop.eup %3616  ;;  %902 = vmatpush1.bf16.msra.mxu0 %v545_v48  ;;  %3502 = vmatpush1.bf16.msra.mxu1 %v545_v48  ;;  %v4687_v56 = vpack.c.bf16 %v524_v55, %v523_v62  ;;  %v4689_v18 = vpack.c.bf16 %v3615_v8, %v3613_v28  ;;  %v526_v63 = vmul.f32 %v3615_v8, %v6178_v54  ;;  %3636 = vpow2.f32 %v400_v3  ;;  %v6189_v3 = vld [vmem:[#allocation36_spill] sm:$0xff]  ;;  %v6190_v62 = vld [vmem:[#allocation37_spill] sm:$0xff]  ;;  %v3560_v47 = vld [vmem:[#allocation7 + $0x64] ss:$8 sps:$4 sm:$0xff]  }
  0xe3   :  { %v3619_v20 = vpop.eup %3618  ;;  %903 = vmatprep.subr.bf16.mxu0 %v548_v13  ;;  %3487 = vmatprep.subr.bf16.mxu1 %v548_v13  ;;  %v527_v21 = vmul.f32 %v3617_v26, %v6179_v50  ;;  %v522_v1 = vmul.f32 %v4676_v60, %v6188_v61  ;;  %v3532_v60 = vld [vmem:[#allocation7 + $0x94] ss:$8 sps:$4 sm:$0xff]  }
  0xe4   :  { %v3621_v52 = vpop.eup %3620  ;;  %v557_v58 = vpack.c.bf16 %v526_v63, %v525_v42  ;;  %v560_v51 = vpack.c.bf16 %v3619_v20, %v3617_v26  ;;  %v528_v59 = vmul.f32 %v3619_v20, %v6180_v22  ;;  %v3538_v63 = vld [vmem:[#allocation7 + $0xa4] ss:$8 sps:$4 sm:$0xff]   ;;  %v3540_v20 = vld [vmem:[#allocation7 + $0x20] ss:$8 sps:$4 sm:$0xff]   ;;  %v3542_v50 = vld [vmem:[#allocation7 + $0x34] ss:$8 sps:$4 sm:$0xff]  }
  0xe5   :  { %v3623_v23 = vpop.eup %3622  ;;  %v529_v49 = vmul.f32 %v3621_v52, %v6183_v24  ;;  %v553_v26 = vpack.c.bf16 %v522_v1, %v521_v57  ;;  %v3550_v22 = vld [vmem:[#allocation7 + $0xc4] ss:$8 sps:$4 sm:$0xff]  }
  0xe6   :  { %v3625_v25 = vpop.eup %3624  ;;  %904 = vmatpush1.bf16.msra.mxu0 %v547_v29  ;;  %3503 = vmatpush1.bf16.msra.mxu1 %v547_v29  ;;  %v559_v19 = vpack.c.bf16 %v528_v59, %v527_v21  ;;  %v562_v10 = vpack.c.bf16 %v3623_v23, %v3621_v52  ;;  %v530_v31 = vmul.f32 %v3623_v23, %v6184_v35  ;;  %v3544_v21 = vld [vmem:[#allocation7 + $0xb4] ss:$8 sps:$4 sm:$0xff]   ;;  %v3546_v52 = vld [vmem:[#allocation7 + $0x30] ss:$8 sps:$4 sm:$0xff]   ;;  %v3552_v59 = vld [vmem:[#allocation7 + $0x40] ss:$8 sps:$4 sm:$0xff]  }
  0xe7   :  { %v3627_v48 = vpop.eup %3626  ;;  %905 = vmatprep.subr.bf16.mxu0 %v550_v43  ;;  %3488 = vmatprep.subr.bf16.mxu1 %v550_v43  ;;  %v531_v38 = vmul.f32 %v3625_v25, %v6185_v36  ;;  %v3541_v43 = vld [vmem:[#allocation7 + $0xa0] ss:$8 sps:$4 sm:$0xff]   ;;  %v3562_v24 = vld [vmem:[#allocation7 + $0xe4] ss:$8 sps:$4 sm:$0xff]   ;;  %v3570_v35 = vld [vmem:[#allocation7 + $0x70] ss:$8 sps:$4 sm:$0xff]  }
  0xe8   :  { %v3629_v30 = vpop.eup %3628  ;;  %v561_v32 = vpack.c.bf16 %v530_v31, %v529_v49  ;;  %v564_v33 = vpack.c.bf16 %v3627_v48, %v3625_v25  ;;  %v532_v34 = vmul.f32 %v3627_v48, %v6186_v53  ;;  %v3553_v23 = vld [vmem:[#allocation7 + $0xc0] ss:$8 sps:$4 sm:$0xff]   ;;  %v3571_v31 = vld [vmem:[#allocation7 + $0xf0] ss:$8 sps:$4 sm:$0xff]  }
  0xe9   :  { %v3631_v12 = vpop.eup %3630  ;;  %v533_v7 = vmul.f32 %v3629_v30, %v6189_v3  ;;  %v3564_v49 = vld [vmem:[#allocation7 + $0x60] ss:$8 sps:$4 sm:$0xff]  }
  0xea   :  { %v3633_v13 = vpop.eup %3632  ;;  %906 = vmatpush1.bf16.msra.mxu0 %v549_v45  ;;  %3504 = vmatpush1.bf16.msra.mxu1 %v549_v45  ;;  %v563_v39 = vpack.c.bf16 %v532_v34, %v531_v38  ;;  %v566_v11 = vpack.c.bf16 %v3631_v12, %v3629_v30  ;;  %v534_v28 = vmul.f32 %v3631_v12, %v6190_v62  ;;  %v3554_v45 = vld [vmem:[#allocation7 + $0x54] ss:$8 sps:$4 sm:$0xff]   ;;  %v3565_v25 = vld [vmem:[#allocation7 + $0xe0] ss:$8 sps:$4 sm:$0xff]  }
  0xeb   :  { %v3635_v9 = vpop.eup %3634  ;;  %907 = vmatprep.subr.bf16.mxu0 %v552_v6  ;;  %3489 = vmatprep.subr.bf16.mxu1 %v552_v6  ;;  %v535_v55 = vmul.f32 %v3633_v13, %v6191_v37  ;;  %v569_v48 = vld [vmem:[#allocation2] sm:$0xff]  ;;  %v570_v36 = vld [vmem:[#allocation2 + $0x8] sm:$0xff]  ;;  %v571_v30 = vld [vmem:[#allocation2 + $0x10] sm:$0xff] }
  0xec   :  { %v3637_v8 = vpop.eup %3636  ;;  %v565_v29 = vpack.c.bf16 %v534_v28, %v533_v7  ;;  %v568_v41 = vpack.c.bf16 %v3635_v9, %v3633_v13  ;;  %v536_v0 = vmul.f32 %v3635_v9, %v6192_v15  ;;  %v601_v6 = vld [vmem:[#allocation2 + $0x100] sm:$0xff]  ;;  %v602_v38 = vld [vmem:[#allocation2 + $0x108] sm:$0xff]  ;;  %v572_v34 = vld [vmem:[#allocation2 + $0x18] sm:$0xff] }
  0xed   :  { %v4716_v42 = vrot.slane %v3637_v8, %v406_v16  ;;  %v3527_v16 = vld [vmem:[#allocation7 + $0x80] ss:$8 sps:$4 sm:$0xff]   ;;  %v604_v12 = vld [vmem:[#allocation2 + $0x118] sm:$0xff] }
  0xee   :  { %908 = vmatpush1.bf16.msra.mxu0 %v551_v27  ;;  %3505 = vmatpush1.bf16.msra.mxu1 %v551_v27  ;;  %v567_v54 = vpack.c.bf16 %v536_v0, %v535_v55  ;;  %v573_v8 = vld [vmem:[#allocation2 + $0x20] sm:$0xff] }
  0xef   :  { %909 = vmatprep.subr.bf16.mxu0 %v554_v40  ;;  %3490 = vmatprep.subr.bf16.mxu1 %v554_v40  ;;  %v669_v53 = vmul.f32 %v4716_v42, %v601_v6  ;;  %v638_v27 = vmul.f32 %v4716_v42, %v570_v36  ;;  %v670_v4 = vmul.f32 %v4716_v42, %v602_v38  ;;  %v578_v6 = vld [vmem:[#allocation2 + $0x48] sm:$0xff] }
  0xf0   :  { %v639_v57 = vmul.f32 %v4716_v42, %v571_v30  ;;  %v640_v7 = vmul.f32 %v4716_v42, %v572_v34  ;;  %v672_v13 = vmul.f32 %v4716_v42, %v604_v12  ;;  %v610_v36 = vld [vmem:[#allocation2 + $0x148] sm:$0xff]  ;;  %v580_v12 = vld [vmem:[#allocation2 + $0x58] sm:$0xff] }
  0xf2   :  { %910 = vmatpush1.bf16.msra.mxu0 %v553_v26  ;;  %3506 = vmatpush1.bf16.msra.mxu1 %v553_v26 }
  0xf3   :  { %911 = vmatprep.subr.bf16.mxu0 %v4682_v14  ;;  %3491 = vmatprep.subr.bf16.mxu1 %v4682_v14  ;;  %v3534_v14 = vld [vmem:[#allocation7 + $0x10] ss:$8 sps:$4 sm:$0xff]  }
  0xf6   :  { %912 = vmatpush1.bf16.msra.mxu0 %v4687_v56  ;;  %3507 = vmatpush1.bf16.msra.mxu1 %v4687_v56  ;;  %v3535_v56 = vld [vmem:[#allocation7 + $0x90] ss:$8 sps:$4 sm:$0xff]  }
  0xf7   :  { %913 = vmatprep.subr.bf16.mxu0 %v4689_v18  ;;  %3492 = vmatprep.subr.bf16.mxu1 %v4689_v18  ;;  %v3536_v18 = vld [vmem:[#allocation7 + $0x24] ss:$8 sps:$4 sm:$0xff]  }
  0xfa   :  { %914 = vmatpush1.bf16.msra.mxu0 %v557_v58  ;;  %3508 = vmatpush1.bf16.msra.mxu1 %v557_v58  ;;  %v3547_v58 = vld [vmem:[#allocation7 + $0xb0] ss:$8 sps:$4 sm:$0xff]  }
  0xfb   :  { %915 = vmatprep.subr.bf16.mxu0 %v560_v51  ;;  %3493 = vmatprep.subr.bf16.mxu1 %v560_v51  ;;  %v3548_v51 = vld [vmem:[#allocation7 + $0x44] ss:$8 sps:$4 sm:$0xff]  }
  0xfe   :  { %916 = vmatpush1.bf16.msra.mxu0 %v559_v19  ;;  %3509 = vmatpush1.bf16.msra.mxu1 %v559_v19  ;;  %v3566_v19 = vld [vmem:[#allocation7 + $0x74] ss:$8 sps:$4 sm:$0xff]  }
  0xff   :  { %917 = vmatprep.subr.bf16.mxu0 %v562_v10  ;;  %3494 = vmatprep.subr.bf16.mxu1 %v562_v10  ;;  %v3568_v10 = vld [vmem:[#allocation7 + $0xf4] ss:$8 sps:$4 sm:$0xff]  }
 0x102   :  { %918 = vmatpush1.bf16.msra.mxu0 %v561_v32  ;;  %3510 = vmatpush1.bf16.msra.mxu1 %v561_v32  ;;  %v603_v32 = vld [vmem:[#allocation2 + $0x110] sm:$0xff] }
 0x103   :  { %919 = vmatprep.subr.bf16.mxu0 %v564_v33  ;;  %3495 = vmatprep.subr.bf16.mxu1 %v564_v33  ;;  %v637_v33 = vmul.f32 %v4716_v42, %v569_v48  ;;  %v671_v61 = vmul.f32 %v4716_v42, %v603_v32  ;;  %v579_v32 = vld [vmem:[#allocation2 + $0x50] sm:$0xff] }
 0x106   :  { %920 = vmatpush1.bf16.msra.mxu0 %v563_v39  ;;  %3511 = vmatpush1.bf16.msra.mxu1 %v563_v39 }
 0x107   :  { %921 = vmatprep.subr.bf16.mxu0 %v566_v11  ;;  %3496 = vmatprep.subr.bf16.mxu1 %v566_v11 }
 0x10a   :  { %922 = vmatpush1.bf16.msra.mxu0 %v565_v29  ;;  %3512 = vmatpush1.bf16.msra.mxu1 %v565_v29  ;;  %v605_v29 = vld [vmem:[#allocation2 + $0x120] sm:$0xff] }
 0x10b   :  { %923 = vmatprep.subr.bf16.mxu0 %v568_v41  ;;  %3497 = vmatprep.subr.bf16.mxu1 %v568_v41 }
 0x10e   :  { %924 = vmatpush1.bf16.msra.mxu0 %v567_v54  ;;  %3513 = vmatpush1.bf16.msra.mxu1 %v567_v54  ;;  %v574_v54 = vld [vmem:[#allocation2 + $0x28] sm:$0xff] }
 0x111   :  { %926 = vmatmul.mubr.bf16.vlgmr.msra.gmra.mrb[0].mxu0 %v3524_v44  ;;  %1006 = vmatmul.mubr.bf16.vlgmr.msra.gmra.mrb[0].mxu1 %v3527_v16  ;;  %v606_v44 = vld [vmem:[#allocation2 + $0x128] sm:$0xff] }
 0x112   :  { %935 = vmatprep.mubr.bf16.mxu0 %v3530_v5  ;;  %1015 = vmatprep.mubr.bf16.mxu1 %v3532_v60  ;;  %v575_v60 = vld [vmem:[#allocation2 + $0x30] sm:$0xff] }
 0x119   :  { %936 = vmatmul.mubr.bf16.gmra.mrb[4].mxu0 %v3534_v14  ;;  %1016 = vmatmul.mubr.bf16.gmra.mrb[4].mxu1 %v3535_v56  ;;  %v607_v14 = vld [vmem:[#allocation2 + $0x130] sm:$0xff]  ;;  %v641_v56 = vmul.f32 %v4716_v42, %v573_v8 }
 0x11a   :  { %945 = vmatprep.mubr.bf16.mxu0 %v3536_v18  ;;  %1025 = vmatprep.mubr.bf16.mxu1 %v3538_v63  ;;  %v673_v18 = vmul.f32 %v4716_v42, %v605_v29  ;;  %v576_v63 = vld [vmem:[#allocation2 + $0x38] sm:$0xff]  ;;  %v581_v29 = vld [vmem:[#allocation2 + $0x60] sm:$0xff] }
 0x121   :  { %946 = vmatmul.mubr.bf16.gmra.mrb[8].mxu0 %v3540_v20  ;;  %1026 = vmatmul.mubr.bf16.gmra.mrb[8].mxu1 %v3541_v43  ;;  %v608_v20 = vld [vmem:[#allocation2 + $0x138] sm:$0xff]  ;;  %v642_v43 = vmul.f32 %v4716_v42, %v574_v54 }
 0x122   :  { %955 = vmatprep.mubr.bf16.mxu0 %v3542_v50  ;;  %1035 = vmatprep.mubr.bf16.mxu1 %v3544_v21  ;;  %v674_v50 = vmul.f32 %v4716_v42, %v606_v44  ;;  %v643_v21 = vmul.f32 %v4716_v42, %v575_v60  ;;  %v582_v44 = vld [vmem:[#allocation2 + $0x68] sm:$0xff] }
 0x129   :  { %956 = vmatmul.mubr.bf16.gmra.mrb[12].mxu0 %v3546_v52  ;;  %1036 = vmatmul.mubr.bf16.gmra.mrb[12].mxu1 %v3547_v58  ;;  %v675_v52 = vmul.f32 %v4716_v42, %v607_v14  ;;  %v583_v14 = vld [vmem:[#allocation2 + $0x70] sm:$0xff] }
 0x12a   :  { %965 = vmatprep.mubr.bf16.mxu0 %v3548_v51  ;;  %1045 = vmatprep.mubr.bf16.mxu1 %v3550_v22  ;;  %v644_v22 = vmul.f32 %v4716_v42, %v576_v63 }
 0x131   :  { %966 = vmatmul.mubr.bf16.gmra.mrb[16].mxu0 %v3552_v59  ;;  %1046 = vmatmul.mubr.bf16.gmra.mrb[16].mxu1 %v3553_v23  ;;  %v676_v59 = vmul.f32 %v4716_v42, %v608_v20  ;;  %v584_v20 = vld [vmem:[#allocation2 + $0x78] sm:$0xff] }
 0x132   :  { %975 = vmatprep.mubr.bf16.mxu0 %v3554_v45  ;;  %1055 = vmatprep.mubr.bf16.mxu1 %v3556_v46 }
 0x139   :  { %976 = vmatmul.mubr.bf16.gmra.mrb[20].mxu0 %v3558_v2  ;;  %1056 = vmatmul.mubr.bf16.gmra.mrb[20].mxu1 %v3559_v17 }
 0x13a   :  { %985 = vmatprep.mubr.bf16.mxu0 %v3560_v47  ;;  %1065 = vmatprep.mubr.bf16.mxu1 %v3562_v24 }
 0x141   :  { %986 = vmatmul.mubr.bf16.gmra.mrb[24].mxu0 %v3564_v49  ;;  %1066 = vmatmul.mubr.bf16.gmra.mrb[24].mxu1 %v3565_v25  ;;  %v577_v25 = vld [vmem:[#allocation2 + $0x40] sm:$0xff] }
 0x142   :  { %995 = vmatprep.mubr.bf16.mxu0 %v3566_v19  ;;  %1075 = vmatprep.mubr.bf16.mxu1 %v3568_v10  ;;  %v609_v19 = vld [vmem:[#allocation2 + $0x140] sm:$0xff] }
 0x143   :  { %v677_v34 = vmul.f32 %v4716_v42, %v609_v19  ;;  %v585_v19 = vld [vmem:[#allocation2 + $0x80] sm:$0xff] }
 0x149   :  { %996 = vmatmul.mubr.bf16.gmra.mrb[28].mxu0 %v3570_v35  ;;  %1076 = vmatmul.mubr.bf16.gmra.mrb[28].mxu1 %v3571_v31 }
 0x1e4   :  { %v927_v1 = vpop.f32.mrb[0].mxu0  ;;  %v1007_v3 = vpop.f32.mrb[0].mxu1 }
 0x1e5   :  { %v1086_v39 = vadd.f32 %v927_v1, %v637_v33  ;;  %v1118_v11 = vadd.f32 %v1007_v3, %v669_v53  ;;  %v929_v62 = vpop.f32.mrb[1].mxu0  ;;  %v1009_v28 = vpop.f32.mrb[1].mxu1  ;;  %v611_v33 = vld [vmem:[#allocation2 + $0x150] sm:$0xff]  ;;  %v645_v53 = vmul.f32 %v4716_v42, %v577_v25 }
 0x1e6   :  { %v1087_v9 = vadd.f32 %v929_v62, %v638_v27  ;;  %v1119_v40 = vadd.f32 %v1009_v28, %v670_v4  ;;  %v931_v37 = vpop.f32.mrb[2].mxu0  ;;  %v1011_v55 = vpop.f32.mrb[2].mxu1  ;;  %v612_v27 = vld [vmem:[#allocation2 + $0x158] sm:$0xff]  ;;  %v646_v4 = vmul.f32 %v4716_v42, %v578_v6  ;;  %v679_v1 = vmul.f32 %v4716_v42, %v611_v33  ;;  %v587_v33 = vld [vmem:[#allocation2 + $0x90] sm:$0xff] }
 0x1e7   :  { %1150 = vst [vmem:[#allocation2] sm:$0xff] %v1086_v39  ;;  %1182 = vst [vmem:[#allocation2 + $0x100] sm:$0xff] %v1118_v11  ;;  %v1088_v41 = vadd.f32 %v931_v37, %v639_v57  ;;  %v1120_v15 = vadd.f32 %v1011_v55, %v671_v61  ;;  %v933_v0 = vpop.f32.mrb[3].mxu0  ;;  %v1013_v26 = vpop.f32.mrb[3].mxu1  ;;  %v678_v57 = vmul.f32 %v4716_v42, %v610_v36  ;;  %v586_v36 = vld [vmem:[#allocation2 + $0x88] sm:$0xff] }
 0x1e8   :  { %1151 = vst [vmem:[#allocation2 + $0x8] sm:$0xff] %v1087_v9  ;;  %1183 = vst [vmem:[#allocation2 + $0x108] sm:$0xff] %v1119_v40  ;;  %v1089_v16 = vadd.f32 %v933_v0, %v640_v7  ;;  %v1121_v5 = vadd.f32 %v1013_v26, %v672_v13  ;;  %v647_v61 = vmul.f32 %v4716_v42, %v579_v32 }
 0x1e9   :  { %1152 = vst [vmem:[#allocation2 + $0x10] sm:$0xff] %v1088_v41  ;;  %1184 = vst [vmem:[#allocation2 + $0x110] sm:$0xff] %v1120_v15  ;;  %v648_v13 = vmul.f32 %v4716_v42, %v580_v12  ;;  %v680_v39 = vmul.f32 %v4716_v42, %v612_v27  ;;  %v613_v41 = vld [vmem:[#allocation2 + $0x160] sm:$0xff]  ;;  %v588_v27 = vld [vmem:[#allocation2 + $0x98] sm:$0xff] }
 0x1ea   :  { %1153 = vst [vmem:[#allocation2 + $0x18] sm:$0xff] %v1089_v16  ;;  %1185 = vst [vmem:[#allocation2 + $0x118] sm:$0xff] %v1121_v5  ;;  %v614_v16 = vld [vmem:[#allocation2 + $0x168] sm:$0xff]  ;;  %v681_v63 = vmul.f32 %v4716_v42, %v613_v41  ;;  %v589_v41 = vld [vmem:[#allocation2 + $0xa0] sm:$0xff] }
 0x1ec   :  { %v937_v58 = vpop.f32.mrb[4].mxu0  ;;  %v1017_v51 = vpop.f32.mrb[4].mxu1 }
 0x1ed   :  { %v1090_v23 = vadd.f32 %v937_v58, %v641_v56  ;;  %v1122_v45 = vadd.f32 %v1017_v51, %v673_v18  ;;  %v939_v46 = vpop.f32.mrb[5].mxu0  ;;  %v1019_v2 = vpop.f32.mrb[5].mxu1  ;;  %v615_v56 = vld [vmem:[#allocation2 + $0x170] sm:$0xff]  ;;  %v649_v18 = vmul.f32 %v4716_v42, %v581_v29 }
 0x1ee   :  { %v1091_v17 = vadd.f32 %v939_v46, %v642_v43  ;;  %v1123_v47 = vadd.f32 %v1019_v2, %v674_v50  ;;  %v941_v24 = vpop.f32.mrb[6].mxu0  ;;  %v1021_v49 = vpop.f32.mrb[6].mxu1  ;;  %v616_v43 = vld [vmem:[#allocation2 + $0x178] sm:$0xff]  ;;  %v650_v50 = vmul.f32 %v4716_v42, %v582_v44  ;;  %v683_v58 = vmul.f32 %v4716_v42, %v615_v56  ;;  %v591_v56 = vld [vmem:[#allocation2 + $0xb0] sm:$0xff] }
 0x1ef   :  { %1154 = vst [vmem:[#allocation2 + $0x20] sm:$0xff] %v1090_v23  ;;  %1186 = vst [vmem:[#allocation2 + $0x120] sm:$0xff] %v1122_v45  ;;  %v1092_v10 = vadd.f32 %v941_v24, %v643_v21  ;;  %v1124_v35 = vadd.f32 %v1021_v49, %v675_v52  ;;  %v943_v31 = vpop.f32.mrb[7].mxu0  ;;  %v1023_v48 = vpop.f32.mrb[7].mxu1  ;;  %v682_v21 = vmul.f32 %v4716_v42, %v614_v16  ;;  %v590_v16 = vld [vmem:[#allocation2 + $0xa8] sm:$0xff] }
 0x1f0   :  { %1155 = vst [vmem:[#allocation2 + $0x28] sm:$0xff] %v1091_v17  ;;  %1187 = vst [vmem:[#allocation2 + $0x128] sm:$0xff] %v1123_v47  ;;  %v1093_v38 = vadd.f32 %v943_v31, %v644_v22  ;;  %v1125_v30 = vadd.f32 %v1023_v48, %v676_v59  ;;  %v651_v52 = vmul.f32 %v4716_v42, %v583_v14 }
 0x1f1   :  { %1156 = vst [vmem:[#allocation2 + $0x30] sm:$0xff] %v1092_v10  ;;  %1188 = vst [vmem:[#allocation2 + $0x130] sm:$0xff] %v1124_v35  ;;  %v652_v59 = vmul.f32 %v4716_v42, %v584_v20  ;;  %v684_v23 = vmul.f32 %v4716_v42, %v616_v43  ;;  %v617_v10 = vld [vmem:[#allocation2 + $0x180] sm:$0xff]  ;;  %v592_v43 = vld [vmem:[#allocation2 + $0xb8] sm:$0xff] }
 0x1f2   :  { %1157 = vst [vmem:[#allocation2 + $0x38] sm:$0xff] %v1093_v38  ;;  %1189 = vst [vmem:[#allocation2 + $0x138] sm:$0xff] %v1125_v30  ;;  %v618_v38 = vld [vmem:[#allocation2 + $0x188] sm:$0xff]  ;;  %v685_v12 = vmul.f32 %v4716_v42, %v617_v10  ;;  %v593_v10 = vld [vmem:[#allocation2 + $0xc0] sm:$0xff] }
 0x1f4   :  { %v947_v3 = vpop.f32.mrb[8].mxu0  ;;  %v1027_v7 = vpop.f32.mrb[8].mxu1 }
 0x1f5   :  { %v1094_v11 = vadd.f32 %v947_v3, %v645_v53  ;;  %v1126_v62 = vadd.f32 %v1027_v7, %v677_v34  ;;  %v949_v28 = vpop.f32.mrb[9].mxu0  ;;  %v1029_v9 = vpop.f32.mrb[9].mxu1  ;;  %v619_v53 = vld [vmem:[#allocation2 + $0x190] sm:$0xff]  ;;  %v653_v34 = vmul.f32 %v4716_v42, %v585_v19 }
 0x1f6   :  { %v1095_v40 = vadd.f32 %v949_v28, %v646_v4  ;;  %v1127_v37 = vadd.f32 %v1029_v9, %v678_v57  ;;  %v951_v55 = vpop.f32.mrb[10].mxu0  ;;  %v1031_v8 = vpop.f32.mrb[10].mxu1  ;;  %v620_v4 = vld [vmem:[#allocation2 + $0x198] sm:$0xff]  ;;  %v654_v57 = vmul.f32 %v4716_v42, %v586_v36  ;;  %v687_v3 = vmul.f32 %v4716_v42, %v619_v53  ;;  %v595_v53 = vld [vmem:[#allocation2 + $0xd0] sm:$0xff] }
 0x1f7   :  { %1158 = vst [vmem:[#allocation2 + $0x40] sm:$0xff] %v1094_v11  ;;  %1190 = vst [vmem:[#allocation2 + $0x140] sm:$0xff] %v1126_v62  ;;  %v1096_v15 = vadd.f32 %v951_v55, %v647_v61  ;;  %v1128_v0 = vadd.f32 %v1031_v8, %v679_v1  ;;  %v953_v26 = vpop.f32.mrb[11].mxu0  ;;  %v1033_v54 = vpop.f32.mrb[11].mxu1  ;;  %v686_v61 = vmul.f32 %v4716_v42, %v618_v38  ;;  %v594_v38 = vld [vmem:[#allocation2 + $0xc8] sm:$0xff] }
 0x1f8   :  { %1159 = vst [vmem:[#allocation2 + $0x48] sm:$0xff] %v1095_v40  ;;  %1191 = vst [vmem:[#allocation2 + $0x148] sm:$0xff] %v1127_v37  ;;  %v1097_v5 = vadd.f32 %v953_v26, %v648_v13  ;;  %v1129_v60 = vadd.f32 %v1033_v54, %v680_v39  ;;  %v655_v1 = vmul.f32 %v4716_v42, %v587_v33 }
 0x1f9   :  { %1160 = vst [vmem:[#allocation2 + $0x50] sm:$0xff] %v1096_v15  ;;  %1192 = vst [vmem:[#allocation2 + $0x150] sm:$0xff] %v1128_v0  ;;  %v656_v39 = vmul.f32 %v4716_v42, %v588_v27  ;;  %v688_v11 = vmul.f32 %v4716_v42, %v620_v4  ;;  %v621_v15 = vld [vmem:[#allocation2 + $0x1a0] sm:$0xff]  ;;  %v596_v4 = vld [vmem:[#allocation2 + $0xd8] sm:$0xff] }
 0x1fa   :  { %1161 = vst [vmem:[#allocation2 + $0x58] sm:$0xff] %v1097_v5  ;;  %1193 = vst [vmem:[#allocation2 + $0x158] sm:$0xff] %v1129_v60  ;;  %v622_v5 = vld [vmem:[#allocation2 + $0x1a8] sm:$0xff]  ;;  %v689_v20 = vmul.f32 %v4716_v42, %v621_v15  ;;  %v597_v15 = vld [vmem:[#allocation2 + $0xe0] sm:$0xff] }
 0x1fc   :  { %v957_v51 = vpop.f32.mrb[12].mxu0  ;;  %v1037_v22 = vpop.f32.mrb[12].mxu1 }
 0x1fd   :  { %v1098_v45 = vadd.f32 %v957_v51, %v649_v18  ;;  %v1130_v46 = vadd.f32 %v1037_v22, %v681_v63  ;;  %v959_v2 = vpop.f32.mrb[13].mxu0  ;;  %v1039_v17 = vpop.f32.mrb[13].mxu1  ;;  %v623_v18 = vld [vmem:[#allocation2 + $0x1b0] sm:$0xff]  ;;  %v657_v63 = vmul.f32 %v4716_v42, %v589_v41 }
 0x1fe   :  { %v1099_v47 = vadd.f32 %v959_v2, %v650_v50  ;;  %v1131_v24 = vadd.f32 %v1039_v17, %v682_v21  ;;  %v961_v49 = vpop.f32.mrb[14].mxu0  ;;  %v1041_v25 = vpop.f32.mrb[14].mxu1  ;;  %v624_v50 = vld [vmem:[#allocation2 + $0x1b8] sm:$0xff]  ;;  %v658_v21 = vmul.f32 %v4716_v42, %v590_v16  ;;  %v691_v51 = vmul.f32 %v4716_v42, %v623_v18  ;;  %v599_v18 = vld [vmem:[#allocation2 + $0xf0] sm:$0xff] }
 0x1ff   :  { %1162 = vst [vmem:[#allocation2 + $0x60] sm:$0xff] %v1098_v45  ;;  %1194 = vst [vmem:[#allocation2 + $0x160] sm:$0xff] %v1130_v46  ;;  %v1100_v35 = vadd.f32 %v961_v49, %v651_v52  ;;  %v1132_v31 = vadd.f32 %v1041_v25, %v683_v58  ;;  %v963_v48 = vpop.f32.mrb[15].mxu0  ;;  %v1043_v6 = vpop.f32.mrb[15].mxu1  ;;  %v690_v52 = vmul.f32 %v4716_v42, %v622_v5  ;;  %v598_v5 = vld [vmem:[#allocation2 + $0xe8] sm:$0xff] }
 0x200   :  { %1163 = vst [vmem:[#allocation2 + $0x68] sm:$0xff] %v1099_v47  ;;  %1195 = vst [vmem:[#allocation2 + $0x168] sm:$0xff] %v1131_v24  ;;  %v1101_v30 = vadd.f32 %v963_v48, %v652_v59  ;;  %v1133_v32 = vadd.f32 %v1043_v6, %v684_v23  ;;  %v659_v58 = vmul.f32 %v4716_v42, %v591_v56 }
 0x201   :  { %1164 = vst [vmem:[#allocation2 + $0x70] sm:$0xff] %v1100_v35  ;;  %1196 = vst [vmem:[#allocation2 + $0x170] sm:$0xff] %v1132_v31  ;;  %v660_v23 = vmul.f32 %v4716_v42, %v592_v43  ;;  %v692_v45 = vmul.f32 %v4716_v42, %v624_v50  ;;  %v625_v35 = vld [vmem:[#allocation2 + $0x1c0] sm:$0xff]  ;;  %v600_v50 = vld [vmem:[#allocation2 + $0xf8] sm:$0xff] }
 0x202   :  { %1165 = vst [vmem:[#allocation2 + $0x78] sm:$0xff] %v1101_v30  ;;  %1197 = vst [vmem:[#allocation2 + $0x178] sm:$0xff] %v1133_v32  ;;  %v626_v30 = vld [vmem:[#allocation2 + $0x1c8] sm:$0xff]  ;;  %v693_v27 = vmul.f32 %v4716_v42, %v625_v35 }
 0x204   :  { %v967_v7 = vpop.f32.mrb[16].mxu0  ;;  %v1047_v13 = vpop.f32.mrb[16].mxu1 }
 0x205   :  { %v1102_v62 = vadd.f32 %v967_v7, %v653_v34  ;;  %v1134_v28 = vadd.f32 %v1047_v13, %v685_v12  ;;  %v969_v9 = vpop.f32.mrb[17].mxu0  ;;  %v1049_v40 = vpop.f32.mrb[17].mxu1  ;;  %v627_v34 = vld [vmem:[#allocation2 + $0x1d0] sm:$0xff]  ;;  %v661_v12 = vmul.f32 %v4716_v42, %v593_v10 }
 0x206   :  { %v1103_v37 = vadd.f32 %v969_v9, %v654_v57  ;;  %v1135_v55 = vadd.f32 %v1049_v40, %v686_v61  ;;  %v971_v8 = vpop.f32.mrb[18].mxu0  ;;  %v1051_v29 = vpop.f32.mrb[18].mxu1  ;;  %v628_v57 = vld [vmem:[#allocation2 + $0x1d8] sm:$0xff]  ;;  %v662_v61 = vmul.f32 %v4716_v42, %v594_v38  ;;  %v695_v7 = vmul.f32 %v4716_v42, %v627_v34 }
 0x207   :  { %1166 = vst [vmem:[#allocation2 + $0x80] sm:$0xff] %v1102_v62  ;;  %1198 = vst [vmem:[#allocation2 + $0x180] sm:$0xff] %v1134_v28  ;;  %v1104_v0 = vadd.f32 %v971_v8, %v655_v1  ;;  %v1136_v26 = vadd.f32 %v1051_v29, %v687_v3  ;;  %v973_v54 = vpop.f32.mrb[19].mxu0  ;;  %v1053_v44 = vpop.f32.mrb[19].mxu1  ;;  %v694_v1 = vmul.f32 %v4716_v42, %v626_v30 }
 0x208   :  { %1167 = vst [vmem:[#allocation2 + $0x88] sm:$0xff] %v1103_v37  ;;  %1199 = vst [vmem:[#allocation2 + $0x188] sm:$0xff] %v1135_v55  ;;  %v1105_v60 = vadd.f32 %v973_v54, %v656_v39  ;;  %v1137_v14 = vadd.f32 %v1053_v44, %v688_v11  ;;  %v663_v3 = vmul.f32 %v4716_v42, %v595_v53 }
 0x209   :  { %1168 = vst [vmem:[#allocation2 + $0x90] sm:$0xff] %v1104_v0  ;;  %1200 = vst [vmem:[#allocation2 + $0x190] sm:$0xff] %v1136_v26  ;;  %v664_v11 = vmul.f32 %v4716_v42, %v596_v4  ;;  %v696_v62 = vmul.f32 %v4716_v42, %v628_v57  ;;  %v629_v0 = vld [vmem:[#allocation2 + $0x1e0] sm:$0xff] }
 0x20a   :  { %1169 = vst [vmem:[#allocation2 + $0x98] sm:$0xff] %v1105_v60  ;;  %1201 = vst [vmem:[#allocation2 + $0x198] sm:$0xff] %v1137_v14  ;;  %v630_v60 = vld [vmem:[#allocation2 + $0x1e8] sm:$0xff]  ;;  %v697_v43 = vmul.f32 %v4716_v42, %v629_v0 }
 0x20c   :  { %v977_v22 = vpop.f32.mrb[20].mxu0  ;;  %v1057_v59 = vpop.f32.mrb[20].mxu1 }
 0x20d   :  { %v1106_v46 = vadd.f32 %v977_v22, %v657_v63  ;;  %v1138_v2 = vadd.f32 %v1057_v59, %v689_v20  ;;  %v979_v17 = vpop.f32.mrb[21].mxu0  ;;  %v1059_v47 = vpop.f32.mrb[21].mxu1  ;;  %v631_v63 = vld [vmem:[#allocation2 + $0x1f0] sm:$0xff]  ;;  %v665_v20 = vmul.f32 %v4716_v42, %v597_v15 }
 0x20e   :  { %v1107_v24 = vadd.f32 %v979_v17, %v658_v21  ;;  %v1139_v49 = vadd.f32 %v1059_v47, %v690_v52  ;;  %v981_v25 = vpop.f32.mrb[22].mxu0  ;;  %v1061_v19 = vpop.f32.mrb[22].mxu1  ;;  %v632_v21 = vld [vmem:[#allocation2 + $0x1f8] sm:$0xff]  ;;  %v666_v52 = vmul.f32 %v4716_v42, %v598_v5  ;;  %v699_v22 = vmul.f32 %v4716_v42, %v631_v63 }
 0x20f   :  { %1170 = vst [vmem:[#allocation2 + $0xa0] sm:$0xff] %v1106_v46  ;;  %1202 = vst [vmem:[#allocation2 + $0x1a0] sm:$0xff] %v1138_v2  ;;  %v1108_v31 = vadd.f32 %v981_v25, %v659_v58  ;;  %v1140_v48 = vadd.f32 %v1061_v19, %v691_v51  ;;  %v983_v6 = vpop.f32.mrb[23].mxu0  ;;  %v1063_v36 = vpop.f32.mrb[23].mxu1  ;;  %v698_v58 = vmul.f32 %v4716_v42, %v630_v60 }
 0x210   :  { %1171 = vst [vmem:[#allocation2 + $0xa8] sm:$0xff] %v1107_v24  ;;  %1203 = vst [vmem:[#allocation2 + $0x1a8] sm:$0xff] %v1139_v49  ;;  %v1109_v32 = vadd.f32 %v983_v6, %v660_v23  ;;  %v1141_v33 = vadd.f32 %v1063_v36, %v692_v45  ;;  %v667_v51 = vmul.f32 %v4716_v42, %v599_v18 }
 0x211   :  { %1172 = vst [vmem:[#allocation2 + $0xb0] sm:$0xff] %v1108_v31  ;;  %1204 = vst [vmem:[#allocation2 + $0x1b0] sm:$0xff] %v1140_v48  ;;  %v668_v45 = vmul.f32 %v4716_v42, %v600_v50  ;;  %v700_v46 = vmul.f32 %v4716_v42, %v632_v21 }
 0x212   :  { %1173 = vst [vmem:[#allocation2 + $0xb8] sm:$0xff] %v1109_v32  ;;  %1205 = vst [vmem:[#allocation2 + $0x1b8] sm:$0xff] %v1141_v33 }
 0x214   :  { %v987_v13 = vpop.f32.mrb[24].mxu0  ;;  %v1067_v39 = vpop.f32.mrb[24].mxu1 }
 0x215   :  { %v1110_v28 = vadd.f32 %v987_v13, %v661_v12  ;;  %v1142_v9 = vadd.f32 %v1067_v39, %v693_v27  ;;  %v989_v40 = vpop.f32.mrb[25].mxu0  ;;  %v1069_v37 = vpop.f32.mrb[25].mxu1 }
 0x216   :  { %v1111_v55 = vadd.f32 %v989_v40, %v662_v61  ;;  %v1143_v8 = vadd.f32 %v1069_v37, %v694_v1  ;;  %v991_v29 = vpop.f32.mrb[26].mxu0  ;;  %v1071_v41 = vpop.f32.mrb[26].mxu1 }
 0x217   :  { %1174 = vst [vmem:[#allocation2 + $0xc0] sm:$0xff] %v1110_v28  ;;  %1206 = vst [vmem:[#allocation2 + $0x1c0] sm:$0xff] %v1142_v9  ;;  %v1112_v26 = vadd.f32 %v991_v29, %v663_v3  ;;  %v1144_v54 = vadd.f32 %v1071_v41, %v695_v7  ;;  %v993_v44 = vpop.f32.mrb[27].mxu0  ;;  %v1073_v16 = vpop.f32.mrb[27].mxu1 }
 0x218   :  { %1175 = vst [vmem:[#allocation2 + $0xc8] sm:$0xff] %v1111_v55  ;;  %1207 = vst [vmem:[#allocation2 + $0x1c8] sm:$0xff] %v1143_v8  ;;  %v1113_v14 = vadd.f32 %v993_v44, %v664_v11  ;;  %v1145_v56 = vadd.f32 %v1073_v16, %v696_v62 }
 0x219   :  { %1176 = vst [vmem:[#allocation2 + $0xd0] sm:$0xff] %v1112_v26  ;;  %1208 = vst [vmem:[#allocation2 + $0x1d0] sm:$0xff] %v1144_v54 }
 0x21a   :  { %1177 = vst [vmem:[#allocation2 + $0xd8] sm:$0xff] %v1113_v14  ;;  %1209 = vst [vmem:[#allocation2 + $0x1d8] sm:$0xff] %v1145_v56 }
 0x21c   :  { %v997_v59 = vpop.f32.mrb[28].mxu0  ;;  %v1077_v23 = vpop.f32.mrb[28].mxu1 }
 0x21d   :  { %v1114_v2 = vadd.f32 %v997_v59, %v665_v20  ;;  %v1146_v17 = vadd.f32 %v1077_v23, %v697_v43  ;;  %v999_v47 = vpop.f32.mrb[29].mxu0  ;;  %v1079_v24 = vpop.f32.mrb[29].mxu1 }
 0x21e   :  { %v1115_v49 = vadd.f32 %v999_v47, %v666_v52  ;;  %v1147_v25 = vadd.f32 %v1079_v24, %v698_v58  ;;  %v1001_v19 = vpop.f32.mrb[30].mxu0  ;;  %v1081_v10 = vpop.f32.mrb[30].mxu1 }
 0x21f   :  { %1178 = vst [vmem:[#allocation2 + $0xe0] sm:$0xff] %v1114_v2  ;;  %1210 = vst [vmem:[#allocation2 + $0x1e0] sm:$0xff] %v1146_v17  ;;  %v1116_v35 = vadd.f32 %v1001_v19, %v667_v51  ;;  %v1148_v31 = vadd.f32 %v1081_v10, %v699_v22  ;;  %v1003_v48 = vpop.f32.mrb[31].mxu0  ;;  %v1083_v6 = vpop.f32.mrb[31].mxu1 }
 0x220   :  { %1179 = vst [vmem:[#allocation2 + $0xe8] sm:$0xff] %v1115_v49  ;;  %1211 = vst [vmem:[#allocation2 + $0x1e8] sm:$0xff] %v1147_v25  ;;  %v1117_v36 = vadd.f32 %v1003_v48, %v668_v45  ;;  %v1149_v38 = vadd.f32 %v1083_v6, %v700_v46 }
 0x221   :  { %1180 = vst [vmem:[#allocation2 + $0xf0] sm:$0xff] %v1116_v35  ;;  %1212 = vst [vmem:[#allocation2 + $0x1f0] sm:$0xff] %v1148_v31 }
 0x222   :  { %1181 = vst [vmem:[#allocation2 + $0xf8] sm:$0xff] %v1117_v36  ;;  %1213 = vst [vmem:[#allocation2 + $0x1f8] sm:$0xff] %v1149_v38 }
 0x223 PF:  { %v1544_v42 = vld [vmem:[#allocation13] sm:$0xff]  ;;  %v1545_v30 = vld [vmem:[#allocation13 + $0x8] sm:$0xff]  ;;  %v1546_v32 = vld [vmem:[#allocation13 + $0x10] sm:$0xff] }
 0x224   :  { %v3418_v33 = vpack.c.bf16 %v1545_v30, %v1544_v42  ;;  %v1547_v53 = vld [vmem:[#allocation13 + $0x18] sm:$0xff]  ;;  %v1548_v12 = vld [vmem:[#allocation13 + $0x20] sm:$0xff]  ;;  %v1549_v27 = vld [vmem:[#allocation13 + $0x28] sm:$0xff] }
 0x225   :  { %v3422_v34 = vpack.c.bf16 %v1547_v53, %v1546_v32  ;;  %v3426_v4 = vpack.c.bf16 %v1549_v27, %v1548_v12  ;;  %v1550_v57 = vld [vmem:[#allocation13 + $0x30] sm:$0xff]  ;;  %v1551_v61 = vld [vmem:[#allocation13 + $0x38] sm:$0xff]  ;;  %v4788_v1 = vld [vmem:[#allocation2 + $0x8] sm:$0xff] }
 0x226   :  { %3419 = vmatprep.subr.bf16.mxu0 %v3418_v33  ;;  %vm1282_vm0 = vcmp.gt.f32.partialorder %v4788_v1, 0.0  ;;  %v4791_v3 = vld [vmem:[#allocation2 + $0x18] sm:$0xff]  ;;  %v4797_v13 = vld [vmem:[#allocation2 + $0x28] sm:$0xff]  ;;  %v3430_v39 = vpack.c.bf16 %v1551_v61, %v1550_v57  ;;  %v4831_v16 = vld [vmem:[%s6098_s2] ss:$0 sm:$0xff] }
 0x227   :  { %3421 = vmatpush3.bf16.msra.mxu0 %v3418_v33  ;;  %v1314_v7 = vsel %vm1282_vm0, %v4788_v1, 1.0  ;;  %vm1283_vm1 = vcmp.gt.f32.partialorder %v4791_v3, 0.0  ;;  %vm1284_vm2 = vcmp.gt.f32.partialorder %v4797_v13, 0.0  ;;  %v4803_v62 = vld [vmem:[#allocation2 + $0x38] sm:$0xff]  ;;  %v1552_v28 = vld [vmem:[#allocation13 + $0x40] sm:$0xff]  ;;  %v1553_v9 = vld [vmem:[#allocation13 + $0x48] sm:$0xff] }
 0x228   :  { %3423 = vmatprep.subr.bf16.mxu0 %v3422_v34  ;;  %3638 = vrcp.f32 %v1314_v7  ;;  %v1315_v11 = vsel %vm1283_vm1, %v4791_v3, 1.0  ;;  %v1316_v40 = vsel %vm1284_vm2, %v4797_v13, 1.0  ;;  %vm1285_vm3 = vcmp.gt.f32.partialorder %v4803_v62, 0.0  ;;  %v4809_v37 = vld [vmem:[#allocation2 + $0x48] sm:$0xff]  ;;  %v4815_v8 = vld [vmem:[#allocation2 + $0x58] sm:$0xff]  ;;  %v1218_v56 = vld [vmem:[#allocation2] sm:$0xff] }
 0x229   :  { %3640 = vrcp.f32 %v1315_v11  ;;  %v1317_v55 = vsel %vm1285_vm3, %v4803_v62, 1.0  ;;  %vm1286_vm4 = vcmp.gt.f32.partialorder %v4809_v37, 0.0  ;;  %v4820_v41 = vld [vmem:[#allocation2 + $0x68] sm:$0xff]  ;;  %v3434_v15 = vpack.c.bf16 %v1553_v9, %v1552_v28  ;;  %v4823_v0 = vld [vmem:[#allocation2 + $0x78] sm:$0xff]  ;;  %v1219_v2 = vld [vmem:[#allocation2 + $0x10] sm:$0xff] }
 0x22a   :  { %3642 = vrcp.f32 %v1316_v40  ;;  %v1318_v29 = vsel %vm1286_vm4, %v4809_v37, 1.0  ;;  %vm1287_vm5 = vcmp.gt.f32.partialorder %v4815_v8, 0.0  ;;  %v1554_v26 = vld [vmem:[#allocation13 + $0x50] sm:$0xff]  ;;  %v1555_v54 = vld [vmem:[#allocation13 + $0x58] sm:$0xff]  ;;  %vm1288_vm6 = vcmp.gt.f32.partialorder %v4820_v41, 0.0  ;;  %v4826_v44 = vld [vmem:[#allocation2 + $0x88] sm:$0xff] }
 0x22b   :  { %3425 = vmatpush3.bf16.msra.mxu0 %v3422_v34  ;;  %3644 = vrcp.f32 %v1317_v55  ;;  %v1442_v5 = vld [vmem:[#allocation12] sm:$0xff]  ;;  %v1319_v60 = vsel %vm1287_vm5, %v4815_v8, 1.0  ;;  %vm1289_vm7 = vcmp.gt.f32.partialorder %v4823_v0, 0.0  ;;  %v3438_v14 = vpack.c.bf16 %v1555_v54, %v1554_v26  ;;  %v4841_v63 = vld [vmem:[#allocation2 + $0x98] sm:$0xff]  ;;  %v1557_v43 = vld [vmem:[#allocation13 + $0x68] sm:$0xff] }
 0x22c   :  { %3427 = vmatprep.subr.bf16.mxu0 %v3426_v4  ;;  %3646 = vrcp.f32 %v1318_v29  ;;  %v1320_v18 = vsel %vm1288_vm6, %v4820_v41, 1.0  ;;  %vm1290_vm8 = vcmp.gt.f32.partialorder %v4826_v44, 0.0  ;;  %v1556_v20 = vld [vmem:[#allocation13 + $0x60] sm:$0xff]  ;;  %v4846_v52 = vmul.f32 %v4831_v16, %v1442_v5  ;;  %v4855_v23 = vld [vmem:[#allocation2 + $0xb8] sm:$0xff]  ;;  %v1443_v10 = vld [vmem:[#allocation12 + $0x8] sm:$0xff] }
 0x22d   :  { %v4843_v50 = vld [vmem:[#allocation2 + $0xa8] sm:$0xff]  ;;  %3648 = vrcp.f32 %v1319_v60  ;;  %v1321_v58 = vsel %vm1289_vm7, %v4823_v0, 1.0  ;;  %v1322_v59 = vsel %vm1290_vm8, %v4826_v44, 1.0  ;;  %vm1291_vm9 = vcmp.gt.f32.partialorder %v4841_v63, 0.0  ;;  %v1220_v17 = vld [vmem:[#allocation2 + $0x20] sm:$0xff]  ;;  %v1558_v24 = vld [vmem:[#allocation13 + $0x70] sm:$0xff] }
 0x22e   :  { %3650 = vrcp.f32 %v1320_v18  ;;  %v3442_v46 = vpack.c.bf16 %v1557_v43, %v1556_v20  ;;  %vm1292_vm10 = vcmp.gt.f32.partialorder %v4843_v50, 0.0  ;;  %v4858_v47 = vld [vmem:[#allocation2 + $0xc8] sm:$0xff]  ;;  %v1559_v49 = vld [vmem:[#allocation13 + $0x78] sm:$0xff]  ;;  %v1444_v35 = vld [vmem:[#allocation12 + $0x10] sm:$0xff]  ;;  %v1323_v31 = vsel %vm1291_vm9, %v4841_v63, 1.0 }
 0x22f   :  { %3429 = vmatpush3.bf16.msra.mxu0 %v3426_v4  ;;  %3652 = vrcp.f32 %v1321_v58  ;;  %vm1293_vm11 = vcmp.gt.f32.partialorder %v4855_v23, 0.0  ;;  %v1324_v38 = vsel %vm1292_vm10, %v4843_v50, 1.0  ;;  %vm1294_vm12 = vcmp.gt.f32.partialorder %v4858_v47, 0.0  ;;  %v4871_v42 = vld [vmem:[#allocation2 + $0xd8] sm:$0xff]  ;;  %v4873_v30 = vld [vmem:[#allocation2 + $0xe8] sm:$0xff]  ;;  %v1221_v53 = vld [vmem:[#allocation2 + $0x30] sm:$0xff] }
 0x230   :  { %3431 = vmatprep.subr.bf16.mxu0 %v3430_v39  ;;  %3654 = vrcp.f32 %v1322_v59  ;;  %v3446_v33 = vpack.c.bf16 %v1559_v49, %v1558_v24  ;;  %v1222_v34 = vld [vmem:[#allocation2 + $0x40] sm:$0xff]  ;;  %v4876_v12 = vmul.f32 %v4831_v16, %v1443_v10  ;;  %v4879_v27 = vmul.f32 %v4831_v16, %v1444_v35  ;;  %v1223_v40 = vld [vmem:[#allocation2 + $0x50] sm:$0xff]  ;;  %v4893_v55 = vld [vmem:[#allocation2 + $0xf8] sm:$0xff] }
 0x231   :  { %3656 = vrcp.f32 %v1323_v31  ;;  %v1325_v4 = vsel %vm1293_vm11, %v4855_v23, 1.0  ;;  %v1445_v57 = vld [vmem:[#allocation12 + $0x18] sm:$0xff]  ;;  %v1326_v61 = vsel %vm1294_vm12, %v4858_v47, 1.0  ;;  %vm1295_vm13 = vcmp.gt.f32.partialorder %v4871_v42, 0.0  ;;  %v1446_v28 = vld [vmem:[#allocation12 + $0x20] sm:$0xff]  ;;  %v1448_v58 = vld [vmem:[#allocation12 + $0x30] sm:$0xff] }
 0x232   :  { %v3639_v21 = vpop.eup %3638  ;;  %3658 = vrcp.f32 %v1324_v38  ;;  %vm1296_vm14 = vcmp.gt.f32.partialorder %v4873_v30, 0.0  ;;  %v1224_v26 = vld [vmem:[#allocation2 + $0x60] sm:$0xff]  ;;  %v1327_v3 = vsel %vm1295_vm13, %v4871_v42, 1.0  ;;  %v4901_v13 = vld [vmem:[#allocation2 + $0x108] sm:$0xff]  ;;  %v4906_v60 = vmul.f32 %v4831_v16, %v1446_v28  ;;  %v1225_v59 = vld [vmem:[#allocation2 + $0x70] sm:$0xff] }
 0x233   :  { %3433 = vmatpush3.bf16.msra.mxu0 %v3430_v39  ;;  %v3641_v51 = vpop.eup %3640  ;;  %v1378_v22 = vmul.f32 %v3639_v21, %v1218_v56  ;;  %3660 = vrcp.f32 %v1325_v4  ;;  %v1328_v56 = vsel %vm1296_vm14, %v4873_v30, 1.0  ;;  %vm1297_vm15 = vcmp.gt.f32.partialorder %v4893_v55, 0.0  ;;  %v1226_v62 = vld [vmem:[#allocation2 + $0x80] sm:$0xff]  ;;  %v1227_v31 = vld [vmem:[#allocation2 + $0x90] sm:$0xff]  ;;  %v5037_v30 = vld [vmem:[#allocation2 + $0x1b8] sm:$0xff] }
 0x234   :  { %3435 = vmatprep.subr.bf16.mxu0 %v3434_v15  ;;  %v3643_v45 = vpop.eup %3642  ;;  %v1379_v6 = vmul.f32 %v3641_v51, %v1219_v2  ;;  %3662 = vrcp.f32 %v1326_v61  ;;  %v1449_v24 = vld [vmem:[#allocation12 + $0x38] sm:$0xff]  ;;  %v1329_v49 = vsel %vm1297_vm15, %v4893_v55, 1.0  ;;  %v1451_v41 = vld [vmem:[#allocation12 + $0x48] sm:$0xff] }
 0x235   :  { %v1410_v25 = vsel %vm1282_vm0, %v1378_v22, 0.0  ;;  %v3645_v48 = vpop.eup %3644  ;;  %v1380_v36 = vmul.f32 %v3643_v45, %v1220_v17  ;;  %3664 = vrcp.f32 %v1327_v3  ;;  %vm1298_vm0 = vcmp.gt.f32.partialorder %v4901_v13, 0.0  ;;  %v4917_v45 = vld [vmem:[#allocation2 + $0x118] sm:$0xff]  ;;  %v1228_v8 = vld [vmem:[#allocation2 + $0xa0] sm:$0xff] }
 0x236   :  { %v1512_v19 = vadd.f32 %v4846_v52, %v1410_v25  ;;  %v3647_v32 = vpop.eup %3646  ;;  %v1411_v1 = vsel %vm1283_vm1, %v1379_v6, 0.0  ;;  %v1381_v39 = vmul.f32 %v3645_v48, %v1221_v53  ;;  %3666 = vrcp.f32 %v1328_v56  ;;  %v4930_v25 = vld [vmem:[#allocation2 + $0x128] sm:$0xff]  ;;  %v1452_v3 = vld [vmem:[#allocation12 + $0x50] sm:$0xff]  ;;  %v1234_v47 = vld [vmem:[#allocation2 + $0x100] sm:$0xff] }
 0x237   :  { %3437 = vmatpush3.bf16.msra.mxu0 %v3434_v15  ;;  %v1412_v7 = vsel %vm1284_vm2, %v1380_v36, 0.0  ;;  %v1382_v11 = vmul.f32 %v3647_v32, %v1222_v34  ;;  %v3649_v9 = vpop.eup %3648  ;;  %v4896_v15 = vmul.f32 %v4831_v16, %v1445_v57  ;;  %v1513_v54 = vadd.f32 %v4876_v12, %v1411_v1  ;;  %v1450_v32 = vld [vmem:[#allocation12 + $0x40] sm:$0xff]  ;;  %v1229_v1 = vld [vmem:[#allocation2 + $0xb0] sm:$0xff] }
 0x238   :  { %3439 = vmatprep.subr.bf16.mxu0 %v3438_v14  ;;  %3290 = vmatprep.mubr.f32.mxu0 %v1512_v19  ;;  %v3651_v29 = vpop.eup %3650  ;;  %v1514_v5 = vadd.f32 %v4879_v27, %v1412_v7  ;;  %v1413_v20 = vsel %vm1285_vm3, %v1381_v39, 0.0  ;;  %v1383_v21 = vmul.f32 %v3649_v9, %v1223_v40  ;;  %v4925_v17 = vmul.f32 %v4831_v16, %v1448_v58  ;;  %v4946_v34 = vld [vmem:[#allocation2 + $0x148] sm:$0xff]  ;;  %v1230_v40 = vld [vmem:[#allocation2 + $0xc0] sm:$0xff] }
 0x239   :  { %v3653_v18 = vpop.eup %3652  ;;  %v1414_v43 = vsel %vm1286_vm4, %v1382_v11, 0.0  ;;  %v1384_v22 = vmul.f32 %v3651_v29, %v1224_v26  ;;  %v1515_v37 = vadd.f32 %v4896_v15, %v1413_v20  ;;  %v1330_v48 = vsel %vm1298_vm0, %v4901_v13, 1.0  ;;  %v1454_v56 = vld [vmem:[#allocation12 + $0x60] sm:$0xff] }
 0x23a   :  { %v3655_v51 = vpop.eup %3654  ;;  %v1516_v2 = vadd.f32 %v4906_v60, %v1414_v43  ;;  %v1415_v10 = vsel %vm1287_vm5, %v1383_v21, 0.0  ;;  %v1385_v35 = vmul.f32 %v3653_v18, %v1225_v59  ;;  %vm1299_vm1 = vcmp.gt.f32.partialorder %v4917_v45, 0.0  ;;  %v4968_v18 = vld [vmem:[#allocation2 + $0x158] sm:$0xff] }
 0x23b   :  { %3441 = vmatpush3.bf16.msra.mxu0 %v3438_v14  ;;  %v1447_v14 = vld [vmem:[#allocation12 + $0x28] sm:$0xff]  ;;  %v3657_v19 = vpop.eup %3656  ;;  %v1416_v36 = vsel %vm1288_vm6, %v1384_v22, 0.0  ;;  %v1386_v38 = vmul.f32 %v3655_v51, %v1226_v62  ;;  %v4943_v53 = vmul.f32 %v4831_v16, %v1449_v24  ;;  %3668 = vrcp.f32 %v1329_v49 }
 0x23c   :  { %3443 = vmatprep.subr.bf16.mxu0 %v3442_v46  ;;  %v3659_v6 = vpop.eup %3658  ;;  %vm1300_vm2 = vcmp.gt.f32.partialorder %v4930_v25, 0.0  ;;  %v1387_v61 = vmul.f32 %v3657_v19, %v1227_v31  ;;  %3670 = vrcp.f32 %v1330_v48  ;;  %v1331_v7 = vsel %vm1299_vm1, %v4917_v45, 1.0  ;;  %v4976_v51 = vld [vmem:[#allocation2 + $0x168] sm:$0xff]  ;;  %v4998_v48 = vld [vmem:[#allocation2 + $0x178] sm:$0xff] }
 0x23d   :  { %v3661_v4 = vpop.eup %3660  ;;  %v1518_v11 = vadd.f32 %v4925_v17, %v1416_v36  ;;  %v1417_v28 = vsel %vm1289_vm7, %v1385_v35, 0.0  ;;  %v4956_v9 = vmul.f32 %v4831_v16, %v1450_v32  ;;  %v1418_v29 = vsel %vm1290_vm8, %v1386_v38, 0.0  ;;  %v1455_v31 = vld [vmem:[#allocation12 + $0x68] sm:$0xff]  ;;  %v1456_v38 = vld [vmem:[#allocation12 + $0x70] sm:$0xff] }
 0x23e   :  { %v3663_v39 = vpop.eup %3662  ;;  %v1388_v26 = vmul.f32 %v3659_v6, %v1228_v8  ;;  %vm1302_vm4 = vcmp.gt.f32.partialorder %v4946_v34, 0.0  ;;  %v4966_v0 = vmul.f32 %v4831_v16, %v1451_v41  ;;  %3672 = vrcp.f32 %v1331_v7  ;;  %v5002_v32 = vld [vmem:[#allocation2 + $0x188] sm:$0xff]  ;;  %v5015_v7 = vld [vmem:[#allocation2 + $0x198] sm:$0xff] }
 0x23f   :  { %3445 = vmatpush3.bf16.msra.mxu0 %v3442_v46  ;;  %v4920_v46 = vmul.f32 %v4831_v16, %v1447_v14  ;;  %6193 = vst [vmem:[#allocation40_spill] sm:$0xff] %v4956_v9  ;;  %v1453_v14 = vld [vmem:[#allocation12 + $0x58] sm:$0xff]  ;;  %v3665_v20 = vpop.eup %3664  ;;  %v1519_v44 = vadd.f32 %v4943_v53, %v1417_v28  ;;  %v1419_v43 = vsel %vm1291_vm9, %v1387_v61, 0.0  ;;  %v1390_v21 = vmul.f32 %v3663_v39, %v1230_v40  ;;  %v5023_v40 = vld [vmem:[#allocation2 + $0x1a8] sm:$0xff] }
 0x240   :  { %3447 = vmatprep.subr.bf16.mxu0 %v3446_v33  ;;  %v3667_v22 = vpop.eup %3666  ;;  %v1520_v59 = vadd.f32 %v4956_v9, %v1418_v29  ;;  %v4980_v62 = vmul.f32 %v4831_v16, %v1452_v3  ;;  %v1334_v63 = vsel %vm1302_vm4, %v4946_v34, 1.0  ;;  %v1420_v24 = vsel %vm1292_vm10, %v1388_v26, 0.0 }
 0x241   :  { %v1517_v57 = vadd.f32 %v4920_v46, %v1415_v10  ;;  %v4988_v49 = vmul.f32 %v4831_v16, %v1453_v14  ;;  %v4991_v19 = vmul.f32 %v4831_v16, %v1454_v56  ;;  %vm1303_vm5 = vcmp.gt.f32.partialorder %v4968_v18, 0.0 }
 0x242   :  { %6194 = vst [vmem:[#allocation41_spill] sm:$0xff] %v4980_v62  ;;  %v1521_v10 = vadd.f32 %v4966_v0, %v1419_v43  ;;  %vm1304_vm6 = vcmp.gt.f32.partialorder %v4976_v51, 0.0  ;;  %v1422_v50 = vsel %vm1294_vm12, %v1390_v21, 0.0  ;;  %v1522_v23 = vadd.f32 %v4980_v62, %v1420_v24 }
 0x243   :  { %3449 = vmatpush3.bf16.msra.mxu0 %v3446_v33  ;;  %v4940_v33 = vld [vmem:[#allocation2 + $0x138] sm:$0xff]  ;;  %6195 = vst [vmem:[#allocation42_spill] sm:$0xff] %v4988_v49  ;;  %6196 = vst [vmem:[#allocation43_spill] sm:$0xff] %v4991_v19  ;;  %v5009_v41 = vmul.f32 %v4831_v16, %v1455_v31  ;;  %vm1305_vm7 = vcmp.gt.f32.partialorder %v4998_v48, 0.0  ;;  %v5020_v28 = vmul.f32 %v4831_v16, %v1456_v38  ;;  %vm1306_vm8 = vcmp.gt.f32.partialorder %v5002_v32, 0.0 }
 0x244   :  { %vm1301_vm3 = vcmp.gt.f32.partialorder %v4940_v33, 0.0  ;;  %vm1307_vm9 = vcmp.gt.f32.partialorder %v5015_v7, 0.0  ;;  %v1338_v42 = vsel %vm1306_vm8, %v5002_v32, 1.0  ;;  %vm1308_vm10 = vcmp.gt.f32.partialorder %v5023_v40, 0.0 }
 0x245   :  { %v1333_v58 = vsel %vm1301_vm3, %v4940_v33, 1.0  ;;  %v3669_v8 = vpop.eup %3668  ;;  %6197 = vst [vmem:[#allocation44_spill] sm:$0xff] %v5009_v41  ;;  %6198 = vst [vmem:[#allocation45_spill] sm:$0xff] %v5020_v28  ;;  %v1339_v31 = vsel %vm1307_vm9, %v5015_v7, 1.0  ;;  %v1242_v33 = vld [vmem:[#allocation2 + $0x180] sm:$0xff] }
 0x246   :  { %3291 = vmatmul.mubr.f32.vlgmr.msra.gmra.mrb[0].mxu0 %v1513_v54  ;;  %v1332_v54 = vsel %vm1300_vm2, %v4930_v25, 1.0  ;;  %v3671_v61 = vpop.eup %3670 }
 0x247   :  { %3293 = vmatprep.mubr.f32.mxu0 %v1514_v5  ;;  %v1389_v5 = vmul.f32 %v3661_v4, %v1229_v1  ;;  %3674 = vrcp.f32 %v1332_v54  ;;  %v1233_v4 = vld [vmem:[#allocation2 + $0xf0] sm:$0xff]  ;;  %v1336_v1 = vsel %vm1304_vm6, %v4976_v51, 1.0  ;;  %v1457_v54 = vld [vmem:[#allocation12 + $0x78] sm:$0xff]  ;;  %v1394_v56 = vmul.f32 %v3671_v61, %v1234_v47 }
 0x248   :  { %3676 = vrcp.f32 %v1333_v58  ;;  %v1393_v3 = vmul.f32 %v3669_v8, %v1233_v4  ;;  %v3673_v14 = vpop.eup %3672  ;;  %v1237_v8 = vld [vmem:[#allocation2 + $0x130] sm:$0xff]  ;;  %v5061_v4 = vld [vmem:[#allocation2 + $0x1d8] sm:$0xff] }
 0x249   :  { %v1421_v35 = vsel %vm1293_vm11, %v1389_v5, 0.0  ;;  %3678 = vrcp.f32 %v1334_v63  ;;  %v1458_v5 = vld [vmem:[#allocation12 + $0x80] sm:$0xff]  ;;  %vm1309_vm11 = vcmp.gt.f32.partialorder %v5037_v30, 0.0 }
 0x24a   :  { %3294 = vmatmul.mubr.f32.gmra.mrb[2].mxu0 %v1515_v37  ;;  %v1231_v37 = vld [vmem:[#allocation2 + $0xd0] sm:$0xff]  ;;  %v1523_v39 = vadd.f32 %v4988_v49, %v1421_v35  ;;  %v1425_v63 = vsel %vm1297_vm15, %v1393_v3, 0.0 }
 0x24b   :  { %3296 = vmatprep.mubr.f32.mxu0 %v1516_v2  ;;  %v1232_v2 = vld [vmem:[#allocation2 + $0xe0] sm:$0xff]  ;;  %v1391_v6 = vmul.f32 %v3665_v20, %v1231_v37  ;;  %v1235_v20 = vld [vmem:[#allocation2 + $0x110] sm:$0xff] }
 0x24c   :  { %v1392_v36 = vmul.f32 %v3667_v22, %v1232_v2  ;;  %v5042_v22 = vmul.f32 %v4831_v16, %v1457_v54  ;;  %v1236_v37 = vld [vmem:[#allocation2 + $0x120] sm:$0xff]  ;;  %v5047_v2 = vld [vmem:[#allocation2 + $0x1c8] sm:$0xff]  ;;  %v1395_v24 = vmul.f32 %v3673_v14, %v1235_v20  ;;  %v1460_v35 = vld [vmem:[#allocation12 + $0x90] sm:$0xff] }
 0x24d   :  { %v1423_v29 = vsel %vm1295_vm13, %v1391_v6, 0.0  ;;  %v1426_v6 = vsel %vm1298_vm0, %v1394_v56, 0.0  ;;  %vm1310_vm12 = vcmp.gt.f32.partialorder %v5047_v2, 0.0  ;;  %v5068_v61 = vmul.f32 %v4831_v16, %v1460_v35  ;;  %v1462_v54 = vld [vmem:[#allocation12 + $0xa0] sm:$0xff]  ;;  %v1239_v56 = vld [vmem:[#allocation2 + $0x150] sm:$0xff] }
 0x24e   :  { %3297 = vmatmul.mubr.f32.gmra.mrb[4].mxu0 %v1517_v57  ;;  %v1335_v57 = vsel %vm1303_vm5, %v4968_v18, 1.0  ;;  %v1424_v26 = vsel %vm1296_vm14, %v1392_v36, 0.0  ;;  %v1525_v21 = vadd.f32 %v5009_v41, %v1423_v29  ;;  %6199 = vst [vmem:[#allocation46_spill] sm:$0xff] %v5042_v22  ;;  %v1340_v36 = vsel %vm1308_vm10, %v5023_v40, 1.0  ;;  %v5076_v29 = vld [vmem:[#allocation2 + $0x1e8] sm:$0xff] }
 0x24f   :  { %3299 = vmatprep.mubr.f32.mxu0 %v1518_v11  ;;  %v1524_v11 = vadd.f32 %v4991_v19, %v1422_v50  ;;  %3680 = vrcp.f32 %v1335_v57  ;;  %v1526_v58 = vadd.f32 %v5020_v28, %v1424_v26  ;;  %v1527_v57 = vadd.f32 %v5042_v22, %v1425_v63  ;;  %6202 = vst [vmem:[#allocation49_spill] sm:$0xff] %v5068_v61 }
 0x250   :  { %3682 = vrcp.f32 %v1336_v1  ;;  %v1427_v1 = vsel %vm1299_vm1, %v1395_v24, 0.0  ;;  %vm1311_vm13 = vcmp.gt.f32.partialorder %v5061_v4, 0.0  ;;  %vm1312_vm14 = vcmp.gt.f32.partialorder %v5076_v29, 0.0 }
 0x251   :  { %v3675_v43 = vpop.eup %3674  ;;  %v1343_v25 = vsel %vm1311_vm13, %v5061_v4, 1.0 }
 0x252   :  { %3300 = vmatmul.mubr.f32.gmra.mrb[6].mxu0 %v1519_v44  ;;  %v1337_v44 = vsel %vm1305_vm7, %v4998_v48, 1.0  ;;  %v3677_v50 = vpop.eup %3676  ;;  %v1396_v38 = vmul.f32 %v3675_v43, %v1236_v37  ;;  %v5088_v43 = vld [vmem:[#allocation2 + $0x1f8] sm:$0xff]  ;;  %v1463_v37 = vld [vmem:[#allocation12 + $0xa8] sm:$0xff] }
 0x253   :  { %3302 = vmatprep.mubr.f32.mxu0 %v1520_v59  ;;  %v5045_v59 = vmul.f32 %v4831_v16, %v1458_v5  ;;  %3684 = vrcp.f32 %v1337_v44  ;;  %v3679_v55 = vpop.eup %3678  ;;  %v1397_v26 = vmul.f32 %v3677_v50, %v1237_v8  ;;  %v1342_v5 = vsel %vm1310_vm12, %v5047_v2, 1.0 }
 0x254   :  { %3686 = vrcp.f32 %v1338_v42  ;;  %v1428_v14 = vsel %vm1300_vm2, %v1396_v38, 0.0  ;;  %v1240_v42 = vld [vmem:[#allocation2 + $0x160] sm:$0xff]  ;;  %vm1313_vm15 = vcmp.gt.f32.partialorder %v5088_v43, 0.0  ;;  %v5107_v8 = vmul.f32 %v4831_v16, %v1463_v37 }
 0x255   :  { %6200 = vst [vmem:[#allocation47_spill] sm:$0xff] %v5045_v59  ;;  %3688 = vrcp.f32 %v1339_v31  ;;  %v1528_v47 = vadd.f32 %v5045_v59, %v1426_v6  ;;  %v1530_v63 = vadd.f32 %v5068_v61, %v1428_v14  ;;  %v1429_v24 = vsel %vm1301_vm3, %v1397_v26, 0.0  ;;  %v1464_v31 = vld [vmem:[#allocation12 + $0xb0] sm:$0xff] }
 0x256   :  { %3303 = vmatmul.mubr.f32.gmra.mrb[8].mxu0 %v1521_v10  ;;  %v1459_v10 = vld [vmem:[#allocation12 + $0x88] sm:$0xff]  ;;  %3690 = vrcp.f32 %v1340_v36  ;;  %6205 = vst [vmem:[#allocation52_spill] sm:$0xff] %v5107_v8  ;;  %v1345_v26 = vsel %vm1313_vm15, %v5088_v43, 1.0 }
 0x257   :  { %3305 = vmatprep.mubr.f32.mxu0 %v1522_v23  ;;  %v1238_v23 = vld [vmem:[#allocation2 + $0x140] sm:$0xff]  ;;  %v5065_v13 = vmul.f32 %v4831_v16, %v1459_v10  ;;  %v1241_v36 = vld [vmem:[#allocation2 + $0x170] sm:$0xff] }
 0x258   :  { %v1398_v3 = vmul.f32 %v3679_v55, %v1238_v23  ;;  %v1344_v55 = vsel %vm1312_vm14, %v5076_v29, 1.0  ;;  %v1243_v14 = vld [vmem:[#allocation2 + $0x190] sm:$0xff]  ;;  %v5180_v29 = vld [vmem:[%s6103_s7] ss:$0 sm:$0xff] }
 0x259   :  { %6201 = vst [vmem:[#allocation48_spill] sm:$0xff] %v5065_v13  ;;  %v3681_v45 = vpop.eup %3680 }
 0x25a   :  { %3306 = vmatmul.mubr.f32.gmra.mrb[10].mxu0 %v1523_v39  ;;  %v1461_v39 = vld [vmem:[#allocation12 + $0x98] sm:$0xff]  ;;  %v3683_v20 = vpop.eup %3682  ;;  %v1430_v10 = vsel %vm1302_vm4, %v1398_v3, 0.0  ;;  %v1399_v35 = vmul.f32 %v3681_v45, %v1239_v56  ;;  %v1466_v45 = vld [vmem:[#allocation12 + $0xc0] sm:$0xff] }
 0x25b   :  { %3308 = vmatprep.mubr.f32.mxu0 %v1524_v11  ;;  %v1341_v11 = vsel %vm1309_vm11, %v5037_v30, 1.0  ;;  %v5085_v44 = vmul.f32 %v4831_v16, %v1461_v39  ;;  %v1400_v6 = vmul.f32 %v3683_v20, %v1240_v42  ;;  %v1244_v56 = vld [vmem:[#allocation2 + $0x1a0] sm:$0xff]  ;;  %v5129_v51 = vmul.f32 %v4831_v16, %v1466_v45 }
 0x25c   :  { %3692 = vrcp.f32 %v1341_v11  ;;  %v1465_v11 = vld [vmem:[#allocation12 + $0xb8] sm:$0xff] }
 0x25d   :  { %6203 = vst [vmem:[#allocation50_spill] sm:$0xff] %v5085_v44  ;;  %3694 = vrcp.f32 %v1342_v5  ;;  %v3685_v50 = vpop.eup %3684  ;;  %v1531_v34 = vadd.f32 %v5085_v44, %v1429_v24  ;;  %v5123_v18 = vmul.f32 %v4831_v16, %v1465_v11  ;;  %6208 = vst [vmem:[#allocation55_spill] sm:$0xff] %v5129_v51  ;;  %v1247_v11 = vld [vmem:[#allocation2 + $0x1d0] sm:$0xff] }
 0x25e   :  { %3309 = vmatmul.mubr.f32.gmra.mrb[12].mxu0 %v1525_v21  ;;  %v1529_v21 = vadd.f32 %v5065_v13, %v1427_v1  ;;  %v3687_v38 = vpop.eup %3686  ;;  %3696 = vrcp.f32 %v1343_v25  ;;  %v1431_v1 = vsel %vm1303_vm5, %v1399_v35, 0.0  ;;  %v1401_v39 = vmul.f32 %v3685_v50, %v1241_v36  ;;  %v1245_v50 = vld [vmem:[#allocation2 + $0x1b0] sm:$0xff] }
 0x25f   :  { %3311 = vmatprep.mubr.f32.mxu0 %v1526_v58  ;;  %v5092_v58 = vmul.f32 %v4831_v16, %v1462_v54  ;;  %3698 = vrcp.f32 %v1344_v55  ;;  %v1432_v54 = vsel %vm1304_vm6, %v1400_v6, 0.0  ;;  %v1402_v5 = vmul.f32 %v3687_v38, %v1242_v33  ;;  %6207 = vst [vmem:[#allocation54_spill] sm:$0xff] %v5123_v18  ;;  %v1246_v6 = vld [vmem:[#allocation2 + $0x1c0] sm:$0xff] }
 0x260   :  { %v1533_v20 = vadd.f32 %v5107_v8, %v1431_v1  ;;  %3700 = vrcp.f32 %v1345_v26  ;;  %v1433_v37 = vsel %vm1305_vm7, %v1401_v39, 0.0  ;;  %v1470_v39 = vld [vmem:[#allocation12 + $0xe0] sm:$0xff] }
 0x261   :  { %6204 = vst [vmem:[#allocation51_spill] sm:$0xff] %v5092_v58  ;;  %v1532_v23 = vadd.f32 %v5092_v58, %v1430_v10  ;;  %v1434_v10 = vsel %vm1306_vm8, %v1402_v5, 0.0  ;;  %v1535_v36 = vadd.f32 %v5123_v18, %v1433_v37  ;;  %v5153_v40 = vmul.f32 %v4831_v16, %v1470_v39  ;;  %v1472_v37 = vld [vmem:[#allocation12 + $0xf0] sm:$0xff] }
 0x262   :  { %3312 = vmatmul.mubr.f32.gmra.mrb[14].mxu0 %v1527_v57  ;;  %v5112_v57 = vmul.f32 %v4831_v16, %v1464_v31  ;;  %v1468_v31 = vld [vmem:[#allocation12 + $0xd0] sm:$0xff]  ;;  %v1536_v48 = vadd.f32 %v5129_v51, %v1434_v10  ;;  %v6216_v58 = vmov 0.0  }
 0x263   :  { %3314 = vmatprep.mubr.f32.mxu0 %v1528_v47  ;;  %v3689_v47 = vpop.eup %3688  ;;  %v5141_v33 = vmul.f32 %v4831_v16, %v1468_v31  ;;  %6212 = vst [vmem:[#allocation59_spill] sm:$0xff] %v5153_v40  ;;  %v1473_v31 = vld [vmem:[#allocation12 + $0xf8] sm:$0xff]  ;;  %v2293_v51 = vld [vmem:[#allocation15 + $0x10] sm:$0xff] }
 0x264   :  { %6206 = vst [vmem:[#allocation53_spill] sm:$0xff] %v5112_v57  ;;  %v3691_v3 = vpop.eup %3690  ;;  %v1403_v25 = vmul.f32 %v3689_v47, %v1243_v14 }
 0x265   :  { %v1404_v35 = vmul.f32 %v3691_v3, %v1244_v56  ;;  %6210 = vst [vmem:[#allocation57_spill] sm:$0xff] %v5141_v33  ;;  %v1248_v3 = vld [vmem:[#allocation2 + $0x1e0] sm:$0xff]  ;;  %v1471_v56 = vld [vmem:[#allocation12 + $0xe8] sm:$0xff] }
 0x266   :  { %3315 = vmatmul.mubr.f32.gmra.mrb[16].mxu0 %v1529_v21  ;;  %v3693_v42 = vpop.eup %3692  ;;  %v1534_v21 = vadd.f32 %v5112_v57, %v1432_v54  ;;  %v1435_v38 = vsel %vm1307_vm9, %v1403_v25, 0.0  ;;  %v1249_v25 = vld [vmem:[#allocation2 + $0x1f0] sm:$0xff]  ;;  %v2294_v57 = vld [vmem:[#allocation15 + $0x18] sm:$0xff] }
 0x267   :  { %3317 = vmatprep.mubr.f32.mxu0 %v1530_v63  ;;  %v1467_v63 = vld [vmem:[#allocation12 + $0xc8] sm:$0xff]  ;;  %v3695_v24 = vpop.eup %3694  ;;  %v1405_v32 = vmul.f32 %v3693_v42, %v1245_v50  ;;  %v1436_v47 = vsel %vm1308_vm10, %v1404_v35, 0.0  ;;  %v5165_v35 = vmul.f32 %v4831_v16, %v1472_v37 }
 0x268   :  { %v5135_v55 = vmul.f32 %v4831_v16, %v1467_v63  ;;  %v1406_v1 = vmul.f32 %v3695_v24, %v1246_v6  ;;  %v1538_v5 = vadd.f32 %v5141_v33, %v1436_v47  ;;  %v5159_v24 = vmul.f32 %v4831_v16, %v1471_v56 }
 0x269   :  { %v1437_v45 = vsel %vm1309_vm11, %v1405_v32, 0.0  ;;  %6214 = vst [vmem:[#allocation61_spill] sm:$0xff] %v5165_v35 }
 0x26a   :  { %3318 = vmatmul.mubr.f32.gmra.mrb[18].mxu0 %v1531_v34  ;;  %6209 = vst [vmem:[#allocation56_spill] sm:$0xff] %v5135_v55  ;;  %v1469_v34 = vld [vmem:[#allocation12 + $0xd8] sm:$0xff]  ;;  %v1537_v54 = vadd.f32 %v5135_v55, %v1435_v38  ;;  %v1438_v42 = vsel %vm1310_vm12, %v1406_v1, 0.0  ;;  %6213 = vst [vmem:[#allocation60_spill] sm:$0xff] %v5159_v24 }
 0x26b   :  { %3320 = vmatprep.mubr.f32.mxu0 %v1532_v23  ;;  %v3697_v23 = vpop.eup %3696  ;;  %v5147_v7 = vmul.f32 %v4831_v16, %v1469_v34  ;;  %v1540_v30 = vadd.f32 %v5153_v40, %v1438_v42 }
 0x26c   :  { %v3699_v26 = vpop.eup %3698  ;;  %v1407_v14 = vmul.f32 %v3697_v23, %v1247_v11 }
 0x26d   :  { %6211 = vst [vmem:[#allocation58_spill] sm:$0xff] %v5147_v7  ;;  %v1539_v63 = vadd.f32 %v5147_v7, %v1437_v45 }
 0x26e   :  { %3321 = vmatmul.mubr.f32.gmra.mrb[20].mxu0 %v1533_v20  ;;  %v3701_v20 = vpop.eup %3700  ;;  %v1439_v10 = vsel %vm1311_vm13, %v1407_v14, 0.0 }
 0x26f   :  { %3323 = vmatprep.mubr.f32.mxu0 %v1534_v21  ;;  %v1408_v21 = vmul.f32 %v3699_v26, %v1248_v3  ;;  %v1409_v2 = vmul.f32 %v3701_v20, %v1249_v25  ;;  %v1541_v6 = vadd.f32 %v5159_v24, %v1439_v10 }
 0x271   :  { %v1440_v50 = vsel %vm1312_vm14, %v1408_v21, 0.0  ;;  %v1441_v4 = vsel %vm1313_vm15, %v1409_v2, 0.0 }
 0x272   :  { %3324 = vmatmul.mubr.f32.gmra.mrb[22].mxu0 %v1535_v36  ;;  %v5171_v36 = vmul.f32 %v4831_v16, %v1473_v31 }
 0x273   :  { %3326 = vmatprep.mubr.f32.mxu0 %v1536_v48  ;;  %v1542_v48 = vadd.f32 %v5165_v35, %v1440_v50 }
 0x274   :  { %6215 = vst [vmem:[#allocation62_spill] sm:$0xff] %v5171_v36  ;;  %v1543_v38 = vadd.f32 %v5171_v36, %v1441_v4 }
 0x276   :  { %3327 = vmatmul.mubr.f32.gmra.mrb[24].mxu0 %v1537_v54 }
 0x277   :  { %3329 = vmatprep.mubr.f32.mxu0 %v1538_v5 }
 0x27a   :  { %3330 = vmatmul.mubr.f32.gmra.mrb[26].mxu0 %v1539_v63 }
 0x27b   :  { %3332 = vmatprep.mubr.f32.mxu0 %v1540_v30 }
 0x27e   :  { %3333 = vmatmul.mubr.f32.gmra.mrb[28].mxu0 %v1541_v6 }
 0x27f   :  { %3335 = vmatprep.mubr.f32.mxu0 %v1542_v48 }
 0x282   :  { %3336 = vmatmul.mubr.f32.gmra.mrb[30].mxu0 %v1543_v38 }
 0x319   :  { %v3292_v32 = vpop.f32.mrb[0].mxu0 }
 0x31a   :  { %v1633_v34 = vpop.f32.mrb[1].mxu0  ;;  %v5187_v47 = vadd.f32 %v3292_v32, %v5180_v29 }
 0x31b   :  { %v5183_v16 = vadd.f32 %v5180_v29, %v1633_v34 }
 0x31d   :  { %v3295_v23 = vpop.f32.mrb[2].mxu0  ;;  %1797 = vadd.xlane.f32.xlu0 %v5183_v16 }
 0x31e   :  { %v1643_v43 = vpop.f32.mrb[3].mxu0  ;;  %v5195_v26 = vadd.f32 %v3295_v23, %v5180_v29 }
 0x31f   :  { %v5190_v1 = vadd.f32 %v5180_v29, %v1643_v43 }
 0x321   :  { %v3298_v39 = vpop.f32.mrb[4].mxu0  ;;  %1801 = vadd.xlane.f32.xlu1 %v5190_v1  ;;  %1799 = vadd.xlane.f32.xlu0 %v5187_v47 }
 0x322   :  { %v1653_v11 = vpop.f32.mrb[5].mxu0  ;;  %v5203_v45 = vadd.f32 %v3298_v39, %v5180_v29 }
 0x323   :  { %v5198_v3 = vadd.f32 %v5180_v29, %v1653_v11 }
 0x325   :  { %v3301_v54 = vpop.f32.mrb[6].mxu0  ;;  %1803 = vadd.xlane.f32.xlu1 %v5195_v26  ;;  %1805 = vadd.xlane.f32.xlu0 %v5198_v3 }
 0x326   :  { %v1663_v5 = vpop.f32.mrb[7].mxu0  ;;  %v5211_v42 = vadd.f32 %v3301_v54, %v5180_v29 }
 0x327   :  { %v5206_v14 = vadd.f32 %v5180_v29, %v1663_v5 }
 0x329   :  { %v3304_v56 = vpop.f32.mrb[8].mxu0  ;;  %1807 = vadd.xlane.f32.xlu1 %v5203_v45  ;;  %1809 = vadd.xlane.f32.xlu0 %v5206_v14 }
 0x32a   :  { %v1673_v20 = vpop.f32.mrb[9].mxu0  ;;  %v5219_v63 = vadd.f32 %v3304_v56, %v5180_v29 }
 0x32b   :  { %v5214_v21 = vadd.f32 %v5180_v29, %v1673_v20 }
 0x32d   :  { %v3307_v37 = vpop.f32.mrb[10].mxu0  ;;  %1811 = vadd.xlane.f32.xlu1 %v5211_v42  ;;  %1813 = vadd.xlane.f32.xlu0 %v5214_v21 }
 0x32e   :  { %v1683_v25 = vpop.f32.mrb[11].mxu0  ;;  %v5227_v31 = vadd.f32 %v3307_v37, %v5180_v29 }
 0x32f   :  { %v5222_v30 = vadd.f32 %v5180_v29, %v1683_v25 }
 0x331   :  { %v3310_v10 = vpop.f32.mrb[12].mxu0  ;;  %1815 = vadd.xlane.f32.xlu1 %v5219_v63  ;;  %1817 = vadd.xlane.f32.xlu0 %v5222_v30 }
 0x332   :  { %v1693_v2 = vpop.f32.mrb[13].mxu0  ;;  %v5235_v4 = vadd.f32 %v3310_v10, %v5180_v29 }
 0x333   :  { %v5230_v50 = vadd.f32 %v5180_v29, %v1693_v2 }
 0x335   :  { %v3313_v6 = vpop.f32.mrb[14].mxu0  ;;  %1819 = vadd.xlane.f32.xlu1 %v5227_v31  ;;  %1821 = vadd.xlane.f32.xlu0 %v5230_v50 }
 0x336   :  { %v1703_v48 = vpop.f32.mrb[15].mxu0  ;;  %v5243_v23 = vadd.f32 %v3313_v6, %v5180_v29 }
 0x337   :  { %v5238_v38 = vadd.f32 %v5180_v29, %v1703_v48 }
 0x339   :  { %v3316_v32 = vpop.f32.mrb[16].mxu0  ;;  %1823 = vadd.xlane.f32.xlu1 %v5235_v4  ;;  %1825 = vadd.xlane.f32.xlu0 %v5238_v38 }
 0x33a   :  { %v1713_v34 = vpop.f32.mrb[17].mxu0  ;;  %v5251_v54 = vadd.f32 %v3316_v32, %v5180_v29 }
 0x33b   :  { %v5246_v43 = vadd.f32 %v5180_v29, %v1713_v34 }
 0x33d   :  { %v3319_v39 = vpop.f32.mrb[18].mxu0  ;;  %1827 = vadd.xlane.f32.xlu1 %v5243_v23  ;;  %1829 = vadd.xlane.f32.xlu0 %v5246_v43 }
 0x33e   :  { %v1723_v11 = vpop.f32.mrb[19].mxu0  ;;  %v5259_v37 = vadd.f32 %v3319_v39, %v5180_v29 }
 0x33f   :  { %v5254_v5 = vadd.f32 %v5180_v29, %v1723_v11 }
 0x341   :  { %v3322_v56 = vpop.f32.mrb[20].mxu0  ;;  %1831 = vadd.xlane.f32.xlu1 %v5251_v54  ;;  %1833 = vadd.xlane.f32.xlu0 %v5254_v5 }
 0x342   :  { %v1733_v20 = vpop.f32.mrb[21].mxu0  ;;  %v5267_v6 = vadd.f32 %v3322_v56, %v5180_v29 }
 0x343   :  { %v5262_v25 = vadd.f32 %v5180_v29, %v1733_v20 }
 0x345   :  { %v3325_v10 = vpop.f32.mrb[22].mxu0  ;;  %1835 = vadd.xlane.f32.xlu1 %v5259_v37  ;;  %1837 = vadd.xlane.f32.xlu0 %v5262_v25 }
 0x346   :  { %v1743_v2 = vpop.f32.mrb[23].mxu0  ;;  %v5275_v39 = vadd.f32 %v3325_v10, %v5180_v29 }
 0x347   :  { %v5270_v48 = vadd.f32 %v5180_v29, %v1743_v2 }
 0x349   :  { %v3328_v32 = vpop.f32.mrb[24].mxu0  ;;  %1839 = vadd.xlane.f32.xlu1 %v5267_v6  ;;  %1841 = vadd.xlane.f32.xlu0 %v5270_v48 }
 0x34a   :  { %v1753_v34 = vpop.f32.mrb[25].mxu0  ;;  %v5283_v2 = vadd.f32 %v3328_v32, %v5180_v29 }
 0x34b   :  { %v5278_v11 = vadd.f32 %v5180_v29, %v1753_v34 }
 0x34d   :  { %v3331_v20 = vpop.f32.mrb[26].mxu0  ;;  %1843 = vadd.xlane.f32.xlu1 %v5275_v39  ;;  %1845 = vadd.xlane.f32.xlu0 %v5278_v11 }
 0x34e   :  { %v1763_v56 = vpop.f32.mrb[27].mxu0  ;;  %v5291_v34 = vadd.f32 %v3331_v20, %v5180_v29  ;;  %v2291_v20 = vld [vmem:[#allocation15] sm:$0xff] }
 0x34f   :  { %v5286_v35 = vadd.f32 %v5180_v29, %v1763_v56 }
 0x351   :  { %v3334_v36 = vpop.f32.mrb[28].mxu0  ;;  %1847 = vadd.xlane.f32.xlu1 %v5283_v2  ;;  %1849 = vadd.xlane.f32.xlu0 %v5286_v35 }
 0x352   :  { %v1773_v10 = vpop.f32.mrb[29].mxu0  ;;  %v5302_v33 = vadd.f32 %v3334_v36, %v5180_v29  ;;  %v1792_v36 = vlaneseq }
 0x353   :  { %v5294_v40 = vadd.f32 %v5180_v29, %v1773_v10  ;;  %v2292_v10 = vld [vmem:[#allocation15 + $0x8] sm:$0xff] }
 0x354   :  { %v3450_v55 = vpack.c.bf16 %v2292_v10, %v2291_v20  ;;  %v5310_v18 = vand.u32 127, %v1792_v36 }
 0x355   :  { %v3337_v24 = vpop.f32.mrb[30].mxu0  ;;  %1851 = vadd.xlane.f32.xlu1 %v5291_v34  ;;  %1853 = vadd.xlane.f32.xlu0 %v5294_v40 }
 0x356   :  { %v5299_v32 = vadd.f32 %v3337_v24, %v5180_v29  ;;  %v1783_v56 = vpop.f32.mrb[31].mxu0  ;;  %v3454_v24 = vpack.c.bf16 %v2294_v57, %v2293_v51  ;;  %3451 = vmatprep.subr.bf16.mxu1 %v3450_v55  ;;  %vm1794_vm0 = vcmp.lt.s32.totalorder %v5310_v18, 64  ;;  %vm2539_vm1 = vcmp.lt.s32.totalorder %v5310_v18, 32 }
 0x357   :  { %v5305_v7 = vadd.f32 %v5180_v29, %v1783_v56  ;;  %3453 = vmatpush3.bf16.msra.mxu1 %v3450_v55  ;;  %v5314_v8 = vsel %vm1794_vm0, 1.0, %v6216_v58 }
 0x358   :  { %3455 = vmatprep.subr.bf16.mxu1 %v3454_v24 }
 0x359   :  { %1855 = vadd.xlane.f32.xlu1 %v5302_v33  ;;  %1857 = vadd.xlane.f32.xlu0 %v5305_v7 }
 0x35b   :  { %3457 = vmatpush3.bf16.msra.mxu1 %v3454_v24 }
 0x35d   :  { %1859 = vadd.xlane.f32.xlu1 %v5299_v32 }
 0x3aa   :  { %v1798_v29 = vpop.xlane.xlu0 %1797 }
 0x3ab   :  { %v1861_v56 = vmul.f32 0.015625, %v1798_v29 }
 0x3ad   :  { %v1893_v61 = vsub.f32 %v5183_v16, %v1861_v56 }
 0x3ae   :  { %v1802_v44 = vpop.xlane.xlu1 %1801  ;;  %v1800_v20 = vpop.xlane.xlu0 %1799 }
 0x3af   :  { %v1863_v10 = vmul.f32 0.015625, %v1802_v44  ;;  %v1862_v57 = vmul.f32 0.015625, %v1800_v20  ;;  %v5318_v51 = vmul.f32 %v5314_v8, %v1893_v61 }
 0x3b1   :  { %v1895_v55 = vsub.f32 %v5190_v1, %v1863_v10  ;;  %v1894_v24 = vsub.f32 %v5187_v47, %v1862_v57  ;;  %v1957_v36 = vmul.f32 %v5318_v51, %v5318_v51 }
 0x3b2   :  { %v1804_v29 = vpop.xlane.xlu1 %1803  ;;  %v1806_v59 = vpop.xlane.xlu0 %1805 }
 0x3b3   :  { %v1864_v13 = vmul.f32 0.015625, %v1804_v29  ;;  %v1865_v28 = vmul.f32 0.015625, %v1806_v59  ;;  %1989 = vadd.xlane.f32.xlu0 %v1957_v36  ;;  %v5325_v16 = vmul.f32 %v5314_v8, %v1895_v55  ;;  %v5328_v44 = vmul.f32 %v5314_v8, %v1894_v24 }
 0x3b5   :  { %v1896_v61 = vsub.f32 %v5195_v26, %v1864_v13  ;;  %v1897_v1 = vsub.f32 %v5198_v3, %v1865_v28  ;;  %v1959_v47 = vmul.f32 %v5325_v16, %v5325_v16  ;;  %v1958_v56 = vmul.f32 %v5328_v44, %v5328_v44 }
 0x3b6   :  { %v1808_v20 = vpop.xlane.xlu1 %1807  ;;  %v1810_v10 = vpop.xlane.xlu0 %1809 }
 0x3b7   :  { %v1866_v59 = vmul.f32 0.015625, %v1808_v20  ;;  %v1867_v57 = vmul.f32 0.015625, %v1810_v10  ;;  %1993 = vadd.xlane.f32.xlu0 %v1959_v47  ;;  %1991 = vadd.xlane.f32.xlu1 %v1958_v56  ;;  %v5337_v55 = vmul.f32 %v5314_v8, %v1896_v61  ;;  %v5340_v24 = vmul.f32 %v5314_v8, %v1897_v1 }
 0x3b9   :  { %v1898_v28 = vsub.f32 %v5203_v45, %v1866_v59  ;;  %v1899_v13 = vsub.f32 %v5206_v14, %v1867_v57  ;;  %v1960_v26 = vmul.f32 %v5337_v55, %v5337_v55  ;;  %v1961_v3 = vmul.f32 %v5340_v24, %v5340_v24 }
 0x3ba   :  { %v1812_v36 = vpop.xlane.xlu1 %1811  ;;  %v1814_v29 = vpop.xlane.xlu0 %1813 }
 0x3bb   :  { %v1868_v47 = vmul.f32 0.015625, %v1812_v36  ;;  %v1869_v56 = vmul.f32 0.015625, %v1814_v29  ;;  %1995 = vadd.xlane.f32.xlu1 %v1960_v26  ;;  %1997 = vadd.xlane.f32.xlu0 %v1961_v3  ;;  %v5349_v61 = vmul.f32 %v5314_v8, %v1898_v28  ;;  %v5352_v1 = vmul.f32 %v5314_v8, %v1899_v13 }
 0x3bd   :  { %v1900_v45 = vsub.f32 %v5211_v42, %v1868_v47  ;;  %v1901_v14 = vsub.f32 %v5214_v21, %v1869_v56  ;;  %v1962_v20 = vmul.f32 %v5349_v61, %v5349_v61  ;;  %v1963_v10 = vmul.f32 %v5352_v1, %v5352_v1  ;;  %v2295_v47 = vld [vmem:[#allocation15 + $0x20] sm:$0xff]  ;;  %v2296_v56 = vld [vmem:[#allocation15 + $0x28] sm:$0xff] }
 0x3be   :  { %v1816_v59 = vpop.xlane.xlu1 %1815  ;;  %v1818_v57 = vpop.xlane.xlu0 %1817 }
 0x3bf   :  { %v1870_v26 = vmul.f32 0.015625, %v1816_v59  ;;  %v1871_v3 = vmul.f32 0.015625, %v1818_v57  ;;  %1999 = vadd.xlane.f32.xlu1 %v1962_v20  ;;  %2001 = vadd.xlane.f32.xlu0 %v1963_v10  ;;  %v5361_v28 = vmul.f32 %v5314_v8, %v1900_v45  ;;  %v5364_v13 = vmul.f32 %v5314_v8, %v1901_v14 }
 0x3c0   :  { %v3458_v59 = vpack.c.bf16 %v2296_v56, %v2295_v47  ;;  %v2297_v56 = vld [vmem:[#allocation15 + $0x30] sm:$0xff] }
 0x3c1   :  { %v1902_v42 = vsub.f32 %v5219_v63, %v1870_v26  ;;  %v1903_v21 = vsub.f32 %v5222_v30, %v1871_v3  ;;  %v1964_v36 = vmul.f32 %v5361_v28, %v5361_v28  ;;  %v1965_v29 = vmul.f32 %v5364_v13, %v5364_v13 }
 0x3c2   :  { %v1820_v20 = vpop.xlane.xlu1 %1819  ;;  %v1822_v10 = vpop.xlane.xlu0 %1821  ;;  %3459 = vmatprep.subr.bf16.mxu1 %v3458_v59 }
 0x3c3   :  { %v1872_v45 = vmul.f32 0.015625, %v1820_v20  ;;  %v1873_v57 = vmul.f32 0.015625, %v1822_v10  ;;  %2003 = vadd.xlane.f32.xlu1 %v1964_v36  ;;  %2005 = vadd.xlane.f32.xlu0 %v1965_v29  ;;  %v5373_v14 = vmul.f32 %v5314_v8, %v1902_v42  ;;  %v5376_v63 = vmul.f32 %v5314_v8, %v1903_v21  ;;  %v2298_v42 = vld [vmem:[#allocation15 + $0x38] sm:$0xff] }
 0x3c4   :  { %3461 = vmatpush3.bf16.msra.mxu1 %v3458_v59 }
 0x3c5   :  { %v1904_v30 = vsub.f32 %v5227_v31, %v1872_v45  ;;  %v1905_v26 = vsub.f32 %v5230_v50, %v1873_v57  ;;  %v1966_v3 = vmul.f32 %v5373_v14, %v5373_v14  ;;  %v1967_v47 = vmul.f32 %v5376_v63, %v5376_v63 }
 0x3c6   :  { %v1824_v36 = vpop.xlane.xlu1 %1823  ;;  %v1826_v29 = vpop.xlane.xlu0 %1825  ;;  %v3462_v50 = vpack.c.bf16 %v2298_v42, %v2297_v56 }
 0x3c7   :  { %v1874_v20 = vmul.f32 0.015625, %v1824_v36  ;;  %v1875_v10 = vmul.f32 0.015625, %v1826_v29  ;;  %2007 = vadd.xlane.f32.xlu1 %v1966_v3  ;;  %2009 = vadd.xlane.f32.xlu0 %v1967_v47  ;;  %v5385_v21 = vmul.f32 %v5314_v8, %v1904_v30  ;;  %v5388_v31 = vmul.f32 %v5314_v8, %v1905_v26  ;;  %v2299_v47 = vld [vmem:[#allocation15 + $0x40] sm:$0xff]  ;;  %v2300_v30 = vld [vmem:[#allocation15 + $0x48] sm:$0xff] }
 0x3c8   :  { %3463 = vmatprep.subr.bf16.mxu1 %v3462_v50 }
 0x3c9   :  { %v1906_v45 = vsub.f32 %v5235_v4, %v1874_v20  ;;  %v1907_v57 = vsub.f32 %v5238_v38, %v1875_v10  ;;  %v1968_v59 = vmul.f32 %v5385_v21, %v5385_v21  ;;  %v1969_v36 = vmul.f32 %v5388_v31, %v5388_v31  ;;  %3465 = vmatpush3.bf16.msra.mxu1 %v3462_v50 }
 0x3ca   :  { %v1828_v29 = vpop.xlane.xlu1 %1827  ;;  %v1830_v3 = vpop.xlane.xlu0 %1829  ;;  %v3466_v38 = vpack.c.bf16 %v2300_v30, %v2299_v47 }
 0x3cb   :  { %v1876_v22 = vmul.f32 0.015625, %v1828_v29  ;;  %v1877_v19 = vmul.f32 0.015625, %v1830_v3  ;;  %2011 = vadd.xlane.f32.xlu1 %v1968_v59  ;;  %2013 = vadd.xlane.f32.xlu0 %v1969_v36  ;;  %v5397_v26 = vmul.f32 %v5314_v8, %v1906_v45  ;;  %v5400_v4 = vmul.f32 %v5314_v8, %v1907_v57  ;;  %v2301_v45 = vld [vmem:[#allocation15 + $0x50] sm:$0xff]  ;;  %v2302_v29 = vld [vmem:[#allocation15 + $0x58] sm:$0xff] }
 0x3cc   :  { %3467 = vmatprep.subr.bf16.mxu1 %v3466_v38 }
 0x3cd   :  { %v1908_v56 = vsub.f32 %v5243_v23, %v1876_v22  ;;  %v1909_v42 = vsub.f32 %v5246_v43, %v1877_v19  ;;  %v1970_v20 = vmul.f32 %v5397_v26, %v5397_v26  ;;  %v1971_v10 = vmul.f32 %v5400_v4, %v5400_v4  ;;  %3469 = vmatpush3.bf16.msra.mxu1 %v3466_v38 }
 0x3ce   :  { %v1832_v59 = vpop.xlane.xlu1 %1831  ;;  %v1834_v36 = vpop.xlane.xlu0 %1833  ;;  %v3470_v22 = vpack.c.bf16 %v2302_v29, %v2301_v45 }
 0x3cf   :  { %v1878_v3 = vmul.f32 0.015625, %v1832_v59  ;;  %v1879_v57 = vmul.f32 0.015625, %v1834_v36  ;;  %2015 = vadd.xlane.f32.xlu1 %v1970_v20  ;;  %2017 = vadd.xlane.f32.xlu0 %v1971_v10  ;;  %v5409_v50 = vmul.f32 %v5314_v8, %v1908_v56  ;;  %v5412_v19 = vmul.f32 %v5314_v8, %v1909_v42  ;;  %v2303_v56 = vld [vmem:[#allocation15 + $0x60] sm:$0xff]  ;;  %v2304_v59 = vld [vmem:[#allocation15 + $0x68] sm:$0xff] }
 0x3d0   :  { %3471 = vmatprep.subr.bf16.mxu1 %v3470_v22 }
 0x3d1   :  { %v1910_v23 = vsub.f32 %v5251_v54, %v1878_v3  ;;  %v1911_v43 = vsub.f32 %v5254_v5, %v1879_v57  ;;  %v1972_v47 = vmul.f32 %v5409_v50, %v5409_v50  ;;  %v1973_v30 = vmul.f32 %v5412_v19, %v5412_v19  ;;  %3473 = vmatpush3.bf16.msra.mxu1 %v3470_v22 }
 0x3d2   :  { %v1836_v20 = vpop.xlane.xlu1 %1835  ;;  %v1838_v10 = vpop.xlane.xlu0 %1837  ;;  %v3474_v5 = vpack.c.bf16 %v2304_v59, %v2303_v56 }
 0x3d3   :  { %v1880_v36 = vmul.f32 0.015625, %v1836_v20  ;;  %v1881_v42 = vmul.f32 0.015625, %v1838_v10  ;;  %2019 = vadd.xlane.f32.xlu1 %v1972_v47  ;;  %2021 = vadd.xlane.f32.xlu0 %v1973_v30  ;;  %v5421_v38 = vmul.f32 %v5314_v8, %v1910_v23  ;;  %v5424_v54 = vmul.f32 %v5314_v8, %v1911_v43  ;;  %v2305_v23 = vld [vmem:[#allocation15 + $0x70] sm:$0xff]  ;;  %v2306_v20 = vld [vmem:[#allocation15 + $0x78] sm:$0xff] }
 0x3d4   :  { %3475 = vmatprep.subr.bf16.mxu1 %v3474_v5 }
 0x3d5   :  { %v1912_v45 = vsub.f32 %v5259_v37, %v1880_v36  ;;  %v1913_v29 = vsub.f32 %v5262_v25, %v1881_v42  ;;  %v1974_v3 = vmul.f32 %v5421_v38, %v5421_v38  ;;  %v1975_v57 = vmul.f32 %v5424_v54, %v5424_v54  ;;  %3477 = vmatpush3.bf16.msra.mxu1 %v3474_v5 }
 0x3d6   :  { %v1840_v47 = vpop.xlane.xlu1 %1839  ;;  %v1842_v30 = vpop.xlane.xlu0 %1841  ;;  %v3478_v25 = vpack.c.bf16 %v2306_v20, %v2305_v23 }
 0x3d7   :  { %v1882_v10 = vmul.f32 0.015625, %v1840_v47  ;;  %v1883_v43 = vmul.f32 0.015625, %v1842_v30  ;;  %2023 = vadd.xlane.f32.xlu1 %v1974_v3  ;;  %2025 = vadd.xlane.f32.xlu0 %v1975_v57  ;;  %v5433_v22 = vmul.f32 %v5314_v8, %v1912_v45  ;;  %v5436_v37 = vmul.f32 %v5314_v8, %v1913_v29 }
 0x3d8   :  { %3479 = vmatprep.subr.bf16.mxu1 %v3478_v25 }
 0x3d9   :  { %v1914_v56 = vsub.f32 %v5267_v6, %v1882_v10  ;;  %v1915_v59 = vsub.f32 %v5270_v48, %v1883_v43  ;;  %v1976_v36 = vmul.f32 %v5433_v22, %v5433_v22  ;;  %v1977_v42 = vmul.f32 %v5436_v37, %v5436_v37  ;;  %3481 = vmatpush3.bf16.msra.mxu1 %v3478_v25 }
 0x3da   :  { %v1844_v3 = vpop.xlane.xlu1 %1843  ;;  %v1846_v57 = vpop.xlane.xlu0 %1845 }
 0x3db   :  { %v1884_v45 = vmul.f32 0.015625, %v1844_v3  ;;  %v1885_v47 = vmul.f32 0.015625, %v1846_v57  ;;  %2027 = vadd.xlane.f32.xlu1 %v1976_v36  ;;  %2029 = vadd.xlane.f32.xlu0 %v1977_v42  ;;  %v5445_v5 = vmul.f32 %v5314_v8, %v1914_v56  ;;  %v5448_v6 = vmul.f32 %v5314_v8, %v1915_v59 }
 0x3dd   :  { %v1916_v48 = vsub.f32 %v5275_v39, %v1884_v45  ;;  %v1917_v29 = vsub.f32 %v5278_v11, %v1885_v47  ;;  %v1978_v30 = vmul.f32 %v5445_v5, %v5445_v5  ;;  %v1979_v23 = vmul.f32 %v5448_v6, %v5448_v6 }
 0x3de   :  { %v1848_v20 = vpop.xlane.xlu1 %1847  ;;  %v1850_v10 = vpop.xlane.xlu0 %1849 }
 0x3df   :  { %v1886_v43 = vmul.f32 0.015625, %v1848_v20  ;;  %v1887_v36 = vmul.f32 0.015625, %v1850_v10  ;;  %2031 = vadd.xlane.f32.xlu1 %v1978_v30  ;;  %2033 = vadd.xlane.f32.xlu0 %v1979_v23  ;;  %v5457_v56 = vmul.f32 %v5314_v8, %v1916_v48  ;;  %v5460_v25 = vmul.f32 %v5314_v8, %v1917_v29 }
 0x3e1   :  { %v1918_v39 = vsub.f32 %v5283_v2, %v1886_v43  ;;  %v1919_v11 = vsub.f32 %v5286_v35, %v1887_v36  ;;  %v1980_v59 = vmul.f32 %v5457_v56, %v5457_v56  ;;  %v1981_v42 = vmul.f32 %v5460_v25, %v5460_v25 }
 0x3e2   :  { %v1852_v3 = vpop.xlane.xlu1 %1851  ;;  %v1854_v57 = vpop.xlane.xlu0 %1853 }
 0x3e3   :  { %v1888_v45 = vmul.f32 0.015625, %v1852_v3  ;;  %v1889_v47 = vmul.f32 0.015625, %v1854_v57  ;;  %2035 = vadd.xlane.f32.xlu1 %v1980_v59  ;;  %2037 = vadd.xlane.f32.xlu0 %v1981_v42  ;;  %v5469_v48 = vmul.f32 %v5314_v8, %v1918_v39  ;;  %v5472_v29 = vmul.f32 %v5314_v8, %v1919_v11 }
 0x3e5   :  { %v1920_v35 = vsub.f32 %v5291_v34, %v1888_v45  ;;  %v1921_v2 = vsub.f32 %v5294_v40, %v1889_v47  ;;  %v1982_v30 = vmul.f32 %v5469_v48, %v5469_v48  ;;  %v1983_v23 = vmul.f32 %v5472_v29, %v5472_v29 }
 0x3e6   :  { %v1856_v20 = vpop.xlane.xlu1 %1855  ;;  %v1858_v10 = vpop.xlane.xlu0 %1857 }
 0x3e7   :  { %v1890_v43 = vmul.f32 0.015625, %v1856_v20  ;;  %v1891_v36 = vmul.f32 0.015625, %v1858_v10  ;;  %2039 = vadd.xlane.f32.xlu1 %v1982_v30  ;;  %2041 = vadd.xlane.f32.xlu0 %v1983_v23  ;;  %v5481_v39 = vmul.f32 %v5314_v8, %v1920_v35  ;;  %v5484_v11 = vmul.f32 %v5314_v8, %v1921_v2 }
 0x3e9   :  { %v1922_v40 = vsub.f32 %v5302_v33, %v1890_v43  ;;  %v1923_v34 = vsub.f32 %v5305_v7, %v1891_v36  ;;  %v1984_v59 = vmul.f32 %v5481_v39, %v5481_v39  ;;  %v1985_v42 = vmul.f32 %v5484_v11, %v5484_v11 }
 0x3ea   :  { %v1860_v3 = vpop.xlane.xlu1 %1859 }
 0x3eb   :  { %v1892_v57 = vmul.f32 0.015625, %v1860_v3  ;;  %2043 = vadd.xlane.f32.xlu1 %v1984_v59  ;;  %2045 = vadd.xlane.f32.xlu0 %v1985_v42  ;;  %v5493_v45 = vmul.f32 %v5314_v8, %v1922_v40  ;;  %v5496_v47 = vmul.f32 %v5314_v8, %v1923_v34 }
 0x3ed   :  { %v1924_v33 = vsub.f32 %v5299_v32, %v1892_v57  ;;  %v1986_v7 = vmul.f32 %v5493_v45, %v5493_v45  ;;  %v1987_v35 = vmul.f32 %v5496_v47, %v5496_v47 }
 0x3ef   :  { %2047 = vadd.xlane.f32.xlu1 %v1986_v7  ;;  %2049 = vadd.xlane.f32.xlu0 %v1987_v35  ;;  %v5504_v2 = vmul.f32 %v5314_v8, %v1924_v33 }
 0x3f1   :  { %v1988_v30 = vmul.f32 %v5504_v2, %v5504_v2 }
 0x3f3   :  { %2051 = vadd.xlane.f32.xlu1 %v1988_v30 }
 0x440   :  { %v1990_v23 = vpop.xlane.xlu0 %1989 }
 0x441   :  { %v2053_v20 = vmul.f32 0.015625, %v1990_v23 }
 0x443   :  { %v2085_v10 = vadd.f32 1e-05, %v2053_v20 }
 0x444   :  { %v1992_v43 = vpop.xlane.xlu1 %1991  ;;  %v1994_v32 = vpop.xlane.xlu0 %1993 }
 0x445   :  { %3702 = vrsqrt.f32 %v2085_v10  ;;  %v2054_v36 = vmul.f32 0.015625, %v1992_v43  ;;  %v2055_v40 = vmul.f32 0.015625, %v1994_v32  ;;  %v5511_v32 = vld [vmem:[%s6104_s8] ss:$0 sm:$0xff] }
 0x447   :  { %v2086_v34 = vadd.f32 1e-05, %v2054_v36  ;;  %v2087_v59 = vadd.f32 1e-05, %v2055_v40 }
 0x448   :  { %v1996_v42 = vpop.xlane.xlu1 %1995  ;;  %v1998_v3 = vpop.xlane.xlu0 %1997 }
 0x449   :  { %3704 = vrsqrt.f32 %v2086_v34  ;;  %v2056_v57 = vmul.f32 0.015625, %v1996_v42  ;;  %v2057_v8 = vmul.f32 0.015625, %v1998_v3  ;;  %v5517_v3 = vld [vmem:[%s6105_s9] ss:$0 sm:$0xff] }
 0x44a   :  { %3706 = vrsqrt.f32 %v2087_v59 }
 0x44b   :  { %v2088_v33 = vadd.f32 1e-05, %v2056_v57  ;;  %v2089_v7 = vadd.f32 1e-05, %v2057_v8 }
 0x44c   :  { %v2000_v35 = vpop.xlane.xlu1 %1999  ;;  %v2002_v30 = vpop.xlane.xlu0 %2001 }
 0x44d   :  { %3708 = vrsqrt.f32 %v2088_v33  ;;  %v2058_v23 = vmul.f32 0.015625, %v2000_v35  ;;  %v2059_v20 = vmul.f32 0.015625, %v2002_v30 }
 0x44e   :  { %3710 = vrsqrt.f32 %v2089_v7 }
 0x44f   :  { %v3703_v41 = vpop.eup %3702  ;;  %v2090_v10 = vadd.f32 1e-05, %v2058_v23  ;;  %v2091_v43 = vadd.f32 1e-05, %v2059_v20 }
 0x450   :  { %v2004_v36 = vpop.xlane.xlu1 %2003  ;;  %v2006_v40 = vpop.xlane.xlu0 %2005  ;;  %v2149_v34 = vmul.f32 %v3703_v41, %v5318_v51 }
 0x451   :  { %3712 = vrsqrt.f32 %v2090_v10  ;;  %v2060_v59 = vmul.f32 0.015625, %v2004_v36  ;;  %v2061_v42 = vmul.f32 0.015625, %v2006_v40 }
 0x452   :  { %3714 = vrsqrt.f32 %v2091_v43  ;;  %v2188_v57 = vmul.f32 %v5511_v32, %v2149_v34 }
 0x453   :  { %v3705_v8 = vpop.eup %3704  ;;  %v2092_v33 = vadd.f32 1e-05, %v2060_v59  ;;  %v2093_v7 = vadd.f32 1e-05, %v2061_v42 }
 0x454   :  { %v3707_v35 = vpop.eup %3706  ;;  %v2008_v30 = vpop.xlane.xlu1 %2007  ;;  %v2227_v20 = vadd.f32 %v5517_v3, %v2188_v57  ;;  %v2150_v41 = vmul.f32 %v3705_v8, %v5328_v44 }
 0x455   :  { %v2010_v23 = vpop.xlane.xlu0 %2009  ;;  %3716 = vrsqrt.f32 %v2092_v33  ;;  %v2062_v51 = vmul.f32 0.015625, %v2008_v30  ;;  %v2151_v36 = vmul.f32 %v3707_v35, %v5325_v16 }
 0x456   :  { %v2063_v10 = vmul.f32 0.015625, %v2010_v23  ;;  %3718 = vrsqrt.f32 %v2093_v7  ;;  %v2259_v40 = vmax.f32 %v2227_v20, 0.0  ;;  %v2189_v43 = vmul.f32 %v5511_v32, %v2150_v41 }
 0x457   :  { %v3709_v34 = vpop.eup %3708  ;;  %v2094_v62 = vadd.f32 1e-05, %v2062_v51  ;;  %v2190_v42 = vmul.f32 %v5511_v32, %v2151_v36 }
 0x458   :  { %v2095_v59 = vadd.f32 1e-05, %v2063_v10  ;;  %v3711_v49 = vpop.eup %3710  ;;  %v2012_v9 = vpop.xlane.xlu1 %2011  ;;  %3370 = vmatprep.mubr.f32.mxu1 %v2259_v40  ;;  %v2228_v44 = vadd.f32 %v5517_v3, %v2189_v43  ;;  %v2152_v8 = vmul.f32 %v3709_v34, %v5337_v55 }
 0x459   :  { %v2014_v57 = vpop.xlane.xlu0 %2013  ;;  %3720 = vrsqrt.f32 %v2094_v62  ;;  %v2064_v33 = vmul.f32 0.015625, %v2012_v9  ;;  %v2229_v7 = vadd.f32 %v5517_v3, %v2190_v42  ;;  %v2153_v23 = vmul.f32 %v3711_v49, %v5340_v24 }
 0x45a   :  { %v2065_v16 = vmul.f32 0.015625, %v2014_v57  ;;  %3722 = vrsqrt.f32 %v2095_v59  ;;  %v2260_v35 = vmax.f32 %v2228_v44, 0.0  ;;  %v2191_v30 = vmul.f32 %v5511_v32, %v2152_v8 }
 0x45b   :  { %v3713_v20 = vpop.eup %3712  ;;  %v2096_v41 = vadd.f32 1e-05, %v2064_v33  ;;  %v2261_v10 = vmax.f32 %v2229_v7, 0.0  ;;  %v2192_v9 = vmul.f32 %v5511_v32, %v2153_v23 }
 0x45c   :  { %v2097_v51 = vadd.f32 1e-05, %v2065_v16  ;;  %v3715_v36 = vpop.eup %3714  ;;  %v2016_v40 = vpop.xlane.xlu1 %2015  ;;  %3371 = vmatmul.mubr.f32.vlgmr.msra.gmra.mrb[0].mxu1 %v2260_v35  ;;  %v2230_v62 = vadd.f32 %v5517_v3, %v2191_v30  ;;  %v2154_v55 = vmul.f32 %v3713_v20, %v5349_v61 }
 0x45d   :  { %v2018_v43 = vpop.xlane.xlu0 %2017  ;;  %3724 = vrsqrt.f32 %v2096_v41  ;;  %v2066_v34 = vmul.f32 0.015625, %v2016_v40  ;;  %3373 = vmatprep.mubr.f32.mxu1 %v2261_v10  ;;  %v2155_v49 = vmul.f32 %v3715_v36, %v5352_v1  ;;  %v2231_v42 = vadd.f32 %v5517_v3, %v2192_v9 }
 0x45e   :  { %v2067_v59 = vmul.f32 0.015625, %v2018_v43  ;;  %3726 = vrsqrt.f32 %v2097_v51  ;;  %v2262_v24 = vmax.f32 %v2230_v62, 0.0  ;;  %v2193_v57 = vmul.f32 %v5511_v32, %v2154_v55 }
 0x45f   :  { %v3717_v44 = vpop.eup %3716  ;;  %v2098_v8 = vadd.f32 1e-05, %v2066_v34  ;;  %v2194_v16 = vmul.f32 %v5511_v32, %v2155_v49  ;;  %v2263_v30 = vmax.f32 %v2231_v42, 0.0 }
 0x460   :  { %v2099_v33 = vadd.f32 1e-05, %v2067_v59  ;;  %v3719_v7 = vpop.eup %3718  ;;  %v2020_v35 = vpop.xlane.xlu1 %2019  ;;  %3374 = vmatmul.mubr.f32.gmra.mrb[2].mxu1 %v2262_v24  ;;  %v2232_v23 = vadd.f32 %v5517_v3, %v2193_v57  ;;  %v2156_v1 = vmul.f32 %v3717_v44, %v5361_v28 }
 0x461   :  { %v2022_v61 = vpop.xlane.xlu0 %2021  ;;  %3728 = vrsqrt.f32 %v2098_v8  ;;  %v2068_v20 = vmul.f32 0.015625, %v2020_v35  ;;  %v2233_v51 = vadd.f32 %v5517_v3, %v2194_v16  ;;  %3376 = vmatprep.mubr.f32.mxu1 %v2263_v30  ;;  %v2157_v40 = vmul.f32 %v3719_v7, %v5364_v13 }
 0x462   :  { %v2069_v41 = vmul.f32 0.015625, %v2022_v61  ;;  %3730 = vrsqrt.f32 %v2099_v33  ;;  %v2264_v10 = vmax.f32 %v2232_v23, 0.0  ;;  %v2195_v36 = vmul.f32 %v5511_v32, %v2156_v1 }
 0x463   :  { %v3721_v43 = vpop.eup %3720  ;;  %v2100_v62 = vadd.f32 1e-05, %v2068_v20  ;;  %v2265_v55 = vmax.f32 %v2233_v51, 0.0  ;;  %v2196_v24 = vmul.f32 %v5511_v32, %v2157_v40 }
 0x464   :  { %v2101_v9 = vadd.f32 1e-05, %v2069_v41  ;;  %v3723_v34 = vpop.eup %3722  ;;  %v2024_v59 = vpop.xlane.xlu1 %2023  ;;  %3377 = vmatmul.mubr.f32.gmra.mrb[4].mxu1 %v2264_v10  ;;  %v2234_v49 = vadd.f32 %v5517_v3, %v2195_v36  ;;  %v2158_v42 = vmul.f32 %v3721_v43, %v5373_v14 }
 0x465   :  { %v2026_v28 = vpop.xlane.xlu0 %2025  ;;  %3732 = vrsqrt.f32 %v2100_v62  ;;  %v2070_v57 = vmul.f32 0.015625, %v2024_v59  ;;  %3379 = vmatprep.mubr.f32.mxu1 %v2265_v55  ;;  %v2159_v13 = vmul.f32 %v3723_v34, %v5376_v63  ;;  %v2235_v33 = vadd.f32 %v5517_v3, %v2196_v24 }
 0x466   :  { %v2071_v44 = vmul.f32 0.015625, %v2026_v28  ;;  %3734 = vrsqrt.f32 %v2101_v9  ;;  %v2266_v8 = vmax.f32 %v2234_v49, 0.0  ;;  %v2197_v16 = vmul.f32 %v5511_v32, %v2158_v42 }
 0x467   :  { %v3725_v7 = vpop.eup %3724  ;;  %v2102_v35 = vadd.f32 1e-05, %v2070_v57  ;;  %v2198_v30 = vmul.f32 %v5511_v32, %v2159_v13  ;;  %v2267_v20 = vmax.f32 %v2235_v33, 0.0 }
 0x468   :  { %v2103_v61 = vadd.f32 1e-05, %v2071_v44  ;;  %v3727_v23 = vpop.eup %3726  ;;  %v2028_v1 = vpop.xlane.xlu1 %2027  ;;  %3380 = vmatmul.mubr.f32.gmra.mrb[6].mxu1 %v2266_v8  ;;  %v2236_v41 = vadd.f32 %v5517_v3, %v2197_v16  ;;  %v2160_v63 = vmul.f32 %v3725_v7, %v5385_v21 }
 0x469   :  { %v2030_v14 = vpop.xlane.xlu0 %2029  ;;  %3736 = vrsqrt.f32 %v2102_v35  ;;  %v2072_v51 = vmul.f32 0.015625, %v2028_v1  ;;  %v2237_v36 = vadd.f32 %v5517_v3, %v2198_v30  ;;  %3382 = vmatprep.mubr.f32.mxu1 %v2267_v20  ;;  %v2161_v62 = vmul.f32 %v3727_v23, %v5388_v31 }
 0x46a   :  { %v2073_v10 = vmul.f32 0.015625, %v2030_v14  ;;  %3738 = vrsqrt.f32 %v2103_v61  ;;  %v2268_v40 = vmax.f32 %v2236_v41, 0.0  ;;  %v2199_v43 = vmul.f32 %v5511_v32, %v2160_v63 }
 0x46b   :  { %v3729_v9 = vpop.eup %3728  ;;  %v2104_v55 = vadd.f32 1e-05, %v2072_v51  ;;  %v2269_v59 = vmax.f32 %v2237_v36, 0.0  ;;  %v2200_v42 = vmul.f32 %v5511_v32, %v2161_v62 }
 0x46c   :  { %v2105_v34 = vadd.f32 1e-05, %v2073_v10  ;;  %v3731_v28 = vpop.eup %3730  ;;  %v2032_v49 = vpop.xlane.xlu1 %2031  ;;  %3383 = vmatmul.mubr.f32.gmra.mrb[8].mxu1 %v2268_v40  ;;  %v2238_v24 = vadd.f32 %v5517_v3, %v2199_v43  ;;  %v2162_v57 = vmul.f32 %v3729_v9, %v5397_v26 }
 0x46d   :  { %v2034_v21 = vpop.xlane.xlu0 %2033  ;;  %3740 = vrsqrt.f32 %v2104_v55  ;;  %v2074_v44 = vmul.f32 0.015625, %v2032_v49  ;;  %3385 = vmatprep.mubr.f32.mxu1 %v2269_v59  ;;  %v2163_v31 = vmul.f32 %v3731_v28, %v5400_v4  ;;  %v2239_v33 = vadd.f32 %v5517_v3, %v2200_v42 }
 0x46e   :  { %v2075_v13 = vmul.f32 0.015625, %v2034_v21  ;;  %3742 = vrsqrt.f32 %v2105_v34  ;;  %v2270_v8 = vmax.f32 %v2238_v24, 0.0  ;;  %v2201_v16 = vmul.f32 %v5511_v32, %v2162_v57 }
 0x46f   :  { %v3733_v7 = vpop.eup %3732  ;;  %v2106_v35 = vadd.f32 1e-05, %v2074_v44  ;;  %v2202_v30 = vmul.f32 %v5511_v32, %v2163_v31  ;;  %v2271_v14 = vmax.f32 %v2239_v33, 0.0 }
 0x470   :  { %v2107_v61 = vadd.f32 1e-05, %v2075_v13  ;;  %v3735_v23 = vpop.eup %3734  ;;  %v2036_v1 = vpop.xlane.xlu1 %2035  ;;  %3386 = vmatmul.mubr.f32.gmra.mrb[10].mxu1 %v2270_v8  ;;  %v2240_v20 = vadd.f32 %v5517_v3, %v2201_v16  ;;  %v2164_v4 = vmul.f32 %v3733_v7, %v5409_v50 }
 0x471   :  { %v2038_v26 = vpop.xlane.xlu0 %2037  ;;  %3744 = vrsqrt.f32 %v2106_v35  ;;  %v2076_v41 = vmul.f32 0.015625, %v2036_v1  ;;  %v2241_v51 = vadd.f32 %v5517_v3, %v2202_v30  ;;  %3388 = vmatprep.mubr.f32.mxu1 %v2271_v14  ;;  %v2165_v40 = vmul.f32 %v3735_v23, %v5412_v19 }
 0x472   :  { %v2077_v63 = vmul.f32 0.015625, %v2038_v26  ;;  %3746 = vrsqrt.f32 %v2107_v61  ;;  %v2272_v10 = vmax.f32 %v2240_v20, 0.0  ;;  %v2203_v36 = vmul.f32 %v5511_v32, %v2164_v4 }
 0x473   :  { %v3737_v43 = vpop.eup %3736  ;;  %v2108_v62 = vadd.f32 1e-05, %v2076_v41  ;;  %v2273_v55 = vmax.f32 %v2241_v51, 0.0  ;;  %v2204_v49 = vmul.f32 %v5511_v32, %v2165_v40 }
 0x474   :  { %v2109_v9 = vadd.f32 1e-05, %v2077_v63  ;;  %v3739_v34 = vpop.eup %3738  ;;  %v2040_v59 = vpop.xlane.xlu1 %2039  ;;  %3389 = vmatmul.mubr.f32.gmra.mrb[12].mxu1 %v2272_v10  ;;  %v2242_v28 = vadd.f32 %v5517_v3, %v2203_v36  ;;  %v2166_v21 = vmul.f32 %v3737_v43, %v5421_v38 }
 0x475   :  { %v2042_v50 = vpop.xlane.xlu0 %2041  ;;  %3748 = vrsqrt.f32 %v2108_v62  ;;  %v2078_v24 = vmul.f32 0.015625, %v2040_v59  ;;  %3391 = vmatprep.mubr.f32.mxu1 %v2273_v55  ;;  %v2167_v19 = vmul.f32 %v3739_v34, %v5424_v54  ;;  %v2243_v44 = vadd.f32 %v5517_v3, %v2204_v49 }
 0x476   :  { %v2079_v42 = vmul.f32 0.015625, %v2042_v50  ;;  %3750 = vrsqrt.f32 %v2109_v9  ;;  %v2274_v57 = vmax.f32 %v2242_v28, 0.0  ;;  %v2205_v13 = vmul.f32 %v5511_v32, %v2166_v21 }
 0x477   :  { %v3741_v31 = vpop.eup %3740  ;;  %v2110_v8 = vadd.f32 1e-05, %v2078_v24  ;;  %v2206_v16 = vmul.f32 %v5511_v32, %v2167_v19  ;;  %v2275_v61 = vmax.f32 %v2243_v44, 0.0 }
 0x478   :  { %v2111_v33 = vadd.f32 1e-05, %v2079_v42  ;;  %v3743_v7 = vpop.eup %3742  ;;  %v2044_v35 = vpop.xlane.xlu1 %2043  ;;  %3392 = vmatmul.mubr.f32.gmra.mrb[14].mxu1 %v2274_v57  ;;  %v2244_v30 = vadd.f32 %v5517_v3, %v2205_v13  ;;  %v2168_v54 = vmul.f32 %v3741_v31, %v5433_v22 }
 0x479   :  { %v2046_v38 = vpop.xlane.xlu0 %2045  ;;  %3752 = vrsqrt.f32 %v2110_v8  ;;  %v2080_v23 = vmul.f32 0.015625, %v2044_v35  ;;  %v2245_v26 = vadd.f32 %v5517_v3, %v2206_v16  ;;  %3394 = vmatprep.mubr.f32.mxu1 %v2275_v61  ;;  %v2169_v4 = vmul.f32 %v3743_v7, %v5436_v37 }
 0x47a   :  { %v2081_v1 = vmul.f32 0.015625, %v2046_v38  ;;  %3754 = vrsqrt.f32 %v2111_v33  ;;  %v2276_v14 = vmax.f32 %v2244_v30, 0.0  ;;  %v2207_v20 = vmul.f32 %v5511_v32, %v2168_v54 }
 0x47b   :  { %v3745_v41 = vpop.eup %3744  ;;  %v2112_v63 = vadd.f32 1e-05, %v2080_v23  ;;  %v2277_v10 = vmax.f32 %v2245_v26, 0.0  ;;  %v2208_v62 = vmul.f32 %v5511_v32, %v2169_v4 }
 0x47c   :  { %v2113_v51 = vadd.f32 1e-05, %v2081_v1  ;;  %v3747_v36 = vpop.eup %3746  ;;  %v2048_v40 = vpop.xlane.xlu1 %2047  ;;  %3395 = vmatmul.mubr.f32.gmra.mrb[16].mxu1 %v2276_v14  ;;  %v2246_v43 = vadd.f32 %v5517_v3, %v2207_v20  ;;  %v2170_v9 = vmul.f32 %v3745_v41, %v5445_v5 }
 0x47d   :  { %v2050_v22 = vpop.xlane.xlu0 %2049  ;;  %3756 = vrsqrt.f32 %v2112_v63  ;;  %v2082_v55 = vmul.f32 0.015625, %v2048_v40  ;;  %3397 = vmatprep.mubr.f32.mxu1 %v2277_v10  ;;  %v2171_v37 = vmul.f32 %v3747_v36, %v5448_v6  ;;  %v2247_v50 = vadd.f32 %v5517_v3, %v2208_v62 }
 0x47e   :  { %v2083_v34 = vmul.f32 0.015625, %v2050_v22  ;;  %3758 = vrsqrt.f32 %v2113_v51  ;;  %v2278_v59 = vmax.f32 %v2246_v43, 0.0  ;;  %v2209_v28 = vmul.f32 %v5511_v32, %v2170_v9 }
 0x47f   :  { %v3749_v49 = vpop.eup %3748  ;;  %v2114_v21 = vadd.f32 1e-05, %v2082_v55  ;;  %v2210_v42 = vmul.f32 %v5511_v32, %v2171_v37  ;;  %v2279_v5 = vmax.f32 %v2247_v50, 0.0 }
 0x480   :  { %v2115_v24 = vadd.f32 1e-05, %v2083_v34  ;;  %v3751_v19 = vpop.eup %3750  ;;  %v2052_v57 = vpop.xlane.xlu1 %2051  ;;  %3398 = vmatmul.mubr.f32.gmra.mrb[18].mxu1 %v2278_v59  ;;  %v2248_v44 = vadd.f32 %v5517_v3, %v2209_v28  ;;  %v2172_v13 = vmul.f32 %v3749_v49, %v5457_v56 }
 0x481   :  { %3760 = vrsqrt.f32 %v2114_v21  ;;  %v2084_v6 = vmul.f32 0.015625, %v2052_v57  ;;  %v2249_v31 = vadd.f32 %v5517_v3, %v2210_v42  ;;  %v2173_v8 = vmul.f32 %v3751_v19, %v5460_v25  ;;  %3400 = vmatprep.mubr.f32.mxu1 %v2279_v5  ;;  %v5617_v5 = vld [vmem:[%s6107_s11] ss:$0 sm:$0xff] }
 0x482   :  { %3762 = vrsqrt.f32 %v2115_v24  ;;  %v2280_v33 = vmax.f32 %v2248_v44, 0.0  ;;  %v2211_v16 = vmul.f32 %v5511_v32, %v2172_v13 }
 0x483   :  { %v3753_v7 = vpop.eup %3752  ;;  %v2116_v35 = vadd.f32 1e-05, %v2084_v6  ;;  %v2281_v38 = vmax.f32 %v2249_v31, 0.0  ;;  %v2212_v61 = vmul.f32 %v5511_v32, %v2173_v8 }
 0x484   :  { %v3755_v30 = vpop.eup %3754  ;;  %3401 = vmatmul.mubr.f32.gmra.mrb[20].mxu1 %v2280_v33  ;;  %v2250_v56 = vadd.f32 %v5517_v3, %v2211_v16  ;;  %v2174_v54 = vmul.f32 %v3753_v7, %v5469_v48 }
 0x485   :  { %3764 = vrsqrt.f32 %v2116_v35  ;;  %3403 = vmatprep.mubr.f32.mxu1 %v2281_v38  ;;  %v2251_v25 = vadd.f32 %v5517_v3, %v2212_v61  ;;  %v2175_v23 = vmul.f32 %v3755_v30, %v5472_v29 }
 0x486   :  { %v2282_v1 = vmax.f32 %v2250_v56, 0.0  ;;  %v2213_v26 = vmul.f32 %v5511_v32, %v2174_v54 }
 0x487   :  { %v3757_v14 = vpop.eup %3756  ;;  %v2283_v20 = vmax.f32 %v2251_v25, 0.0  ;;  %v2214_v4 = vmul.f32 %v5511_v32, %v2175_v23 }
 0x488   :  { %v3759_v41 = vpop.eup %3758  ;;  %3404 = vmatmul.mubr.f32.gmra.mrb[22].mxu1 %v2282_v1  ;;  %v2252_v63 = vadd.f32 %v5517_v3, %v2213_v26  ;;  %v2176_v51 = vmul.f32 %v3757_v14, %v5481_v39 }
 0x489   :  { %3406 = vmatprep.mubr.f32.mxu1 %v2283_v20  ;;  %v2253_v48 = vadd.f32 %v5517_v3, %v2214_v4  ;;  %v2177_v10 = vmul.f32 %v3759_v41, %v5484_v11 }
 0x48a   :  { %v2284_v36 = vmax.f32 %v2252_v63, 0.0  ;;  %v2215_v29 = vmul.f32 %v5511_v32, %v2176_v51 }
 0x48b   :  { %v3761_v40 = vpop.eup %3760  ;;  %v2285_v22 = vmax.f32 %v2253_v48, 0.0  ;;  %v2216_v43 = vmul.f32 %v5511_v32, %v2177_v10 }
 0x48c   :  { %v3763_v62 = vpop.eup %3762  ;;  %3407 = vmatmul.mubr.f32.gmra.mrb[24].mxu1 %v2284_v36  ;;  %v2254_v9 = vadd.f32 %v5517_v3, %v2215_v29  ;;  %v2178_v55 = vmul.f32 %v3761_v40, %v5493_v45 }
 0x48d   :  { %3409 = vmatprep.mubr.f32.mxu1 %v2285_v22  ;;  %v2255_v39 = vadd.f32 %v5517_v3, %v2216_v43  ;;  %v2179_v34 = vmul.f32 %v3763_v62, %v5496_v47 }
 0x48e   :  { %v2286_v37 = vmax.f32 %v2254_v9, 0.0  ;;  %v2217_v11 = vmul.f32 %v5511_v32, %v2178_v55 }
 0x48f   :  { %v3765_v59 = vpop.eup %3764  ;;  %v2287_v50 = vmax.f32 %v2255_v39, 0.0  ;;  %v2218_v28 = vmul.f32 %v5511_v32, %v2179_v34 }
 0x490   :  { %3410 = vmatmul.mubr.f32.gmra.mrb[26].mxu1 %v2286_v37  ;;  %v2256_v49 = vadd.f32 %v5517_v3, %v2217_v11  ;;  %v2180_v21 = vmul.f32 %v3765_v59, %v5504_v2 }
 0x491   :  { %3412 = vmatprep.mubr.f32.mxu1 %v2287_v50  ;;  %v2257_v45 = vadd.f32 %v5517_v3, %v2218_v28 }
 0x492   :  { %v2288_v24 = vmax.f32 %v2256_v49, 0.0  ;;  %v2219_v42 = vmul.f32 %v5511_v32, %v2180_v21 }
 0x493   :  { %v2289_v19 = vmax.f32 %v2257_v45, 0.0 }
 0x494   :  { %3413 = vmatmul.mubr.f32.gmra.mrb[28].mxu1 %v2288_v24  ;;  %v2258_v47 = vadd.f32 %v5517_v3, %v2219_v42 }
 0x495   :  { %3415 = vmatprep.mubr.f32.mxu1 %v2289_v19 }
 0x496   :  { %v2290_v57 = vmax.f32 %v2258_v47, 0.0 }
 0x498   :  { %3416 = vmatmul.mubr.f32.gmra.mrb[30].mxu1 %v2290_v57 }
 0x52f   :  { %v3372_v44 = vpop.f32.mrb[0].mxu1 }
 0x530   :  { %v5620_v2 = vadd.f32 %v3372_v44, %v5617_v5  ;;  %v2380_v13 = vpop.f32.mrb[1].mxu1 }
 0x531   :  { %v5623_v6 = vadd.f32 %v5617_v5, %v2380_v13 }
 0x532   :  { %2544 = vadd.xlane.f32.xlu1 %v5620_v2 }
 0x533   :  { %2542 = vadd.xlane.f32.xlu0 %v5623_v6  ;;  %v3375_v32 = vpop.f32.mrb[2].mxu1 }
 0x534   :  { %v5628_v3 = vadd.f32 %v3375_v32, %v5617_v5  ;;  %v2390_v31 = vpop.f32.mrb[3].mxu1 }
 0x535   :  { %v5631_v8 = vadd.f32 %v5617_v5, %v2390_v31 }
 0x536   :  { %2548 = vadd.xlane.f32.xlu1 %v5628_v3 }
 0x537   :  { %2546 = vadd.xlane.f32.xlu0 %v5631_v8  ;;  %v3378_v33 = vpop.f32.mrb[4].mxu1 }
 0x538   :  { %v5636_v16 = vadd.f32 %v3378_v33, %v5617_v5  ;;  %v2400_v7 = vpop.f32.mrb[5].mxu1 }
 0x539   :  { %v5639_v35 = vadd.f32 %v5617_v5, %v2400_v7 }
 0x53a   :  { %2552 = vadd.xlane.f32.xlu1 %v5636_v16 }
 0x53b   :  { %2550 = vadd.xlane.f32.xlu0 %v5639_v35  ;;  %v3381_v38 = vpop.f32.mrb[6].mxu1 }
 0x53c   :  { %v5644_v61 = vadd.f32 %v3381_v38, %v5617_v5  ;;  %v2410_v30 = vpop.f32.mrb[7].mxu1 }
 0x53d   :  { %v5647_v56 = vadd.f32 %v5617_v5, %v2410_v30 }
 0x53e   :  { %2556 = vadd.xlane.f32.xlu1 %v5644_v61 }
 0x53f   :  { %2554 = vadd.xlane.f32.xlu0 %v5647_v56  ;;  %v3384_v54 = vpop.f32.mrb[8].mxu1 }
 0x540   :  { %v5652_v25 = vadd.f32 %v3384_v54, %v5617_v5  ;;  %v2420_v23 = vpop.f32.mrb[9].mxu1 }
 0x541   :  { %v5655_v1 = vadd.f32 %v5617_v5, %v2420_v23 }
 0x542   :  { %2560 = vadd.xlane.f32.xlu1 %v5652_v25 }
 0x543   :  { %2558 = vadd.xlane.f32.xlu0 %v5655_v1  ;;  %v3387_v26 = vpop.f32.mrb[10].mxu1 }
 0x544   :  { %v5660_v14 = vadd.f32 %v3387_v26, %v5617_v5  ;;  %v2430_v20 = vpop.f32.mrb[11].mxu1 }
 0x545   :  { %v5663_v4 = vadd.f32 %v5617_v5, %v2430_v20 }
 0x546   :  { %2564 = vadd.xlane.f32.xlu1 %v5660_v14 }
 0x547   :  { %2562 = vadd.xlane.f32.xlu0 %v5663_v4  ;;  %v3390_v41 = vpop.f32.mrb[12].mxu1 }
 0x548   :  { %v5668_v63 = vadd.f32 %v3390_v41, %v5617_v5  ;;  %v2440_v51 = vpop.f32.mrb[13].mxu1 }
 0x549   :  { %v5671_v48 = vadd.f32 %v5617_v5, %v2440_v51 }
 0x54a   :  { %2568 = vadd.xlane.f32.xlu1 %v5668_v63 }
 0x54b   :  { %2566 = vadd.xlane.f32.xlu0 %v5671_v48  ;;  %v3393_v10 = vpop.f32.mrb[14].mxu1 }
 0x54c   :  { %v5676_v36 = vadd.f32 %v3393_v10, %v5617_v5  ;;  %v2450_v29 = vpop.f32.mrb[15].mxu1 }
 0x54d   :  { %v5679_v40 = vadd.f32 %v5617_v5, %v2450_v29 }
 0x54e   :  { %2572 = vadd.xlane.f32.xlu1 %v5676_v36 }
 0x54f   :  { %2570 = vadd.xlane.f32.xlu0 %v5679_v40  ;;  %v3396_v22 = vpop.f32.mrb[16].mxu1 }
 0x550   :  { %v5684_v43 = vadd.f32 %v3396_v22, %v5617_v5  ;;  %v2460_v62 = vpop.f32.mrb[17].mxu1  ;;  %v5749_v22 = vsel %vm2539_vm1, 1.0, %v6216_v58 }
 0x551   :  { %v5687_v9 = vadd.f32 %v5617_v5, %v2460_v62 }
 0x552   :  { %2576 = vadd.xlane.f32.xlu1 %v5684_v43 }
 0x553   :  { %2574 = vadd.xlane.f32.xlu0 %v5687_v9  ;;  %v3399_v55 = vpop.f32.mrb[18].mxu1 }
 0x554   :  { %v5692_v39 = vadd.f32 %v3399_v55, %v5617_v5  ;;  %v2470_v34 = vpop.f32.mrb[19].mxu1 }
 0x555   :  { %v5695_v37 = vadd.f32 %v5617_v5, %v2470_v34 }
 0x556   :  { %2580 = vadd.xlane.f32.xlu1 %v5692_v39 }
 0x557   :  { %2578 = vadd.xlane.f32.xlu0 %v5695_v37  ;;  %v3402_v11 = vpop.f32.mrb[20].mxu1 }
 0x558   :  { %v5700_v59 = vadd.f32 %v3402_v11, %v5617_v5  ;;  %v2480_v50 = vpop.f32.mrb[21].mxu1 }
 0x559   :  { %v5703_v28 = vadd.f32 %v5617_v5, %v2480_v50 }
 0x55a   :  { %2584 = vadd.xlane.f32.xlu1 %v5700_v59 }
 0x55b   :  { %2582 = vadd.xlane.f32.xlu0 %v5703_v28  ;;  %v3405_v49 = vpop.f32.mrb[22].mxu1 }
 0x55c   :  { %v5708_v21 = vadd.f32 %v3405_v49, %v5617_v5  ;;  %v2490_v45 = vpop.f32.mrb[23].mxu1 }
 0x55d   :  { %v5711_v24 = vadd.f32 %v5617_v5, %v2490_v45 }
 0x55e   :  { %2588 = vadd.xlane.f32.xlu1 %v5708_v21 }
 0x55f   :  { %2586 = vadd.xlane.f32.xlu0 %v5711_v24  ;;  %v3408_v42 = vpop.f32.mrb[24].mxu1 }
 0x560   :  { %v5716_v19 = vadd.f32 %v3408_v42, %v5617_v5  ;;  %v2500_v47 = vpop.f32.mrb[25].mxu1 }
 0x561   :  { %v5719_v57 = vadd.f32 %v5617_v5, %v2500_v47 }
 0x562   :  { %2592 = vadd.xlane.f32.xlu1 %v5716_v19 }
 0x563   :  { %2590 = vadd.xlane.f32.xlu0 %v5719_v57  ;;  %v3411_v44 = vpop.f32.mrb[26].mxu1 }
 0x564   :  { %v5724_v13 = vadd.f32 %v3411_v44, %v5617_v5  ;;  %v2510_v32 = vpop.f32.mrb[27].mxu1 }
 0x565   :  { %v5727_v31 = vadd.f32 %v5617_v5, %v2510_v32 }
 0x566   :  { %2596 = vadd.xlane.f32.xlu1 %v5724_v13 }
 0x567   :  { %2594 = vadd.xlane.f32.xlu0 %v5727_v31  ;;  %v3414_v33 = vpop.f32.mrb[28].mxu1 }
 0x568   :  { %v5732_v7 = vadd.f32 %v3414_v33, %v5617_v5  ;;  %v2520_v38 = vpop.f32.mrb[29].mxu1 }
 0x569   :  { %v5735_v30 = vadd.f32 %v5617_v5, %v2520_v38 }
 0x56a   :  { %2600 = vadd.xlane.f32.xlu1 %v5732_v7 }
 0x56b   :  { %2598 = vadd.xlane.f32.xlu0 %v5735_v30  ;;  %v3417_v54 = vpop.f32.mrb[30].mxu1 }
 0x56c   :  { %v5740_v23 = vadd.f32 %v3417_v54, %v5617_v5  ;;  %v2530_v26 = vpop.f32.mrb[31].mxu1 }
 0x56d   :  { %v5743_v20 = vadd.f32 %v5617_v5, %v2530_v26 }
 0x56e   :  { %2604 = vadd.xlane.f32.xlu1 %v5740_v23 }
 0x56f   :  { %2602 = vadd.xlane.f32.xlu0 %v5743_v20 }
 0x5bf   :  { %v2545_v41 = vpop.xlane.xlu1 %2544 }
 0x5c0   :  { %v2607_v51 = vmul.f32 0.03125, %v2545_v41  ;;  %v2543_v10 = vpop.xlane.xlu0 %2542 }
 0x5c1   :  { %v2606_v29 = vmul.f32 0.03125, %v2543_v10 }
 0x5c2   :  { %v2639_v62 = vsub.f32 %v5620_v2, %v2607_v51 }
 0x5c3   :  { %v2638_v55 = vsub.f32 %v5623_v6, %v2606_v29  ;;  %v2549_v34 = vpop.xlane.xlu1 %2548 }
 0x5c4   :  { %v2609_v5 = vmul.f32 0.03125, %v2549_v34  ;;  %v2547_v11 = vpop.xlane.xlu0 %2546  ;;  %v5754_v50 = vmul.f32 %v5749_v22, %v2639_v62 }
 0x5c5   :  { %v2608_v49 = vmul.f32 0.03125, %v2547_v11  ;;  %v5757_v18 = vmul.f32 %v5749_v22, %v2638_v55 }
 0x5c6   :  { %v2641_v45 = vsub.f32 %v5628_v3, %v2609_v5  ;;  %v2703_v58 = vmul.f32 %v5754_v50, %v5754_v50 }
 0x5c7   :  { %v2640_v42 = vsub.f32 %v5631_v8, %v2608_v49  ;;  %v2553_v2 = vpop.xlane.xlu1 %2552  ;;  %v2702_v6 = vmul.f32 %v5757_v18, %v5757_v18 }
 0x5c8   :  { %v5766_v47 = vmul.f32 %v5749_v22, %v2641_v45  ;;  %v2611_v44 = vmul.f32 0.03125, %v2553_v2  ;;  %2736 = vadd.xlane.f32.xlu1 %v2703_v58  ;;  %v2551_v32 = vpop.xlane.xlu0 %2550 }
 0x5c9   :  { %v5769_v33 = vmul.f32 %v5749_v22, %v2640_v42  ;;  %v2610_v38 = vmul.f32 0.03125, %v2551_v32  ;;  %2734 = vadd.xlane.f32.xlu0 %v2702_v6 }
 0x5ca   :  { %v2643_v3 = vsub.f32 %v5636_v16, %v2611_v44  ;;  %v2705_v8 = vmul.f32 %v5766_v47, %v5766_v47 }
 0x5cb   :  { %v2642_v54 = vsub.f32 %v5639_v35, %v2610_v38  ;;  %v2557_v26 = vpop.xlane.xlu1 %2556  ;;  %v2704_v41 = vmul.f32 %v5769_v33, %v5769_v33 }
 0x5cc   :  { %v5778_v51 = vmul.f32 %v5749_v22, %v2643_v3  ;;  %v2613_v10 = vmul.f32 0.03125, %v2557_v26  ;;  %2740 = vadd.xlane.f32.xlu1 %v2705_v8  ;;  %v2555_v29 = vpop.xlane.xlu0 %2554 }
 0x5cd   :  { %v5781_v62 = vmul.f32 %v5749_v22, %v2642_v54  ;;  %v2612_v55 = vmul.f32 0.03125, %v2555_v29  ;;  %2738 = vadd.xlane.f32.xlu0 %v2704_v41 }
 0x5ce   :  { %v2645_v16 = vsub.f32 %v5644_v61, %v2613_v10  ;;  %v2707_v35 = vmul.f32 %v5778_v51, %v5778_v51 }
 0x5cf   :  { %v2644_v34 = vsub.f32 %v5647_v56, %v2612_v55  ;;  %v2561_v5 = vpop.xlane.xlu1 %2560  ;;  %v2706_v11 = vmul.f32 %v5781_v62, %v5781_v62 }
 0x5d0   :  { %v5790_v49 = vmul.f32 %v5749_v22, %v2645_v16  ;;  %v2615_v45 = vmul.f32 0.03125, %v2561_v5  ;;  %2744 = vadd.xlane.f32.xlu1 %v2707_v35  ;;  %v2559_v58 = vpop.xlane.xlu0 %2558 }
 0x5d1   :  { %v5793_v42 = vmul.f32 %v5749_v22, %v2644_v34  ;;  %v2614_v2 = vmul.f32 0.03125, %v2559_v58  ;;  %2742 = vadd.xlane.f32.xlu0 %v2706_v11 }
 0x5d2   :  { %v2647_v61 = vsub.f32 %v5652_v25, %v2615_v45  ;;  %v2709_v56 = vmul.f32 %v5790_v49, %v5790_v49 }
 0x5d3   :  { %v2646_v6 = vsub.f32 %v5655_v1, %v2614_v2  ;;  %v2565_v44 = vpop.xlane.xlu1 %2564  ;;  %v2708_v32 = vmul.f32 %v5793_v42, %v5793_v42 }
 0x5d4   :  { %v5802_v38 = vmul.f32 %v5749_v22, %v2647_v61  ;;  %v2617_v3 = vmul.f32 0.03125, %v2565_v44  ;;  %2748 = vadd.xlane.f32.xlu1 %v2709_v56  ;;  %v2563_v8 = vpop.xlane.xlu0 %2562 }
 0x5d5   :  { %v5805_v54 = vmul.f32 %v5749_v22, %v2646_v6  ;;  %v2616_v26 = vmul.f32 0.03125, %v2563_v8  ;;  %2746 = vadd.xlane.f32.xlu0 %v2708_v32 }
 0x5d6   :  { %v2649_v25 = vsub.f32 %v5660_v14, %v2617_v3  ;;  %v2711_v1 = vmul.f32 %v5802_v38, %v5802_v38 }
 0x5d7   :  { %v2648_v41 = vsub.f32 %v5663_v4, %v2616_v26  ;;  %v2569_v10 = vpop.xlane.xlu1 %2568  ;;  %v2710_v29 = vmul.f32 %v5805_v54, %v5805_v54 }
 0x5d8   :  { %v5814_v55 = vmul.f32 %v5749_v22, %v2649_v25  ;;  %v2619_v16 = vmul.f32 0.03125, %v2569_v10  ;;  %2752 = vadd.xlane.f32.xlu1 %v2711_v1  ;;  %v2567_v35 = vpop.xlane.xlu0 %2566 }
 0x5d9   :  { %v5817_v34 = vmul.f32 %v5749_v22, %v2648_v41  ;;  %v2618_v5 = vmul.f32 0.03125, %v2567_v35  ;;  %2750 = vadd.xlane.f32.xlu0 %v2710_v29 }
 0x5da   :  { %v2651_v14 = vsub.f32 %v5668_v63, %v2619_v16  ;;  %v2713_v4 = vmul.f32 %v5814_v55, %v5814_v55 }
 0x5db   :  { %v2650_v11 = vsub.f32 %v5671_v48, %v2618_v5  ;;  %v2573_v45 = vpop.xlane.xlu1 %2572  ;;  %v2712_v58 = vmul.f32 %v5817_v34, %v5817_v34 }
 0x5dc   :  { %v5826_v2 = vmul.f32 %v5749_v22, %v2651_v14  ;;  %v2621_v61 = vmul.f32 0.03125, %v2573_v45  ;;  %2756 = vadd.xlane.f32.xlu1 %v2713_v4  ;;  %v2571_v56 = vpop.xlane.xlu0 %2570 }
 0x5dd   :  { %v5829_v6 = vmul.f32 %v5749_v22, %v2650_v11  ;;  %v2620_v44 = vmul.f32 0.03125, %v2571_v56  ;;  %2754 = vadd.xlane.f32.xlu0 %v2712_v58 }
 0x5de   :  { %v2653_v63 = vsub.f32 %v5676_v36, %v2621_v61  ;;  %v2715_v48 = vmul.f32 %v5826_v2, %v5826_v2 }
 0x5df   :  { %v2652_v32 = vsub.f32 %v5679_v40, %v2620_v44  ;;  %v2577_v3 = vpop.xlane.xlu1 %2576  ;;  %v2714_v8 = vmul.f32 %v5829_v6, %v5829_v6 }
 0x5e0   :  { %v5838_v26 = vmul.f32 %v5749_v22, %v2653_v63  ;;  %v2623_v25 = vmul.f32 0.03125, %v2577_v3  ;;  %2760 = vadd.xlane.f32.xlu1 %v2715_v48  ;;  %v2575_v1 = vpop.xlane.xlu0 %2574 }
 0x5e1   :  { %v5841_v41 = vmul.f32 %v5749_v22, %v2652_v32  ;;  %v2622_v10 = vmul.f32 0.03125, %v2575_v1  ;;  %2758 = vadd.xlane.f32.xlu0 %v2714_v8 }
 0x5e2   :  { %v2655_v36 = vsub.f32 %v5684_v43, %v2623_v25  ;;  %v2717_v40 = vmul.f32 %v5838_v26, %v5838_v26 }
 0x5e3   :  { %v2654_v29 = vsub.f32 %v5687_v9, %v2622_v10  ;;  %v2581_v16 = vpop.xlane.xlu1 %2580  ;;  %v2716_v35 = vmul.f32 %v5841_v41, %v5841_v41 }
 0x5e4   :  { %v5850_v5 = vmul.f32 %v5749_v22, %v2655_v36  ;;  %v2625_v14 = vmul.f32 0.03125, %v2581_v16  ;;  %2764 = vadd.xlane.f32.xlu1 %v2717_v40  ;;  %v2579_v4 = vpop.xlane.xlu0 %2578 }
 0x5e5   :  { %v5853_v11 = vmul.f32 %v5749_v22, %v2654_v29  ;;  %v2624_v45 = vmul.f32 0.03125, %v2579_v4  ;;  %2762 = vadd.xlane.f32.xlu0 %v2716_v35 }
 0x5e6   :  { %v2657_v43 = vsub.f32 %v5692_v39, %v2625_v14  ;;  %v2719_v9 = vmul.f32 %v5850_v5, %v5850_v5 }
 0x5e7   :  { %v2656_v58 = vsub.f32 %v5695_v37, %v2624_v45  ;;  %v2585_v61 = vpop.xlane.xlu1 %2584  ;;  %v2718_v56 = vmul.f32 %v5853_v11, %v5853_v11 }
 0x5e8   :  { %v5862_v44 = vmul.f32 %v5749_v22, %v2657_v43  ;;  %v2627_v63 = vmul.f32 0.03125, %v2585_v61  ;;  %2768 = vadd.xlane.f32.xlu1 %v2719_v9  ;;  %v2583_v48 = vpop.xlane.xlu0 %2582 }
 0x5e9   :  { %v5865_v32 = vmul.f32 %v5749_v22, %v2656_v58  ;;  %v2626_v3 = vmul.f32 0.03125, %v2583_v48  ;;  %2766 = vadd.xlane.f32.xlu0 %v2718_v56 }
 0x5ea   :  { %v2659_v39 = vsub.f32 %v5700_v59, %v2627_v63  ;;  %v2721_v37 = vmul.f32 %v5862_v44, %v5862_v44 }
 0x5eb   :  { %v2658_v8 = vsub.f32 %v5703_v28, %v2626_v3  ;;  %v2589_v25 = vpop.xlane.xlu1 %2588  ;;  %v2720_v1 = vmul.f32 %v5865_v32, %v5865_v32 }
 0x5ec   :  { %v5874_v10 = vmul.f32 %v5749_v22, %v2659_v39  ;;  %v2629_v36 = vmul.f32 0.03125, %v2589_v25  ;;  %2772 = vadd.xlane.f32.xlu1 %v2721_v37  ;;  %v2587_v40 = vpop.xlane.xlu0 %2586 }
 0x5ed   :  { %v5877_v29 = vmul.f32 %v5749_v22, %v2658_v8  ;;  %v2628_v16 = vmul.f32 0.03125, %v2587_v40  ;;  %2770 = vadd.xlane.f32.xlu0 %v2720_v1 }
 0x5ee   :  { %v2661_v59 = vsub.f32 %v5708_v21, %v2629_v36  ;;  %v2723_v28 = vmul.f32 %v5874_v10, %v5874_v10 }
 0x5ef   :  { %v2660_v35 = vsub.f32 %v5711_v24, %v2628_v16  ;;  %v2593_v14 = vpop.xlane.xlu1 %2592  ;;  %v2722_v4 = vmul.f32 %v5877_v29, %v5877_v29 }
 0x5f0   :  { %v5886_v45 = vmul.f32 %v5749_v22, %v2661_v59  ;;  %v2631_v43 = vmul.f32 0.03125, %v2593_v14  ;;  %2776 = vadd.xlane.f32.xlu1 %v2723_v28  ;;  %v2591_v9 = vpop.xlane.xlu0 %2590 }
 0x5f1   :  { %v5889_v58 = vmul.f32 %v5749_v22, %v2660_v35  ;;  %v2630_v61 = vmul.f32 0.03125, %v2591_v9  ;;  %2774 = vadd.xlane.f32.xlu0 %v2722_v4 }
 0x5f2   :  { %v2663_v21 = vsub.f32 %v5716_v19, %v2631_v43  ;;  %v2725_v24 = vmul.f32 %v5886_v45, %v5886_v45 }
 0x5f3   :  { %v2662_v56 = vsub.f32 %v5719_v57, %v2630_v61  ;;  %v2597_v63 = vpop.xlane.xlu1 %2596  ;;  %v2724_v48 = vmul.f32 %v5889_v58, %v5889_v58 }
 0x5f4   :  { %v5898_v3 = vmul.f32 %v5749_v22, %v2663_v21  ;;  %v2633_v39 = vmul.f32 0.03125, %v2597_v63  ;;  %2780 = vadd.xlane.f32.xlu1 %v2725_v24  ;;  %v2595_v37 = vpop.xlane.xlu0 %2594 }
 0x5f5   :  { %v5901_v8 = vmul.f32 %v5749_v22, %v2662_v56  ;;  %v2632_v25 = vmul.f32 0.03125, %v2595_v37  ;;  %2778 = vadd.xlane.f32.xlu0 %v2724_v48 }
 0x5f6   :  { %v2665_v19 = vsub.f32 %v5724_v13, %v2633_v39  ;;  %v2727_v57 = vmul.f32 %v5898_v3, %v5898_v3 }
 0x5f7   :  { %v2664_v1 = vsub.f32 %v5727_v31, %v2632_v25  ;;  %v2601_v36 = vpop.xlane.xlu1 %2600  ;;  %v2726_v40 = vmul.f32 %v5901_v8, %v5901_v8 }
 0x5f8   :  { %v5910_v16 = vmul.f32 %v5749_v22, %v2665_v19  ;;  %v2635_v59 = vmul.f32 0.03125, %v2601_v36  ;;  %2784 = vadd.xlane.f32.xlu1 %v2727_v57  ;;  %v2599_v28 = vpop.xlane.xlu0 %2598 }
 0x5f9   :  { %v5913_v35 = vmul.f32 %v5749_v22, %v2664_v1  ;;  %v2634_v14 = vmul.f32 0.03125, %v2599_v28  ;;  %2782 = vadd.xlane.f32.xlu0 %v2726_v40 }
 0x5fa   :  { %v2667_v13 = vsub.f32 %v5732_v7, %v2635_v59  ;;  %v2729_v31 = vmul.f32 %v5910_v16, %v5910_v16 }
 0x5fb   :  { %v2666_v4 = vsub.f32 %v5735_v30, %v2634_v14  ;;  %v2605_v43 = vpop.xlane.xlu1 %2604  ;;  %v2728_v9 = vmul.f32 %v5913_v35, %v5913_v35 }
 0x5fc   :  { %v5922_v61 = vmul.f32 %v5749_v22, %v2667_v13  ;;  %v2637_v21 = vmul.f32 0.03125, %v2605_v43  ;;  %2788 = vadd.xlane.f32.xlu1 %v2729_v31  ;;  %v2603_v24 = vpop.xlane.xlu0 %2602 }
 0x5fd   :  { %v5925_v56 = vmul.f32 %v5749_v22, %v2666_v4  ;;  %v2636_v63 = vmul.f32 0.03125, %v2603_v24  ;;  %2786 = vadd.xlane.f32.xlu0 %v2728_v9 }
 0x5fe   :  { %v2669_v7 = vsub.f32 %v5740_v23, %v2637_v21  ;;  %v2731_v30 = vmul.f32 %v5922_v61, %v5922_v61 }
 0x5ff   :  { %v2668_v48 = vsub.f32 %v5743_v20, %v2636_v63  ;;  %v2730_v39 = vmul.f32 %v5925_v56, %v5925_v56 }
 0x600   :  { %v5934_v37 = vmul.f32 %v5749_v22, %v2669_v7  ;;  %2792 = vadd.xlane.f32.xlu1 %v2731_v30 }
 0x601   :  { %v5937_v25 = vmul.f32 %v5749_v22, %v2668_v48  ;;  %2790 = vadd.xlane.f32.xlu0 %v2730_v39 }
 0x602   :  { %v2733_v19 = vmul.f32 %v5934_v37, %v5934_v37 }
 0x603   :  { %v2732_v23 = vmul.f32 %v5937_v25, %v5937_v25 }
 0x604   :  { %2796 = vadd.xlane.f32.xlu1 %v2733_v19 }
 0x605   :  { %2794 = vadd.xlane.f32.xlu0 %v2732_v23 }
 0x655   :  { %v2737_v20 = vpop.xlane.xlu1 %2736 }
 0x656   :  { %v2799_v57 = vmul.f32 0.03125, %v2737_v20  ;;  %v2735_v1 = vpop.xlane.xlu0 %2734  ;;  %v5946_v20 = vld [vmem:[%s6108_s12] ss:$0 sm:$0xff]  ;;  %s3979_s12 = smov [#allocation16]  }
 0x657   :  { %v2798_v36 = vmul.f32 0.03125, %v2735_v1 }
 0x658   :  { %v2831_v40 = vadd.f32 1e-05, %v2799_v57 }
 0x659   :  { %v2830_v59 = vadd.f32 1e-05, %v2798_v36  ;;  %v2741_v28 = vpop.xlane.xlu1 %2740 }
 0x65a   :  { %3766 = vrsqrt.f32 %v2831_v40  ;;  %v2801_v14 = vmul.f32 0.03125, %v2741_v28  ;;  %v2739_v22 = vpop.xlane.xlu0 %2738  ;;  %v5952_v28 = vld [vmem:[%s6109_s13] ss:$0 sm:$0xff]  ;;  %s3105_s13 = sshll.u32 %s3979_s12, 4  ;;  %s3106_s13 = int_to_ptr.vmem [resolvable:$true] %s3105_s13 }
 0x65b   :  { %3768 = vrsqrt.f32 %v2830_v59  ;;  %v2800_v13 = vmul.f32 0.03125, %v2739_v22  ;;  %s3940_s18 = scalar_lea.vmem %s3106_s13, 4096  ;;  %p3945_p0 = scmp.lt.s32.totalorder %s3106_s13, %s3106_s13 }
 0x65c   :  { %v2833_v31 = vadd.f32 1e-05, %v2801_v14  ;;  %p3941_p13 = scmp.ne.s32.totalorder %s3106_s13, %s3940_s18  ;;  %p3946_p1 = scmp.lt.s32.totalorder %s3940_s18, %s3940_s18 }
 0x65d   :  { %v2832_v4 = vadd.f32 1e-05, %v2800_v13  ;;  %v2745_v43 = vpop.xlane.xlu1 %2744 }
 0x65e   :  { %3770 = vrsqrt.f32 %v2833_v31  ;;  %v2803_v9 = vmul.f32 0.03125, %v2745_v43  ;;  %v2743_v21 = vpop.xlane.xlu0 %2742  ;;  %p3947_p2 = por %p3946_p1, %p3945_p0 }
 0x65f   :  { %3772 = vrsqrt.f32 %v2832_v4  ;;  %v2802_v24 = vmul.f32 0.03125, %v2743_v21 }
 0x660   :  { %v2835_v63 = vadd.f32 1e-05, %v2803_v9  ;;  %p3948_p3 = pnand %p3947_p2, %p3941_p13 }
 0x661   :  { %v2834_v7 = vadd.f32 1e-05, %v2802_v24  ;;  %v2749_v30 = vpop.xlane.xlu1 %2748 }
 0x662   :  { %3774 = vrsqrt.f32 %v2835_v63  ;;  %v2805_v48 = vmul.f32 0.03125, %v2749_v30  ;;  %v2747_v39 = vpop.xlane.xlu0 %2746 }
 0x663   :  { %3776 = vrsqrt.f32 %v2834_v7  ;;  %v2804_v19 = vmul.f32 0.03125, %v2747_v39 }
 0x664   :  { %v3767_v23 = vpop.eup %3766  ;;  %v2837_v57 = vadd.f32 1e-05, %v2805_v48 }
 0x665   :  { %v3769_v1 = vpop.eup %3768  ;;  %v2895_v36 = vmul.f32 %v3767_v23, %v5754_v50  ;;  %v2836_v40 = vadd.f32 1e-05, %v2804_v19  ;;  %v2753_v59 = vpop.xlane.xlu1 %2752 }
 0x666   :  { %v2894_v14 = vmul.f32 %v3769_v1, %v5757_v18  ;;  %3778 = vrsqrt.f32 %v2837_v57  ;;  %v2807_v22 = vmul.f32 0.03125, %v2753_v59  ;;  %v2751_v13 = vpop.xlane.xlu0 %2750 }
 0x667   :  { %v2934_v31 = vmul.f32 %v5946_v20, %v2895_v36  ;;  %3780 = vrsqrt.f32 %v2836_v40  ;;  %v2806_v4 = vmul.f32 0.03125, %v2751_v13 }
 0x668   :  { %v3771_v43 = vpop.eup %3770  ;;  %v2933_v9 = vmul.f32 %v5946_v20, %v2894_v14  ;;  %v2839_v50 = vadd.f32 1e-05, %v2807_v22 }
 0x669   :  { %v3773_v21 = vpop.eup %3772  ;;  %v2973_v24 = vadd.f32 %v5952_v28, %v2934_v31  ;;  %v2897_v63 = vmul.f32 %v3771_v43, %v5766_v47  ;;  %v2838_v7 = vadd.f32 1e-05, %v2806_v4  ;;  %v2757_v30 = vpop.xlane.xlu1 %2756 }
 0x66a   :  { %v2972_v18 = vadd.f32 %v5952_v28, %v2933_v9  ;;  %v2896_v48 = vmul.f32 %v3773_v21, %v5769_v33  ;;  %3782 = vrsqrt.f32 %v2839_v50  ;;  %v2809_v39 = vmul.f32 0.03125, %v2757_v30  ;;  %v2755_v19 = vpop.xlane.xlu0 %2754 }
 0x66b   :  { %v3005_v23 = vmax.f32 %v2973_v24, 0.0  ;;  %v2936_v57 = vmul.f32 %v5946_v20, %v2897_v63  ;;  %3784 = vrsqrt.f32 %v2838_v7  ;;  %v2808_v1 = vmul.f32 0.03125, %v2755_v19 }
 0x66c   :  { %v3775_v36 = vpop.eup %3774  ;;  %v3004_v40 = vmax.f32 %v2972_v18, 0.0  ;;  %v2935_v59 = vmul.f32 %v5946_v20, %v2896_v48  ;;  %v2841_v14 = vadd.f32 1e-05, %v2809_v39 }
 0x66d   :  { %v3777_v47 = vpop.eup %3776  ;;  %v3037_v22 = vadd.f32 %v3005_v23, %v4876_v12  ;;  %v2975_v13 = vadd.f32 %v5952_v28, %v2936_v57  ;;  %v2899_v33 = vmul.f32 %v3775_v36, %v5778_v51  ;;  %v2840_v31 = vadd.f32 1e-05, %v2808_v1  ;;  %v2761_v4 = vpop.xlane.xlu1 %2760 }
 0x66e   :  { %v3036_v43 = vadd.f32 %v3004_v40, %v4846_v52  ;;  %v2974_v9 = vadd.f32 %v5952_v28, %v2935_v59  ;;  %v2898_v50 = vmul.f32 %v3777_v47, %v5781_v62  ;;  %3786 = vrsqrt.f32 %v2841_v14  ;;  %v2759_v21 = vpop.xlane.xlu0 %2758 }
 0x66f   :  { %3069 = vst [vmem:[#allocation16 + $0x8] sm:$0xff] %v3037_v22  ;;  %v3007_v24 = vmax.f32 %v2975_v13, 0.0  ;;  %v2938_v63 = vmul.f32 %v5946_v20, %v2899_v33  ;;  %3788 = vrsqrt.f32 %v2840_v31  ;;  %v2811_v12 = vmul.f32 0.03125, %v2761_v4 }
 0x670   :  { %v3779_v7 = vpop.eup %3778  ;;  %3068 = vst [vmem:[#allocation16] sm:$0xff] %v3036_v43  ;;  %v3006_v30 = vmax.f32 %v2974_v9, 0.0  ;;  %v2937_v51 = vmul.f32 %v5946_v20, %v2898_v50  ;;  %v2810_v18 = vmul.f32 0.03125, %v2759_v21 }
 0x671   :  { %v3781_v48 = vpop.eup %3780  ;;  %v3039_v52 = vadd.f32 %v3007_v24, %v4896_v15  ;;  %v2977_v39 = vadd.f32 %v5952_v28, %v2938_v63  ;;  %v2901_v62 = vmul.f32 %v3779_v7, %v5790_v49  ;;  %v2843_v19 = vadd.f32 1e-05, %v2811_v12  ;;  %v2765_v23 = vpop.xlane.xlu1 %2764 }
 0x672   :  { %v3038_v57 = vadd.f32 %v3006_v30, %v4879_v27  ;;  %v2976_v1 = vadd.f32 %v5952_v28, %v2937_v51  ;;  %v2900_v36 = vmul.f32 %v3781_v48, %v5793_v42  ;;  %v2842_v40 = vadd.f32 1e-05, %v2810_v18  ;;  %v2763_v59 = vpop.xlane.xlu0 %2762 }
 0x673   :  { %3071 = vst [vmem:[#allocation16 + $0x18] sm:$0xff] %v3039_v52  ;;  %v3009_v14 = vmax.f32 %v2977_v39, 0.0  ;;  %v2940_v47 = vmul.f32 %v5946_v20, %v2901_v62  ;;  %3790 = vrsqrt.f32 %v2843_v19  ;;  %v2813_v15 = vmul.f32 0.03125, %v2765_v23 }
 0x674   :  { %v3783_v22 = vpop.eup %3782  ;;  %3070 = vst [vmem:[#allocation16 + $0x10] sm:$0xff] %v3038_v57  ;;  %v3008_v13 = vmax.f32 %v2976_v1, 0.0  ;;  %v2939_v49 = vmul.f32 %v5946_v20, %v2900_v36  ;;  %3792 = vrsqrt.f32 %v2842_v40  ;;  %v2812_v33 = vmul.f32 0.03125, %v2763_v59 }
 0x675   :  { %v3785_v27 = vpop.eup %3784  ;;  %v3041_v31 = vadd.f32 %v3009_v14, %v4920_v46  ;;  %v2979_v42 = vadd.f32 %v5952_v28, %v2940_v47  ;;  %v2903_v4 = vmul.f32 %v3783_v22, %v5802_v38  ;;  %v2845_v43 = vadd.f32 1e-05, %v2813_v15  ;;  %v2769_v9 = vpop.xlane.xlu1 %2768 }
 0x676   :  { %v3040_v50 = vadd.f32 %v3008_v13, %v4906_v60  ;;  %v2978_v21 = vadd.f32 %v5952_v28, %v2939_v49  ;;  %v2902_v24 = vmul.f32 %v3785_v27, %v5805_v54  ;;  %v2844_v63 = vadd.f32 1e-05, %v2812_v33  ;;  %v2767_v12 = vpop.xlane.xlu0 %2766  ;;  %v6217_v27 = vld [vmem:[#allocation40_spill] sm:$0xff] }
 0x677   :  { %3073 = vst [vmem:[#allocation16 + $0x28] sm:$0xff] %v3041_v31  ;;  %v3011_v7 = vmax.f32 %v2979_v42, 0.0  ;;  %v2942_v30 = vmul.f32 %v5946_v20, %v2903_v4  ;;  %3794 = vrsqrt.f32 %v2845_v43  ;;  %v2815_v46 = vmul.f32 0.03125, %v2769_v9 }
 0x678   :  { %v3787_v51 = vpop.eup %3786  ;;  %3072 = vst [vmem:[#allocation16 + $0x20] sm:$0xff] %v3040_v50  ;;  %v3010_v18 = vmax.f32 %v2978_v21, 0.0  ;;  %v2941_v38 = vmul.f32 %v5946_v20, %v2902_v24  ;;  %3796 = vrsqrt.f32 %v2844_v63  ;;  %v2814_v48 = vmul.f32 0.03125, %v2767_v12 }
 0x679   :  { %v3789_v60 = vpop.eup %3788  ;;  %v3043_v52 = vadd.f32 %v3011_v7, %v4943_v53  ;;  %v2981_v54 = vadd.f32 %v5952_v28, %v2942_v30  ;;  %v2905_v39 = vmul.f32 %v3787_v51, %v5814_v55  ;;  %v2847_v62 = vadd.f32 1e-05, %v2815_v46  ;;  %v2773_v19 = vpop.xlane.xlu1 %2772  ;;  %v6218_v30 = vld [vmem:[#allocation42_spill] sm:$0xff] }
 0x67a   :  { %v3042_v23 = vadd.f32 %v3010_v18, %v4925_v17  ;;  %v2980_v57 = vadd.f32 %v5952_v28, %v2941_v38  ;;  %v2904_v1 = vmul.f32 %v3789_v60, %v5817_v34  ;;  %v2846_v36 = vadd.f32 1e-05, %v2814_v48  ;;  %v2771_v40 = vpop.xlane.xlu0 %2770  ;;  %v6219_v48 = vld [vmem:[#allocation41_spill] sm:$0xff] }
 0x67b   :  { %3075 = vst [vmem:[#allocation16 + $0x38] sm:$0xff] %v3043_v52  ;;  %v3013_v59 = vmax.f32 %v2981_v54, 0.0  ;;  %v2944_v14 = vmul.f32 %v5946_v20, %v2905_v39  ;;  %3798 = vrsqrt.f32 %v2847_v62  ;;  %v2817_v53 = vmul.f32 0.03125, %v2773_v19 }
 0x67c   :  { %3074 = vst [vmem:[#allocation16 + $0x30] sm:$0xff] %v3042_v23  ;;  %v3012_v47 = vmax.f32 %v2980_v57, 0.0  ;;  %v2943_v55 = vmul.f32 %v5946_v20, %v2904_v1  ;;  %3800 = vrsqrt.f32 %v2846_v36  ;;  %v2816_v15 = vmul.f32 0.03125, %v2771_v40 }
 0x67d   :  { %v3791_v22 = vpop.eup %3790  ;;  %v3045_v17 = vadd.f32 %v3013_v59, %v4966_v0  ;;  %v2983_v13 = vadd.f32 %v5952_v28, %v2944_v14  ;;  %v2849_v34 = vadd.f32 1e-05, %v2817_v53  ;;  %v2777_v49 = vpop.xlane.xlu1 %2776 }
 0x67e   :  { %v3793_v33 = vpop.eup %3792  ;;  %v3044_v31 = vadd.f32 %v3012_v47, %v6217_v27  ;;  %v2982_v42 = vadd.f32 %v5952_v28, %v2943_v55  ;;  %v2907_v4 = vmul.f32 %v3791_v22, %v5826_v2  ;;  %v2848_v43 = vadd.f32 1e-05, %v2816_v15  ;;  %v2775_v9 = vpop.xlane.xlu0 %2774  ;;  %v6220_v55 = vld [vmem:[#allocation44_spill] sm:$0xff] }
 0x67f   :  { %3077 = vst [vmem:[#allocation16 + $0x48] sm:$0xff] %v3045_v17  ;;  %v3015_v50 = vmax.f32 %v2983_v13, 0.0  ;;  %v2906_v21 = vmul.f32 %v3793_v33, %v5829_v6  ;;  %3802 = vrsqrt.f32 %v2849_v34  ;;  %v2819_v24 = vmul.f32 0.03125, %v2777_v49  ;;  %v6221_v34 = vld [vmem:[#allocation43_spill] sm:$0xff] }
 0x680   :  { %3076 = vst [vmem:[#allocation16 + $0x40] sm:$0xff] %v3044_v31  ;;  %v3014_v0 = vmax.f32 %v2982_v42, 0.0  ;;  %v2946_v63 = vmul.f32 %v5946_v20, %v2907_v4  ;;  %3804 = vrsqrt.f32 %v2848_v43  ;;  %v2818_v12 = vmul.f32 0.03125, %v2775_v9 }
 0x681   :  { %v3795_v7 = vpop.eup %3794  ;;  %v3047_v46 = vadd.f32 %v3015_v50, %v6218_v30  ;;  %v2945_v51 = vmul.f32 %v5946_v20, %v2906_v21  ;;  %v2851_v2 = vadd.f32 1e-05, %v2819_v24  ;;  %v2781_v18 = vpop.xlane.xlu1 %2780 }
 0x682   :  { %v3797_v38 = vpop.eup %3796  ;;  %v3046_v60 = vadd.f32 %v3014_v0, %v6219_v48  ;;  %v2985_v6 = vadd.f32 %v5952_v28, %v2946_v63  ;;  %v2909_v52 = vmul.f32 %v3795_v7, %v5838_v26  ;;  %v2850_v54 = vadd.f32 1e-05, %v2818_v12  ;;  %v2779_v39 = vpop.xlane.xlu0 %2778  ;;  %v6222_v0 = vld [vmem:[#allocation46_spill] sm:$0xff] }
 0x683   :  { %3079 = vst [vmem:[#allocation16 + $0x58] sm:$0xff] %v3047_v46  ;;  %v2984_v62 = vadd.f32 %v5952_v28, %v2945_v51  ;;  %v2908_v19 = vmul.f32 %v3797_v38, %v5841_v41  ;;  %3806 = vrsqrt.f32 %v2851_v2  ;;  %v2821_v23 = vmul.f32 0.03125, %v2781_v18  ;;  %v6223_v46 = vld [vmem:[#allocation45_spill] sm:$0xff] }
 0x684   :  { %3078 = vst [vmem:[#allocation16 + $0x50] sm:$0xff] %v3046_v60  ;;  %v3017_v57 = vmax.f32 %v2985_v6, 0.0  ;;  %v2948_v1 = vmul.f32 %v5946_v20, %v2909_v52  ;;  %3808 = vrsqrt.f32 %v2850_v54  ;;  %v2820_v36 = vmul.f32 0.03125, %v2779_v39 }
 0x685   :  { %v3799_v40 = vpop.eup %3798  ;;  %v3016_v59 = vmax.f32 %v2984_v62, 0.0  ;;  %v2947_v14 = vmul.f32 %v5946_v20, %v2908_v19  ;;  %v2853_v26 = vadd.f32 1e-05, %v2821_v23  ;;  %v2785_v53 = vpop.xlane.xlu1 %2784  ;;  %v6224_v23 = vld [vmem:[#allocation48_spill] sm:$0xff] }
 0x686   :  { %v3801_v47 = vpop.eup %3800  ;;  %v3049_v15 = vadd.f32 %v3017_v57, %v6220_v55  ;;  %v2987_v22 = vadd.f32 %v5952_v28, %v2948_v1  ;;  %v2911_v41 = vmul.f32 %v3799_v40, %v5850_v5  ;;  %v2852_v17 = vadd.f32 1e-05, %v2820_v36  ;;  %v2783_v13 = vpop.xlane.xlu0 %2782 }
 0x687   :  { %v3048_v49 = vadd.f32 %v3016_v59, %v6221_v34  ;;  %v2986_v33 = vadd.f32 %v5952_v28, %v2947_v14  ;;  %v2910_v27 = vmul.f32 %v3801_v47, %v5853_v11  ;;  %3810 = vrsqrt.f32 %v2853_v26  ;;  %v6225_v59 = vld [vmem:[#allocation47_spill] sm:$0xff] }
 0x688   :  { %3081 = vst [vmem:[#allocation16 + $0x68] sm:$0xff] %v3049_v15  ;;  %v3019_v31 = vmax.f32 %v2987_v22, 0.0  ;;  %v2950_v42 = vmul.f32 %v5946_v20, %v2911_v41  ;;  %3812 = vrsqrt.f32 %v2852_v17  ;;  %v2823_v4 = vmul.f32 0.03125, %v2785_v53 }
 0x689   :  { %v3803_v43 = vpop.eup %3802  ;;  %3080 = vst [vmem:[#allocation16 + $0x60] sm:$0xff] %v3048_v49  ;;  %v3018_v9 = vmax.f32 %v2986_v33, 0.0  ;;  %v2949_v5 = vmul.f32 %v5946_v20, %v2910_v27  ;;  %v2822_v50 = vmul.f32 0.03125, %v2783_v13  ;;  %v2789_v21 = vpop.xlane.xlu1 %2788  ;;  %v6226_v33 = vld [vmem:[#allocation50_spill] sm:$0xff] }
 0x68a   :  { %v3805_v24 = vpop.eup %3804  ;;  %v3051_v63 = vadd.f32 %v3019_v31, %v6222_v0  ;;  %v2989_v12 = vadd.f32 %v5952_v28, %v2950_v42  ;;  %v2913_v11 = vmul.f32 %v3803_v43, %v5862_v44  ;;  %v2855_v7 = vadd.f32 1e-05, %v2823_v4  ;;  %v2787_v30 = vpop.xlane.xlu0 %2786  ;;  %v6227_v43 = vld [vmem:[#allocation49_spill] sm:$0xff] }
 0x68b   :  { %v3050_v51 = vadd.f32 %v3018_v9, %v6223_v46  ;;  %v2988_v2 = vadd.f32 %v5952_v28, %v2949_v5  ;;  %v2912_v18 = vmul.f32 %v3805_v24, %v5865_v32  ;;  %v2854_v38 = vadd.f32 1e-05, %v2822_v50 }
 0x68c   :  { %3083 = vst [vmem:[#allocation16 + $0x78] sm:$0xff] %v3051_v63  ;;  %v3021_v48 = vmax.f32 %v2989_v12, 0.0  ;;  %v2952_v60 = vmul.f32 %v5946_v20, %v2913_v11  ;;  %3814 = vrsqrt.f32 %v2855_v7  ;;  %v2825_v6 = vmul.f32 0.03125, %v2789_v21 }
 0x68d   :  { %v3807_v52 = vpop.eup %3806  ;;  %3082 = vst [vmem:[#allocation16 + $0x70] sm:$0xff] %v3050_v51  ;;  %v3020_v54 = vmax.f32 %v2988_v2, 0.0  ;;  %v2951_v44 = vmul.f32 %v5946_v20, %v2912_v18  ;;  %3816 = vrsqrt.f32 %v2854_v38  ;;  %v2824_v39 = vmul.f32 0.03125, %v2787_v30  ;;  %v2793_v62 = vpop.xlane.xlu1 %2792  ;;  %v6228_v30 = vld [vmem:[#allocation52_spill] sm:$0xff]  ;;  %v6229_v18 = vld [vmem:[#allocation51_spill] sm:$0xff] }
 0x68e   :  { %v3809_v19 = vpop.eup %3808  ;;  %v3053_v57 = vadd.f32 %v3021_v48, %v6224_v23  ;;  %v2991_v32 = vadd.f32 %v5952_v28, %v2952_v60  ;;  %v2915_v1 = vmul.f32 %v3807_v52, %v5874_v10  ;;  %v2857_v36 = vadd.f32 1e-05, %v2825_v6  ;;  %v2791_v40 = vpop.xlane.xlu0 %2790 }
 0x68f   :  { %v3052_v14 = vadd.f32 %v3020_v54, %v6225_v59  ;;  %v2990_v26 = vadd.f32 %v5952_v28, %v2951_v44  ;;  %v2914_v53 = vmul.f32 %v3809_v19, %v5877_v29  ;;  %v2856_v47 = vadd.f32 1e-05, %v2824_v39  ;;  %v6230_v19 = vld [vmem:[#allocation54_spill] sm:$0xff] }
 0x690   :  { %3085 = vst [vmem:[#allocation16 + $0x88] sm:$0xff] %v3053_v57  ;;  %v3023_v55 = vmax.f32 %v2991_v32, 0.0  ;;  %v2954_v15 = vmul.f32 %v5946_v20, %v2915_v1  ;;  %3818 = vrsqrt.f32 %v2857_v36  ;;  %v2827_v22 = vmul.f32 0.03125, %v2793_v62  ;;  %v6231_v1 = vld [vmem:[#allocation53_spill] sm:$0xff] }
 0x691   :  { %v3811_v41 = vpop.eup %3810  ;;  %3084 = vst [vmem:[#allocation16 + $0x80] sm:$0xff] %v3052_v14  ;;  %v3022_v17 = vmax.f32 %v2990_v26, 0.0  ;;  %v2953_v10 = vmul.f32 %v5946_v20, %v2914_v53  ;;  %3820 = vrsqrt.f32 %v2856_v47  ;;  %v2826_v13 = vmul.f32 0.03125, %v2791_v40  ;;  %v2797_v34 = vpop.xlane.xlu1 %2796 }
 0x692   :  { %v3813_v49 = vpop.eup %3812  ;;  %v3055_v27 = vadd.f32 %v3023_v55, %v6226_v33  ;;  %v2993_v29 = vadd.f32 %v5952_v28, %v2954_v15  ;;  %v2917_v31 = vmul.f32 %v3811_v41, %v5886_v45  ;;  %v2859_v42 = vadd.f32 1e-05, %v2827_v22  ;;  %v2795_v4 = vpop.xlane.xlu0 %2794  ;;  %v6232_v22 = vld [vmem:[#allocation56_spill] sm:$0xff] }
 0x693   :  { %v3054_v9 = vadd.f32 %v3022_v17, %v6227_v43  ;;  %v2992_v5 = vadd.f32 %v5952_v28, %v2953_v10  ;;  %v2916_v50 = vmul.f32 %v3813_v49, %v5889_v58  ;;  %v2858_v21 = vadd.f32 1e-05, %v2826_v13  ;;  %v6233_v10 = vld [vmem:[#allocation55_spill] sm:$0xff] }
 0x694   :  { %3087 = vst [vmem:[#allocation16 + $0x98] sm:$0xff] %v3055_v27  ;;  %v3025_v24 = vmax.f32 %v2993_v29, 0.0  ;;  %v2956_v0 = vmul.f32 %v5946_v20, %v2917_v31  ;;  %3822 = vrsqrt.f32 %v2859_v42  ;;  %v2829_v63 = vmul.f32 0.03125, %v2797_v34 }
 0x695   :  { %3086 = vst [vmem:[#allocation16 + $0x90] sm:$0xff] %v3054_v9  ;;  %v3024_v12 = vmax.f32 %v2992_v5, 0.0  ;;  %v2955_v11 = vmul.f32 %v5946_v20, %v2916_v50  ;;  %3824 = vrsqrt.f32 %v2858_v21  ;;  %v2828_v45 = vmul.f32 0.03125, %v2795_v4  ;;  %v6234_v4 = vld [vmem:[#allocation58_spill] sm:$0xff]  ;;  %v6235_v5 = vld [vmem:[#allocation57_spill] sm:$0xff] }
 0x696   :  { %v3815_v7 = vpop.eup %3814  ;;  %v3057_v46 = vadd.f32 %v3025_v24, %v6228_v30  ;;  %v2995_v51 = vadd.f32 %v5952_v28, %v2956_v0  ;;  %v2861_v2 = vadd.f32 1e-05, %v2829_v63  ;;  %v6237_v30 = vld [vmem:[#allocation59_spill] sm:$0xff] }
 0x697   :  { %v3817_v58 = vpop.eup %3816  ;;  %v3056_v38 = vadd.f32 %v3024_v12, %v6229_v18  ;;  %v2994_v48 = vadd.f32 %v5952_v28, %v2955_v11  ;;  %v2919_v60 = vmul.f32 %v3815_v7, %v5898_v3  ;;  %v2860_v6 = vadd.f32 1e-05, %v2828_v45  ;;  %v6236_v11 = vld [vmem:[#allocation60_spill] sm:$0xff]  ;;  %v6239_v18 = vld [vmem:[#allocation61_spill] sm:$0xff] }
 0x698   :  { %3089 = vst [vmem:[#allocation16 + $0xa8] sm:$0xff] %v3057_v46  ;;  %v3027_v52 = vmax.f32 %v2995_v51, 0.0  ;;  %v2918_v54 = vmul.f32 %v3817_v58, %v5901_v8  ;;  %3826 = vrsqrt.f32 %v2861_v2  ;;  %v6238_v2 = vld [vmem:[#allocation62_spill] sm:$0xff] }
 0x699   :  { %3088 = vst [vmem:[#allocation16 + $0xa0] sm:$0xff] %v3056_v38  ;;  %v3026_v44 = vmax.f32 %v2994_v48, 0.0  ;;  %v2958_v39 = vmul.f32 %v5946_v20, %v2919_v60  ;;  %3828 = vrsqrt.f32 %v2860_v6 }
 0x69a   :  { %v3819_v62 = vpop.eup %3818  ;;  %v3059_v23 = vadd.f32 %v3027_v52, %v6230_v19  ;;  %v2957_v57 = vmul.f32 %v5946_v20, %v2918_v54 }
 0x69b   :  { %v3821_v32 = vpop.eup %3820  ;;  %v3058_v36 = vadd.f32 %v3026_v44, %v6231_v1  ;;  %v2997_v3 = vadd.f32 %v5952_v28, %v2958_v39  ;;  %v2921_v40 = vmul.f32 %v3819_v62, %v5910_v16 }
 0x69c   :  { %3091 = vst [vmem:[#allocation16 + $0xb8] sm:$0xff] %v3059_v23  ;;  %v2996_v8 = vadd.f32 %v5952_v28, %v2957_v57  ;;  %v2920_v59 = vmul.f32 %v3821_v32, %v5913_v35 }
 0x69d   :  { %3090 = vst [vmem:[#allocation16 + $0xb0] sm:$0xff] %v3058_v36  ;;  %v3029_v14 = vmax.f32 %v2997_v3, 0.0  ;;  %v2960_v26 = vmul.f32 %v5946_v20, %v2921_v40 }
 0x69e   :  { %v3823_v53 = vpop.eup %3822  ;;  %v3028_v47 = vmax.f32 %v2996_v8, 0.0  ;;  %v2959_v55 = vmul.f32 %v5946_v20, %v2920_v59 }
 0x69f   :  { %v3825_v15 = vpop.eup %3824  ;;  %v3061_v41 = vadd.f32 %v3029_v14, %v6232_v22  ;;  %v2999_v17 = vadd.f32 %v5952_v28, %v2960_v26  ;;  %v2923_v16 = vmul.f32 %v3823_v53, %v5922_v61 }
 0x6a0   :  { %v3060_v13 = vadd.f32 %v3028_v47, %v6233_v10  ;;  %v2998_v34 = vadd.f32 %v5952_v28, %v2959_v55  ;;  %v2922_v35 = vmul.f32 %v3825_v15, %v5925_v56 }
 0x6a1   :  { %3093 = vst [vmem:[#allocation16 + $0xc8] sm:$0xff] %v3061_v41  ;;  %v3031_v49 = vmax.f32 %v2999_v17, 0.0  ;;  %v2962_v33 = vmul.f32 %v5946_v20, %v2923_v16 }
 0x6a2   :  { %v3827_v27 = vpop.eup %3826  ;;  %3092 = vst [vmem:[#allocation16 + $0xc0] sm:$0xff] %v3060_v13  ;;  %v3030_v29 = vmax.f32 %v2998_v34, 0.0  ;;  %v2961_v31 = vmul.f32 %v5946_v20, %v2922_v35 }
 0x6a3   :  { %v3829_v42 = vpop.eup %3828  ;;  %v3063_v43 = vadd.f32 %v3031_v49, %v6234_v4  ;;  %v3001_v61 = vadd.f32 %v5952_v28, %v2962_v33  ;;  %v2925_v9 = vmul.f32 %v3827_v27, %v5934_v37 }
 0x6a4   :  { %v3062_v50 = vadd.f32 %v3030_v29, %v6235_v5  ;;  %v3000_v56 = vadd.f32 %v5952_v28, %v2961_v31  ;;  %v2924_v21 = vmul.f32 %v3829_v42, %v5937_v25 }
 0x6a5   :  { %3095 = vst [vmem:[#allocation16 + $0xd8] sm:$0xff] %v3063_v43  ;;  %v3033_v24 = vmax.f32 %v3001_v61, 0.0  ;;  %v2964_v0 = vmul.f32 %v5946_v20, %v2925_v9 }
 0x6a6   :  { %3094 = vst [vmem:[#allocation16 + $0xd0] sm:$0xff] %v3062_v50  ;;  %v3032_v63 = vmax.f32 %v3000_v56, 0.0  ;;  %v2963_v12 = vmul.f32 %v5946_v20, %v2924_v21 }
 0x6a7   :  { %v3065_v45 = vadd.f32 %v3033_v24, %v6236_v11  ;;  %v3003_v7 = vadd.f32 %v5952_v28, %v2964_v0 }
 0x6a8   :  { %v3064_v37 = vadd.f32 %v3032_v63, %v6237_v30  ;;  %v3002_v46 = vadd.f32 %v5952_v28, %v2963_v12 }
 0x6a9   :  { %3097 = vst [vmem:[#allocation16 + $0xe8] sm:$0xff] %v3065_v45  ;;  %v3035_v51 = vmax.f32 %v3003_v7, 0.0 }
 0x6aa   :  { %3096 = vst [vmem:[#allocation16 + $0xe0] sm:$0xff] %v3064_v37  ;;  %v3034_v25 = vmax.f32 %v3002_v46, 0.0 }
 0x6ab   :  { %v3067_v58 = vadd.f32 %v3035_v51, %v6238_v2 }
 0x6ac   :  { %v3066_v38 = vadd.f32 %v3034_v25, %v6239_v18 }
 0x6ad   :  { %3099 = vst [vmem:[#allocation16 + $0xf8] sm:$0xff] %v3067_v58 }
 0x6ae   :  { %3098 = vst [vmem:[#allocation16 + $0xf0] sm:$0xff] %v3066_v38 }
 0x6af   :  { %3951 = shalt.err (!%p3948_p3)
}
 0x6b0   :  { %s3952_s4 = scalar_lea.hbm %s6110_s14, 4096 }
 0x6b1   :  { %p3953_p4 = scmp.ne.s32.totalorder %s6110_s14, %s3952_s4  ;;  %p3956_p5 = scmp.lt.u32.totalorder %s3952_s4, %s6110_s14 }
 0x6b3   :  { %p3958_p6 = pnand %p3956_p5, %p3953_p4 }
 0x6b5   :  { %3961 = shalt.err (!%p3958_p6)
}
 0x6b6   :  { %3111 = dma.vmem_to_hbm [thread:$0]  %s3106_s13, 4096, %s6110_s14, [#allocation9], %s3972_s26, %s3972_s26, %s3973_s27  }
 0x6b7   :  { %3968 = dma.done.wait [#allocation9], 4096  }
 0x6b8   :  { %3969 = vsyncadd [#allocation9], 4294963200 }
 0x6b9   :  { %3115 = vsyncpa [#allocation8], 1 }
 0x6ba   :  { %3116 = vsyncpa [#allocation11], 1 }
 0x6bb   :  { %3117 = vsyncpa [#allocation14], 1 }
 0x6bc   :  { %3118 = vsyncpa [#allocation9], 1 }

</bundles_post_ra>
